<compile_context>
chip_gen: v7x
topology: tpu7x:2x2x1
jax: 0.10.0
libtpu: 0.0.40
codegen_flags: <defaults>
</compile_context>

<pallas_src>
import functools
import math

import jax
import jax.numpy as jnp
from jax import lax
from jax.experimental import pallas as pl
from jax.experimental.pallas import tpu as pltpu


# --------------------------- fused MHA kernel ------------------------------ #
def _fused_mha_kernel(q_ref, k_ref, v_ref,
                      wq_ref, bq_ref, wk_ref, bk_ref, wv_ref, bv_ref,
                      wo_ref, bo_ref, o_ref, *,
                      bb, n_q, n_k, n_head, d_k, d_v):
    f32 = jnp.float32
    bf16 = jnp.bfloat16
    d_o = wo_ref.shape[1]

    # ---- wide projections: M = bb*n_seq, N = n_head*d_{k,v} (MXU-friendly) --
    # (1/sqrt(d_k) is already folded into wq/bq at param-prep time, so the
    #  bias add here is the only epilogue; result cast once to bf16 for the
    #  attention matmuls, accumulation stays f32.)
    qp = (jnp.dot(q_ref[...], wq_ref[...], preferred_element_type=f32)
          + bq_ref[...]).astype(bf16)                     # (bb*n_q, H*d_k)
    kp = (jnp.dot(k_ref[...], wk_ref[...], preferred_element_type=f32)
          + bk_ref[...]).astype(bf16)                     # (bb*n_k, H*d_k)
    vp = (jnp.dot(v_ref[...], wv_ref[...], preferred_element_type=f32)
          + bv_ref[...]).astype(bf16)                     # (bb*n_k, H*d_v)

    bo = bo_ref[...]                                      # (1, d_o) f32

    # ---- per-(batch, head) attention; output projection accumulated per head
    for b in range(bb):                                   # small, fully unrolled
        rq = slice(b * n_q, (b + 1) * n_q)                # sublane-aligned rows
        rk = slice(b * n_k, (b + 1) * n_k)
        acc = jnp.zeros((n_q, d_o), f32)
        for h in range(n_head):
            cq = slice(h * d_k, (h + 1) * d_k)            # lane-aligned (x128)
            cv = slice(h * d_v, (h + 1) * d_v)
            qh = qp[rq, cq]                               # (n_q, d_k) bf16
            kh = kp[rk, cq]                               # (n_k, d_k) bf16
            vh = vp[rk, cv]                               # (n_k, d_v) bf16

            # Scores: contract last dims directly (NT matmul, no K transpose).
            s = lax.dot_general(qh, kh, (((1,), (1,)), ((), ())),
                                preferred_element_type=f32)   # (n_q, n_k)

            # Softmax over the key axis (dim=2 in the PyTorch module).
            s = s - jnp.max(s, axis=-1, keepdims=True)
            p = jnp.exp(s)
            p = p * pl.reciprocal(jnp.sum(p, axis=-1, keepdims=True),
                                  approx=True)

            ho = jnp.dot(p.astype(bf16), vh,
                         preferred_element_type=f32)      # (n_q, d_v)
            # Accumulate the output projection per head: no concat, only one
            # head output + one accumulator live at a time.
            acc = acc + jnp.dot(ho.astype(bf16), wo_ref[cv, :],
                                preferred_element_type=f32)
        o_ref[rq, :] = (acc + bo).astype(o_ref.dtype)


def _pick_batch_block(batch, n_q, target_rows=256):
    """Largest divisor of `batch` keeping bb*n_q near the MXU M target."""
    for bb in range(batch, 0, -1):
        if batch % bb == 0 and bb * n_q <= max(target_rows, n_q):
            return bb
    return 1


def multi_head_attention(kparams, q, k, v):
    """Fused multi-head attention forward pass (single pallas_call).

    `kparams` must come from `prepare_kernel_params` (bf16 weights, scale
    folded into wq/bq, biases reshaped to (1, N)).
    """
    n_head, d_k, d_v, d_o = (kparams["n_head"], kparams["d_k"],
                             kparams["d_v"], kparams["d_o"])
    batch, n_q, d_q_ = q.shape
    _, n_k, d_k_ = k.shape
    _, n_v, d_v_ = v.shape
    assert n_k == n_v
    assert n_q % 8 == 0 and n_k % 8 == 0, "seq lens must be sublane-aligned"
    assert d_k % 128 == 0 and d_v % 128 == 0 and d_o % 128 == 0

    bb = _pick_batch_block(batch, max(n_q, n_k))
    grid = (batch // bb,)
    out_dtype = q.dtype

    # Fold batch into the matmul M dimension; bf16 MXU operands.
    q2 = q.reshape(batch * n_q, d_q_).astype(jnp.bfloat16)
    k2 = k.reshape(batch * n_k, d_k_).astype(jnp.bfloat16)
    v2 = v.reshape(batch * n_v, d_v_).astype(jnp.bfloat16)

    wq, bq = kparams["wq"], kparams["bq"]
    wk, bk = kparams["wk"], kparams["bk"]
    wv, bv = kparams["wv"], kparams["bv"]
    wo, bo = kparams["wo"], kparams["bo"]

    kern = functools.partial(_fused_mha_kernel, bb=bb, n_q=n_q, n_k=n_k,
                             n_head=n_head, d_k=d_k, d_v=d_v)

    def _const(arr):  # full-array block, identical (resident) every grid step
        return pl.BlockSpec(arr.shape, lambda i: (0, 0))

    out2 = pl.pallas_call(
        kern,
        out_shape=jax.ShapeDtypeStruct((batch * n_q, d_o), out_dtype),
        grid_spec=pltpu.PrefetchScalarGridSpec(
            num_scalar_prefetch=0,
            grid=grid,
            in_specs=[
                pl.BlockSpec((bb * n_q, d_q_), lambda i: (i, 0)),
                pl.BlockSpec((bb * n_k, d_k_), lambda i: (i, 0)),
                pl.BlockSpec((bb * n_v, d_v_), lambda i: (i, 0)),
                _const(wq), _const(bq),
                _const(wk), _const(bk),
                _const(wv), _const(bv),
                _const(wo), _const(bo),
            ],
            out_specs=pl.BlockSpec((bb * n_q, d_o), lambda i: (i, 0)),
        ),
        compiler_params=pltpu.CompilerParams(
            dimension_semantics=("parallel",),
        ),
    )(q2, k2, v2, wq, bq, wk, bk, wv, bv, wo, bo)

    return out2.reshape(batch, n_q, d_o)


# ------------------------------ parameters --------------------------------- #
def init_mha_params(key, n_head=8, d_k_=128, d_v_=128, d_k=128, d_v=128, d_o=128):
    """Deterministic init (PyTorch-Linear-style uniform bounds).

    Weights are stored as (d_in, d_out) so the kernel computes x @ W + b
    (equivalent to PyTorch's x @ W.T + b with W of shape (d_out, d_in)).
    """
    def linear_init(k, d_in, d_out):
        kw, kb = jax.random.split(k)
        bound = 1.0 / math.sqrt(d_in)
        w = jax.random.uniform(kw, (d_in, d_out), jnp.float32, -bound, bound)
        b = jax.random.uniform(kb, (d_out,), jnp.float32, -bound, bound)
        return w, b

    k1, k2, k3, k4 = jax.random.split(key, 4)
    wq, bq = linear_init(k1, d_k_, n_head * d_k)
    wk, bk = linear_init(k2, d_k_, n_head * d_k)
    wv, bv = linear_init(k3, d_v_, n_head * d_v)
    wo, bo = linear_init(k4, n_head * d_v, d_o)
    return dict(wq=wq, bq=bq, wk=wk, bk=bk, wv=wv, bv=bv, wo=wo, bo=bo,
                n_head=n_head, d_k=d_k, d_v=d_v, d_o=d_o)


def prepare_kernel_params(params):
    """One-time constant transform of logical params into the kernel layout:
       * fold 1/sqrt(d_k) into wq/bq (removes the per-head scale multiply),
       * cast weights to bf16 (native MXU operand type), keep biases f32,
       * reshape biases to (1, N) rows for lane-dense broadcast adds."""
    scale = float(params["d_k"]) ** 0.5
    p = dict(params)
    p["wq"] = (params["wq"] / scale).astype(jnp.bfloat16)
    p["wk"] = params["wk"].astype(jnp.bfloat16)
    p["wv"] = params["wv"].astype(jnp.bfloat16)
    p["wo"] = params["wo"].astype(jnp.bfloat16)
    p["bq"] = (params["bq"] / scale).reshape(1, -1).astype(jnp.float32)
    p["bk"] = params["bk"].reshape(1, -1).astype(jnp.float32)
    p["bv"] = params["bv"].reshape(1, -1).astype(jnp.float32)
    p["bo"] = params["bo"].reshape(1, -1).astype(jnp.float32)
    return p


# ---------------------------- pure-JAX reference --------------------------- #
def mha_reference(params, q, k, v):
    n_head, d_k, d_v = params["n_head"], params["d_k"], params["d_v"]
    batch, n_q, _ = q.shape
    _, n_k, _ = k.shape
    qp = q @ params["wq"] + params["bq"]
    kp = k @ params["wk"] + params["bk"]
    vp = v @ params["wv"] + params["bv"]
    qh = qp.reshape(batch, n_q, n_head, d_k).transpose(2, 0, 1, 3).reshape(-1, n_q, d_k)
    kh = kp.reshape(batch, n_k, n_head, d_k).transpose(2, 0, 1, 3).reshape(-1, n_k, d_k)
    vh = vp.reshape(batch, n_k, n_head, d_v).transpose(2, 0, 1, 3).reshape(-1, n_k, d_v)
    s = jnp.einsum("bqd,bkd->bqk", qh, kh) / (float(d_k) ** 0.5)
    p = jax.nn.softmax(s, axis=-1)
    o = jnp.einsum("bqk,bkd->bqd", p, vh)
    o = o.reshape(n_head, batch, n_q, d_v).transpose(1, 2, 0, 3).reshape(batch, n_q, -1)
    return o @ params["wo"] + params["bo"]


if __name__ == "__main__":
    key = jax.random.PRNGKey(0)
    kp_, kq, kk, kv = jax.random.split(key, 4)

    # Small shapes consistent with the module defaults (d_* = 128, n_head = 8).
    batch, n_q, n_k = 2, 16, 16
    d_k_, d_v_ = 128, 128

    params = init_mha_params(kp_, n_head=8, d_k_=d_k_, d_v_=d_v_,
                             d_k=128, d_v=128, d_o=128)
    kernel_params = prepare_kernel_params(params)   # one-time constant transform

    q = jax.random.normal(kq, (batch, n_q, d_k_), jnp.float32)
    k = jax.random.normal(kk, (batch, n_k, d_k_), jnp.float32)
    v = jax.random.normal(kv, (batch, n_k, d_v_), jnp.float32)

    out = multi_head_attention(kernel_params, q, k, v)
    out = jax.block_until_ready(out)

    ref = mha_reference(params, q, k, v)
    assert out.shape == (batch, n_q, 128), out.shape
    # Tolerance relaxed vs pure-f32: matmul operands are bf16 (f32 MXU
    # accumulation) and the softmax denominator uses the EUP approximate
    # reciprocal (~2^-12 rel. err).  Estimated max abs error ~5e-3 at these
    # shapes; 2e-2 leaves ~4x margin.
    assert jnp.allclose(out, ref, atol=2e-2, rtol=2e-2), (
        "mismatch vs reference: max abs diff = "
        f"{float(jnp.max(jnp.abs(out - ref)))}")

    print("KERNEL_OK")
</pallas_src>

<mosaic_0001>
module attributes {stable_mosaic.version = 11 : i64} {
  func.func @_fused_mha_kernel(%arg0: i32, %arg1: memref<32x128xbf16, #tpu.memory_space<vmem>>, %arg2: memref<32x128xbf16, #tpu.memory_space<vmem>>, %arg3: memref<32x128xbf16, #tpu.memory_space<vmem>>, %arg4: memref<128x1024xbf16, #tpu.memory_space<vmem>>, %arg5: memref<1x1024xf32, #tpu.memory_space<vmem>>, %arg6: memref<128x1024xbf16, #tpu.memory_space<vmem>>, %arg7: memref<1x1024xf32, #tpu.memory_space<vmem>>, %arg8: memref<128x1024xbf16, #tpu.memory_space<vmem>>, %arg9: memref<1x1024xf32, #tpu.memory_space<vmem>>, %arg10: memref<1024x128xbf16, #tpu.memory_space<vmem>>, %arg11: memref<1x128xf32, #tpu.memory_space<vmem>>, %arg12: memref<32x128xf32, #tpu.memory_space<vmem>>) attributes {dimension_semantics = [#tpu.dimension_semantics<parallel>], iteration_bounds = array<i64: 1>, scalar_prefetch = 0 : i64, scratch_operands = 0 : i64, tpu.core_type = #tpu.core_type<tc>, window_params = [{transform_indices = @transform_0, window_bounds = array<i64: 32, 128>}, {transform_indices = @transform_1, window_bounds = array<i64: 32, 128>}, {transform_indices = @transform_2, window_bounds = array<i64: 32, 128>}, {pipeline_mode = #tpu.pipeline_mode<synchronous>, transform_indices = @transform_3, window_bounds = array<i64: 128, 1024>}, {pipeline_mode = #tpu.pipeline_mode<synchronous>, transform_indices = @transform_4, window_bounds = array<i64: 1, 1024>}, {pipeline_mode = #tpu.pipeline_mode<synchronous>, transform_indices = @transform_5, window_bounds = array<i64: 128, 1024>}, {pipeline_mode = #tpu.pipeline_mode<synchronous>, transform_indices = @transform_6, window_bounds = array<i64: 1, 1024>}, {pipeline_mode = #tpu.pipeline_mode<synchronous>, transform_indices = @transform_7, window_bounds = array<i64: 128, 1024>}, {pipeline_mode = #tpu.pipeline_mode<synchronous>, transform_indices = @transform_8, window_bounds = array<i64: 1, 1024>}, {pipeline_mode = #tpu.pipeline_mode<synchronous>, transform_indices = @transform_9, window_bounds = array<i64: 1024, 128>}, {pipeline_mode = #tpu.pipeline_mode<synchronous>, transform_indices = @transform_10, window_bounds = array<i64: 1, 128>}, {transform_indices = @transform_11, window_bounds = array<i64: 32, 128>}]} {
    %c0 = arith.constant 0 : index
    %c0_0 = arith.constant 0 : index
    %0 = vector.load %arg1[%c0, %c0_0] : memref<32x128xbf16, #tpu.memory_space<vmem>>, vector<32x128xbf16>
    %c0_1 = arith.constant 0 : index
    %c0_2 = arith.constant 0 : index
    %1 = vector.load %arg4[%c0_1, %c0_2] : memref<128x1024xbf16, #tpu.memory_space<vmem>>, vector<128x1024xbf16>
    %cst = arith.constant dense<0.000000e+00> : vector<32x1024xf32>
    %2 = tpu.matmul %0, %1, %cst {dimension_numbers = #tpu.dot_dimension_numbers<[1], [0], [0], [1], [0, 0, 1, 1], [], []>} : vector<32x128xbf16>, vector<128x1024xbf16>, vector<32x1024xf32> -> vector<32x1024xf32>
    %c0_3 = arith.constant 0 : index
    %c0_4 = arith.constant 0 : index
    %3 = vector.load %arg5[%c0_3, %c0_4] : memref<1x1024xf32, #tpu.memory_space<vmem>>, vector<1x1024xf32>
    %4 = vector.broadcast %3 : vector<1x1024xf32> to vector<32x1024xf32>
    %5 = arith.addf %2, %4 : vector<32x1024xf32>
    %6 = arith.truncf %5 : vector<32x1024xf32> to vector<32x1024xbf16>
    %c0_5 = arith.constant 0 : index
    %c0_6 = arith.constant 0 : index
    %7 = vector.load %arg2[%c0_5, %c0_6] : memref<32x128xbf16, #tpu.memory_space<vmem>>, vector<32x128xbf16>
    %c0_7 = arith.constant 0 : index
    %c0_8 = arith.constant 0 : index
    %8 = vector.load %arg6[%c0_7, %c0_8] : memref<128x1024xbf16, #tpu.memory_space<vmem>>, vector<128x1024xbf16>
    %cst_9 = arith.constant dense<0.000000e+00> : vector<32x1024xf32>
    %9 = tpu.matmul %7, %8, %cst_9 {dimension_numbers = #tpu.dot_dimension_numbers<[1], [0], [0], [1], [0, 0, 1, 1], [], []>} : vector<32x128xbf16>, vector<128x1024xbf16>, vector<32x1024xf32> -> vector<32x1024xf32>
    %c0_10 = arith.constant 0 : index
    %c0_11 = arith.constant 0 : index
    %10 = vector.load %arg7[%c0_10, %c0_11] : memref<1x1024xf32, #tpu.memory_space<vmem>>, vector<1x1024xf32>
    %11 = vector.broadcast %10 : vector<1x1024xf32> to vector<32x1024xf32>
    %12 = arith.addf %9, %11 : vector<32x1024xf32>
    %13 = arith.truncf %12 : vector<32x1024xf32> to vector<32x1024xbf16>
    %c0_12 = arith.constant 0 : index
    %c0_13 = arith.constant 0 : index
    %14 = vector.load %arg3[%c0_12, %c0_13] : memref<32x128xbf16, #tpu.memory_space<vmem>>, vector<32x128xbf16>
    %c0_14 = arith.constant 0 : index
    %c0_15 = arith.constant 0 : index
    %15 = vector.load %arg8[%c0_14, %c0_15] : memref<128x1024xbf16, #tpu.memory_space<vmem>>, vector<128x1024xbf16>
    %cst_16 = arith.constant dense<0.000000e+00> : vector<32x1024xf32>
    %16 = tpu.matmul %14, %15, %cst_16 {dimension_numbers = #tpu.dot_dimension_numbers<[1], [0], [0], [1], [0, 0, 1, 1], [], []>} : vector<32x128xbf16>, vector<128x1024xbf16>, vector<32x1024xf32> -> vector<32x1024xf32>
    %c0_17 = arith.constant 0 : index
    %c0_18 = arith.constant 0 : index
    %17 = vector.load %arg9[%c0_17, %c0_18] : memref<1x1024xf32, #tpu.memory_space<vmem>>, vector<1x1024xf32>
    %18 = vector.broadcast %17 : vector<1x1024xf32> to vector<32x1024xf32>
    %19 = arith.addf %16, %18 : vector<32x1024xf32>
    %20 = arith.truncf %19 : vector<32x1024xf32> to vector<32x1024xbf16>
    %c0_19 = arith.constant 0 : index
    %c0_20 = arith.constant 0 : index
    %21 = vector.load %arg11[%c0_19, %c0_20] : memref<1x128xf32, #tpu.memory_space<vmem>>, vector<1x128xf32>
    %cst_21 = arith.constant 0.000000e+00 : f32
    %22 = vector.broadcast %cst_21 : f32 to vector<16x128xf32>
    %23 = vector.extract_strided_slice %6 {offsets = [0, 0], sizes = [16, 128], strides = [1, 1]} : vector<32x1024xbf16> to vector<16x128xbf16>
    %24 = vector.extract_strided_slice %13 {offsets = [0, 0], sizes = [16, 128], strides = [1, 1]} : vector<32x1024xbf16> to vector<16x128xbf16>
    %25 = vector.extract_strided_slice %20 {offsets = [0, 0], sizes = [16, 128], strides = [1, 1]} : vector<32x1024xbf16> to vector<16x128xbf16>
    %cst_22 = arith.constant dense<0.000000e+00> : vector<16x16xf32>
    %26 = tpu.matmul %23, %24, %cst_22 {dimension_numbers = #tpu.dot_dimension_numbers<[1], [1], [0], [0], [0, 0, 1, 0], [], []>} : vector<16x128xbf16>, vector<16x128xbf16>, vector<16x16xf32> -> vector<16x16xf32>
    %cst_23 = arith.constant dense<0xFF800000> : vector<16xf32>
    %27 = vector.multi_reduction <maximumf>, %26, %cst_23 [1] : vector<16x16xf32> to vector<16xf32>
    %28 = vector.shape_cast %27 : vector<16xf32> to vector<16x1xf32>
    %29 = vector.broadcast %28 : vector<16x1xf32> to vector<16x16xf32>
    %30 = arith.subf %26, %29 : vector<16x16xf32>
    %31 = math.exp %30 : vector<16x16xf32>
    %cst_24 = arith.constant dense<0.000000e+00> : vector<16xf32>
    %32 = vector.multi_reduction <add>, %31, %cst_24 [1] : vector<16x16xf32> to vector<16xf32>
    %33 = vector.shape_cast %32 : vector<16xf32> to vector<16x1xf32>
    %34 = tpu.reciprocal %33 {approx = true} : vector<16x1xf32> -> vector<16x1xf32>
    %35 = vector.broadcast %34 : vector<16x1xf32> to vector<16x16xf32>
    %36 = arith.mulf %31, %35 : vector<16x16xf32>
    %37 = arith.truncf %36 : vector<16x16xf32> to vector<16x16xbf16>
    %cst_25 = arith.constant dense<0.000000e+00> : vector<16x128xf32>
    %38 = tpu.matmul %37, %25, %cst_25 {dimension_numbers = #tpu.dot_dimension_numbers<[1], [0], [0], [1], [0, 0, 1, 1], [], []>} : vector<16x16xbf16>, vector<16x128xbf16>, vector<16x128xf32> -> vector<16x128xf32>
    %39 = arith.truncf %38 : vector<16x128xf32> to vector<16x128xbf16>
    %c0_26 = arith.constant 0 : index
    %c0_27 = arith.constant 0 : index
    %40 = vector.load %arg10[%c0_26, %c0_27] : memref<1024x128xbf16, #tpu.memory_space<vmem>>, vector<128x128xbf16>
    %cst_28 = arith.constant dense<0.000000e+00> : vector<16x128xf32>
    %41 = tpu.matmul %39, %40, %cst_28 {dimension_numbers = #tpu.dot_dimension_numbers<[1], [0], [0], [1], [0, 0, 1, 1], [], []>} : vector<16x128xbf16>, vector<128x128xbf16>, vector<16x128xf32> -> vector<16x128xf32>
    %42 = arith.addf %22, %41 : vector<16x128xf32>
    %43 = vector.extract_strided_slice %6 {offsets = [0, 128], sizes = [16, 128], strides = [1, 1]} : vector<32x1024xbf16> to vector<16x128xbf16>
    %44 = vector.extract_strided_slice %13 {offsets = [0, 128], sizes = [16, 128], strides = [1, 1]} : vector<32x1024xbf16> to vector<16x128xbf16>
    %45 = vector.extract_strided_slice %20 {offsets = [0, 128], sizes = [16, 128], strides = [1, 1]} : vector<32x1024xbf16> to vector<16x128xbf16>
    %cst_29 = arith.constant dense<0.000000e+00> : vector<16x16xf32>
    %46 = tpu.matmul %43, %44, %cst_29 {dimension_numbers = #tpu.dot_dimension_numbers<[1], [1], [0], [0], [0, 0, 1, 0], [], []>} : vector<16x128xbf16>, vector<16x128xbf16>, vector<16x16xf32> -> vector<16x16xf32>
    %cst_30 = arith.constant dense<0xFF800000> : vector<16xf32>
    %47 = vector.multi_reduction <maximumf>, %46, %cst_30 [1] : vector<16x16xf32> to vector<16xf32>
    %48 = vector.shape_cast %47 : vector<16xf32> to vector<16x1xf32>
    %49 = vector.broadcast %48 : vector<16x1xf32> to vector<16x16xf32>
    %50 = arith.subf %46, %49 : vector<16x16xf32>
    %51 = math.exp %50 : vector<16x16xf32>
    %cst_31 = arith.constant dense<0.000000e+00> : vector<16xf32>
    %52 = vector.multi_reduction <add>, %51, %cst_31 [1] : vector<16x16xf32> to vector<16xf32>
    %53 = vector.shape_cast %52 : vector<16xf32> to vector<16x1xf32>
    %54 = tpu.reciprocal %53 {approx = true} : vector<16x1xf32> -> vector<16x1xf32>
    %55 = vector.broadcast %54 : vector<16x1xf32> to vector<16x16xf32>
    %56 = arith.mulf %51, %55 : vector<16x16xf32>
    %57 = arith.truncf %56 : vector<16x16xf32> to vector<16x16xbf16>
    %cst_32 = arith.constant dense<0.000000e+00> : vector<16x128xf32>
    %58 = tpu.matmul %57, %45, %cst_32 {dimension_numbers = #tpu.dot_dimension_numbers<[1], [0], [0], [1], [0, 0, 1, 1], [], []>} : vector<16x16xbf16>, vector<16x128xbf16>, vector<16x128xf32> -> vector<16x128xf32>
    %59 = arith.truncf %58 : vector<16x128xf32> to vector<16x128xbf16>
    %c128 = arith.constant 128 : index
    %c0_33 = arith.constant 0 : index
    %60 = vector.load %arg10[%c128, %c0_33] : memref<1024x128xbf16, #tpu.memory_space<vmem>>, vector<128x128xbf16>
    %cst_34 = arith.constant dense<0.000000e+00> : vector<16x128xf32>
    %61 = tpu.matmul %59, %60, %cst_34 {dimension_numbers = #tpu.dot_dimension_numbers<[1], [0], [0], [1], [0, 0, 1, 1], [], []>} : vector<16x128xbf16>, vector<128x128xbf16>, vector<16x128xf32> -> vector<16x128xf32>
    %62 = arith.addf %42, %61 : vector<16x128xf32>
    %63 = vector.extract_strided_slice %6 {offsets = [0, 256], sizes = [16, 128], strides = [1, 1]} : vector<32x1024xbf16> to vector<16x128xbf16>
    %64 = vector.extract_strided_slice %13 {offsets = [0, 256], sizes = [16, 128], strides = [1, 1]} : vector<32x1024xbf16> to vector<16x128xbf16>
    %65 = vector.extract_strided_slice %20 {offsets = [0, 256], sizes = [16, 128], strides = [1, 1]} : vector<32x1024xbf16> to vector<16x128xbf16>
    %cst_35 = arith.constant dense<0.000000e+00> : vector<16x16xf32>
    %66 = tpu.matmul %63, %64, %cst_35 {dimension_numbers = #tpu.dot_dimension_numbers<[1], [1], [0], [0], [0, 0, 1, 0], [], []>} : vector<16x128xbf16>, vector<16x128xbf16>, vector<16x16xf32> -> vector<16x16xf32>
    %cst_36 = arith.constant dense<0xFF800000> : vector<16xf32>
    %67 = vector.multi_reduction <maximumf>, %66, %cst_36 [1] : vector<16x16xf32> to vector<16xf32>
    %68 = vector.shape_cast %67 : vector<16xf32> to vector<16x1xf32>
    %69 = vector.broadcast %68 : vector<16x1xf32> to vector<16x16xf32>
    %70 = arith.subf %66, %69 : vector<16x16xf32>
    %71 = math.exp %70 : vector<16x16xf32>
    %cst_37 = arith.constant dense<0.000000e+00> : vector<16xf32>
    %72 = vector.multi_reduction <add>, %71, %cst_37 [1] : vector<16x16xf32> to vector<16xf32>
    %73 = vector.shape_cast %72 : vector<16xf32> to vector<16x1xf32>
    %74 = tpu.reciprocal %73 {approx = true} : vector<16x1xf32> -> vector<16x1xf32>
    %75 = vector.broadcast %74 : vector<16x1xf32> to vector<16x16xf32>
    %76 = arith.mulf %71, %75 : vector<16x16xf32>
    %77 = arith.truncf %76 : vector<16x16xf32> to vector<16x16xbf16>
    %cst_38 = arith.constant dense<0.000000e+00> : vector<16x128xf32>
    %78 = tpu.matmul %77, %65, %cst_38 {dimension_numbers = #tpu.dot_dimension_numbers<[1], [0], [0], [1], [0, 0, 1, 1], [], []>} : vector<16x16xbf16>, vector<16x128xbf16>, vector<16x128xf32> -> vector<16x128xf32>
    %79 = arith.truncf %78 : vector<16x128xf32> to vector<16x128xbf16>
    %c256 = arith.constant 256 : index
    %c0_39 = arith.constant 0 : index
    %80 = vector.load %arg10[%c256, %c0_39] : memref<1024x128xbf16, #tpu.memory_space<vmem>>, vector<128x128xbf16>
    %cst_40 = arith.constant dense<0.000000e+00> : vector<16x128xf32>
    %81 = tpu.matmul %79, %80, %cst_40 {dimension_numbers = #tpu.dot_dimension_numbers<[1], [0], [0], [1], [0, 0, 1, 1], [], []>} : vector<16x128xbf16>, vector<128x128xbf16>, vector<16x128xf32> -> vector<16x128xf32>
    %82 = arith.addf %62, %81 : vector<16x128xf32>
    %83 = vector.extract_strided_slice %6 {offsets = [0, 384], sizes = [16, 128], strides = [1, 1]} : vector<32x1024xbf16> to vector<16x128xbf16>
    %84 = vector.extract_strided_slice %13 {offsets = [0, 384], sizes = [16, 128], strides = [1, 1]} : vector<32x1024xbf16> to vector<16x128xbf16>
    %85 = vector.extract_strided_slice %20 {offsets = [0, 384], sizes = [16, 128], strides = [1, 1]} : vector<32x1024xbf16> to vector<16x128xbf16>
    %cst_41 = arith.constant dense<0.000000e+00> : vector<16x16xf32>
    %86 = tpu.matmul %83, %84, %cst_41 {dimension_numbers = #tpu.dot_dimension_numbers<[1], [1], [0], [0], [0, 0, 1, 0], [], []>} : vector<16x128xbf16>, vector<16x128xbf16>, vector<16x16xf32> -> vector<16x16xf32>
    %cst_42 = arith.constant dense<0xFF800000> : vector<16xf32>
    %87 = vector.multi_reduction <maximumf>, %86, %cst_42 [1] : vector<16x16xf32> to vector<16xf32>
    %88 = vector.shape_cast %87 : vector<16xf32> to vector<16x1xf32>
    %89 = vector.broadcast %88 : vector<16x1xf32> to vector<16x16xf32>
    %90 = arith.subf %86, %89 : vector<16x16xf32>
    %91 = math.exp %90 : vector<16x16xf32>
    %cst_43 = arith.constant dense<0.000000e+00> : vector<16xf32>
    %92 = vector.multi_reduction <add>, %91, %cst_43 [1] : vector<16x16xf32> to vector<16xf32>
    %93 = vector.shape_cast %92 : vector<16xf32> to vector<16x1xf32>
    %94 = tpu.reciprocal %93 {approx = true} : vector<16x1xf32> -> vector<16x1xf32>
    %95 = vector.broadcast %94 : vector<16x1xf32> to vector<16x16xf32>
    %96 = arith.mulf %91, %95 : vector<16x16xf32>
    %97 = arith.truncf %96 : vector<16x16xf32> to vector<16x16xbf16>
    %cst_44 = arith.constant dense<0.000000e+00> : vector<16x128xf32>
    %98 = tpu.matmul %97, %85, %cst_44 {dimension_numbers = #tpu.dot_dimension_numbers<[1], [0], [0], [1], [0, 0, 1, 1], [], []>} : vector<16x16xbf16>, vector<16x128xbf16>, vector<16x128xf32> -> vector<16x128xf32>
    %99 = arith.truncf %98 : vector<16x128xf32> to vector<16x128xbf16>
    %c384 = arith.constant 384 : index
    %c0_45 = arith.constant 0 : index
    %100 = vector.load %arg10[%c384, %c0_45] : memref<1024x128xbf16, #tpu.memory_space<vmem>>, vector<128x128xbf16>
    %cst_46 = arith.constant dense<0.000000e+00> : vector<16x128xf32>
    %101 = tpu.matmul %99, %100, %cst_46 {dimension_numbers = #tpu.dot_dimension_numbers<[1], [0], [0], [1], [0, 0, 1, 1], [], []>} : vector<16x128xbf16>, vector<128x128xbf16>, vector<16x128xf32> -> vector<16x128xf32>
    %102 = arith.addf %82, %101 : vector<16x128xf32>
    %103 = vector.extract_strided_slice %6 {offsets = [0, 512], sizes = [16, 128], strides = [1, 1]} : vector<32x1024xbf16> to vector<16x128xbf16>
    %104 = vector.extract_strided_slice %13 {offsets = [0, 512], sizes = [16, 128], strides = [1, 1]} : vector<32x1024xbf16> to vector<16x128xbf16>
    %105 = vector.extract_strided_slice %20 {offsets = [0, 512], sizes = [16, 128], strides = [1, 1]} : vector<32x1024xbf16> to vector<16x128xbf16>
    %cst_47 = arith.constant dense<0.000000e+00> : vector<16x16xf32>
    %106 = tpu.matmul %103, %104, %cst_47 {dimension_numbers = #tpu.dot_dimension_numbers<[1], [1], [0], [0], [0, 0, 1, 0], [], []>} : vector<16x128xbf16>, vector<16x128xbf16>, vector<16x16xf32> -> vector<16x16xf32>
    %cst_48 = arith.constant dense<0xFF800000> : vector<16xf32>
    %107 = vector.multi_reduction <maximumf>, %106, %cst_48 [1] : vector<16x16xf32> to vector<16xf32>
    %108 = vector.shape_cast %107 : vector<16xf32> to vector<16x1xf32>
    %109 = vector.broadcast %108 : vector<16x1xf32> to vector<16x16xf32>
    %110 = arith.subf %106, %109 : vector<16x16xf32>
    %111 = math.exp %110 : vector<16x16xf32>
    %cst_49 = arith.constant dense<0.000000e+00> : vector<16xf32>
    %112 = vector.multi_reduction <add>, %111, %cst_49 [1] : vector<16x16xf32> to vector<16xf32>
    %113 = vector.shape_cast %112 : vector<16xf32> to vector<16x1xf32>
    %114 = tpu.reciprocal %113 {approx = true} : vector<16x1xf32> -> vector<16x1xf32>
    %115 = vector.broadcast %114 : vector<16x1xf32> to vector<16x16xf32>
    %116 = arith.mulf %111, %115 : vector<16x16xf32>
    %117 = arith.truncf %116 : vector<16x16xf32> to vector<16x16xbf16>
    %cst_50 = arith.constant dense<0.000000e+00> : vector<16x128xf32>
    %118 = tpu.matmul %117, %105, %cst_50 {dimension_numbers = #tpu.dot_dimension_numbers<[1], [0], [0], [1], [0, 0, 1, 1], [], []>} : vector<16x16xbf16>, vector<16x128xbf16>, vector<16x128xf32> -> vector<16x128xf32>
    %119 = arith.truncf %118 : vector<16x128xf32> to vector<16x128xbf16>
    %c512 = arith.constant 512 : index
    %c0_51 = arith.constant 0 : index
    %120 = vector.load %arg10[%c512, %c0_51] : memref<1024x128xbf16, #tpu.memory_space<vmem>>, vector<128x128xbf16>
    %cst_52 = arith.constant dense<0.000000e+00> : vector<16x128xf32>
    %121 = tpu.matmul %119, %120, %cst_52 {dimension_numbers = #tpu.dot_dimension_numbers<[1], [0], [0], [1], [0, 0, 1, 1], [], []>} : vector<16x128xbf16>, vector<128x128xbf16>, vector<16x128xf32> -> vector<16x128xf32>
    %122 = arith.addf %102, %121 : vector<16x128xf32>
    %123 = vector.extract_strided_slice %6 {offsets = [0, 640], sizes = [16, 128], strides = [1, 1]} : vector<32x1024xbf16> to vector<16x128xbf16>
    %124 = vector.extract_strided_slice %13 {offsets = [0, 640], sizes = [16, 128], strides = [1, 1]} : vector<32x1024xbf16> to vector<16x128xbf16>
    %125 = vector.extract_strided_slice %20 {offsets = [0, 640], sizes = [16, 128], strides = [1, 1]} : vector<32x1024xbf16> to vector<16x128xbf16>
    %cst_53 = arith.constant dense<0.000000e+00> : vector<16x16xf32>
    %126 = tpu.matmul %123, %124, %cst_53 {dimension_numbers = #tpu.dot_dimension_numbers<[1], [1], [0], [0], [0, 0, 1, 0], [], []>} : vector<16x128xbf16>, vector<16x128xbf16>, vector<16x16xf32> -> vector<16x16xf32>
    %cst_54 = arith.constant dense<0xFF800000> : vector<16xf32>
    %127 = vector.multi_reduction <maximumf>, %126, %cst_54 [1] : vector<16x16xf32> to vector<16xf32>
    %128 = vector.shape_cast %127 : vector<16xf32> to vector<16x1xf32>
    %129 = vector.broadcast %128 : vector<16x1xf32> to vector<16x16xf32>
    %130 = arith.subf %126, %129 : vector<16x16xf32>
    %131 = math.exp %130 : vector<16x16xf32>
    %cst_55 = arith.constant dense<0.000000e+00> : vector<16xf32>
    %132 = vector.multi_reduction <add>, %131, %cst_55 [1] : vector<16x16xf32> to vector<16xf32>
    %133 = vector.shape_cast %132 : vector<16xf32> to vector<16x1xf32>
    %134 = tpu.reciprocal %133 {approx = true} : vector<16x1xf32> -> vector<16x1xf32>
    %135 = vector.broadcast %134 : vector<16x1xf32> to vector<16x16xf32>
    %136 = arith.mulf %131, %135 : vector<16x16xf32>
    %137 = arith.truncf %136 : vector<16x16xf32> to vector<16x16xbf16>
    %cst_56 = arith.constant dense<0.000000e+00> : vector<16x128xf32>
    %138 = tpu.matmul %137, %125, %cst_56 {dimension_numbers = #tpu.dot_dimension_numbers<[1], [0], [0], [1], [0, 0, 1, 1], [], []>} : vector<16x16xbf16>, vector<16x128xbf16>, vector<16x128xf32> -> vector<16x128xf32>
    %139 = arith.truncf %138 : vector<16x128xf32> to vector<16x128xbf16>
    %c640 = arith.constant 640 : index
    %c0_57 = arith.constant 0 : index
    %140 = vector.load %arg10[%c640, %c0_57] : memref<1024x128xbf16, #tpu.memory_space<vmem>>, vector<128x128xbf16>
    %cst_58 = arith.constant dense<0.000000e+00> : vector<16x128xf32>
    %141 = tpu.matmul %139, %140, %cst_58 {dimension_numbers = #tpu.dot_dimension_numbers<[1], [0], [0], [1], [0, 0, 1, 1], [], []>} : vector<16x128xbf16>, vector<128x128xbf16>, vector<16x128xf32> -> vector<16x128xf32>
    %142 = arith.addf %122, %141 : vector<16x128xf32>
    %143 = vector.extract_strided_slice %6 {offsets = [0, 768], sizes = [16, 128], strides = [1, 1]} : vector<32x1024xbf16> to vector<16x128xbf16>
    %144 = vector.extract_strided_slice %13 {offsets = [0, 768], sizes = [16, 128], strides = [1, 1]} : vector<32x1024xbf16> to vector<16x128xbf16>
    %145 = vector.extract_strided_slice %20 {offsets = [0, 768], sizes = [16, 128], strides = [1, 1]} : vector<32x1024xbf16> to vector<16x128xbf16>
    %cst_59 = arith.constant dense<0.000000e+00> : vector<16x16xf32>
    %146 = tpu.matmul %143, %144, %cst_59 {dimension_numbers = #tpu.dot_dimension_numbers<[1], [1], [0], [0], [0, 0, 1, 0], [], []>} : vector<16x128xbf16>, vector<16x128xbf16>, vector<16x16xf32> -> vector<16x16xf32>
    %cst_60 = arith.constant dense<0xFF800000> : vector<16xf32>
    %147 = vector.multi_reduction <maximumf>, %146, %cst_60 [1] : vector<16x16xf32> to vector<16xf32>
    %148 = vector.shape_cast %147 : vector<16xf32> to vector<16x1xf32>
    %149 = vector.broadcast %148 : vector<16x1xf32> to vector<16x16xf32>
    %150 = arith.subf %146, %149 : vector<16x16xf32>
    %151 = math.exp %150 : vector<16x16xf32>
    %cst_61 = arith.constant dense<0.000000e+00> : vector<16xf32>
    %152 = vector.multi_reduction <add>, %151, %cst_61 [1] : vector<16x16xf32> to vector<16xf32>
    %153 = vector.shape_cast %152 : vector<16xf32> to vector<16x1xf32>
    %154 = tpu.reciprocal %153 {approx = true} : vector<16x1xf32> -> vector<16x1xf32>
    %155 = vector.broadcast %154 : vector<16x1xf32> to vector<16x16xf32>
    %156 = arith.mulf %151, %155 : vector<16x16xf32>
    %157 = arith.truncf %156 : vector<16x16xf32> to vector<16x16xbf16>
    %cst_62 = arith.constant dense<0.000000e+00> : vector<16x128xf32>
    %158 = tpu.matmul %157, %145, %cst_62 {dimension_numbers = #tpu.dot_dimension_numbers<[1], [0], [0], [1], [0, 0, 1, 1], [], []>} : vector<16x16xbf16>, vector<16x128xbf16>, vector<16x128xf32> -> vector<16x128xf32>
    %159 = arith.truncf %158 : vector<16x128xf32> to vector<16x128xbf16>
    %c768 = arith.constant 768 : index
    %c0_63 = arith.constant 0 : index
    %160 = vector.load %arg10[%c768, %c0_63] : memref<1024x128xbf16, #tpu.memory_space<vmem>>, vector<128x128xbf16>
    %cst_64 = arith.constant dense<0.000000e+00> : vector<16x128xf32>
    %161 = tpu.matmul %159, %160, %cst_64 {dimension_numbers = #tpu.dot_dimension_numbers<[1], [0], [0], [1], [0, 0, 1, 1], [], []>} : vector<16x128xbf16>, vector<128x128xbf16>, vector<16x128xf32> -> vector<16x128xf32>
    %162 = arith.addf %142, %161 : vector<16x128xf32>
    %163 = vector.extract_strided_slice %6 {offsets = [0, 896], sizes = [16, 128], strides = [1, 1]} : vector<32x1024xbf16> to vector<16x128xbf16>
    %164 = vector.extract_strided_slice %13 {offsets = [0, 896], sizes = [16, 128], strides = [1, 1]} : vector<32x1024xbf16> to vector<16x128xbf16>
    %165 = vector.extract_strided_slice %20 {offsets = [0, 896], sizes = [16, 128], strides = [1, 1]} : vector<32x1024xbf16> to vector<16x128xbf16>
    %cst_65 = arith.constant dense<0.000000e+00> : vector<16x16xf32>
    %166 = tpu.matmul %163, %164, %cst_65 {dimension_numbers = #tpu.dot_dimension_numbers<[1], [1], [0], [0], [0, 0, 1, 0], [], []>} : vector<16x128xbf16>, vector<16x128xbf16>, vector<16x16xf32> -> vector<16x16xf32>
    %cst_66 = arith.constant dense<0xFF800000> : vector<16xf32>
    %167 = vector.multi_reduction <maximumf>, %166, %cst_66 [1] : vector<16x16xf32> to vector<16xf32>
    %168 = vector.shape_cast %167 : vector<16xf32> to vector<16x1xf32>
    %169 = vector.broadcast %168 : vector<16x1xf32> to vector<16x16xf32>
    %170 = arith.subf %166, %169 : vector<16x16xf32>
    %171 = math.exp %170 : vector<16x16xf32>
    %cst_67 = arith.constant dense<0.000000e+00> : vector<16xf32>
    %172 = vector.multi_reduction <add>, %171, %cst_67 [1] : vector<16x16xf32> to vector<16xf32>
    %173 = vector.shape_cast %172 : vector<16xf32> to vector<16x1xf32>
    %174 = tpu.reciprocal %173 {approx = true} : vector<16x1xf32> -> vector<16x1xf32>
    %175 = vector.broadcast %174 : vector<16x1xf32> to vector<16x16xf32>
    %176 = arith.mulf %171, %175 : vector<16x16xf32>
    %177 = arith.truncf %176 : vector<16x16xf32> to vector<16x16xbf16>
    %cst_68 = arith.constant dense<0.000000e+00> : vector<16x128xf32>
    %178 = tpu.matmul %177, %165, %cst_68 {dimension_numbers = #tpu.dot_dimension_numbers<[1], [0], [0], [1], [0, 0, 1, 1], [], []>} : vector<16x16xbf16>, vector<16x128xbf16>, vector<16x128xf32> -> vector<16x128xf32>
    %179 = arith.truncf %178 : vector<16x128xf32> to vector<16x128xbf16>
    %c896 = arith.constant 896 : index
    %c0_69 = arith.constant 0 : index
    %180 = vector.load %arg10[%c896, %c0_69] : memref<1024x128xbf16, #tpu.memory_space<vmem>>, vector<128x128xbf16>
    %cst_70 = arith.constant dense<0.000000e+00> : vector<16x128xf32>
    %181 = tpu.matmul %179, %180, %cst_70 {dimension_numbers = #tpu.dot_dimension_numbers<[1], [0], [0], [1], [0, 0, 1, 1], [], []>} : vector<16x128xbf16>, vector<128x128xbf16>, vector<16x128xf32> -> vector<16x128xf32>
    %182 = arith.addf %162, %181 : vector<16x128xf32>
    %183 = vector.broadcast %21 : vector<1x128xf32> to vector<16x128xf32>
    %184 = arith.addf %182, %183 : vector<16x128xf32>
    %c0_71 = arith.constant 0 : index
    %c0_72 = arith.constant 0 : index
    %185 = vector.load %arg12[%c0_71, %c0_72] : memref<32x128xf32, #tpu.memory_space<vmem>>, vector<16x128xf32>
    tpu.vector_store %arg12[%c0_71, %c0_72], %184 {strides = array<i32>} : memref<32x128xf32, #tpu.memory_space<vmem>>, vector<16x128xf32>,
    %cst_73 = arith.constant 0.000000e+00 : f32
    %186 = vector.broadcast %cst_73 : f32 to vector<16x128xf32>
    %187 = vector.extract_strided_slice %6 {offsets = [16, 0], sizes = [16, 128], strides = [1, 1]} : vector<32x1024xbf16> to vector<16x128xbf16>
    %188 = vector.extract_strided_slice %13 {offsets = [16, 0], sizes = [16, 128], strides = [1, 1]} : vector<32x1024xbf16> to vector<16x128xbf16>
    %189 = vector.extract_strided_slice %20 {offsets = [16, 0], sizes = [16, 128], strides = [1, 1]} : vector<32x1024xbf16> to vector<16x128xbf16>
    %cst_74 = arith.constant dense<0.000000e+00> : vector<16x16xf32>
    %190 = tpu.matmul %187, %188, %cst_74 {dimension_numbers = #tpu.dot_dimension_numbers<[1], [1], [0], [0], [0, 0, 1, 0], [], []>} : vector<16x128xbf16>, vector<16x128xbf16>, vector<16x16xf32> -> vector<16x16xf32>
    %cst_75 = arith.constant dense<0xFF800000> : vector<16xf32>
    %191 = vector.multi_reduction <maximumf>, %190, %cst_75 [1] : vector<16x16xf32> to vector<16xf32>
    %192 = vector.shape_cast %191 : vector<16xf32> to vector<16x1xf32>
    %193 = vector.broadcast %192 : vector<16x1xf32> to vector<16x16xf32>
    %194 = arith.subf %190, %193 : vector<16x16xf32>
    %195 = math.exp %194 : vector<16x16xf32>
    %cst_76 = arith.constant dense<0.000000e+00> : vector<16xf32>
    %196 = vector.multi_reduction <add>, %195, %cst_76 [1] : vector<16x16xf32> to vector<16xf32>
    %197 = vector.shape_cast %196 : vector<16xf32> to vector<16x1xf32>
    %198 = tpu.reciprocal %197 {approx = true} : vector<16x1xf32> -> vector<16x1xf32>
    %199 = vector.broadcast %198 : vector<16x1xf32> to vector<16x16xf32>
    %200 = arith.mulf %195, %199 : vector<16x16xf32>
    %201 = arith.truncf %200 : vector<16x16xf32> to vector<16x16xbf16>
    %cst_77 = arith.constant dense<0.000000e+00> : vector<16x128xf32>
    %202 = tpu.matmul %201, %189, %cst_77 {dimension_numbers = #tpu.dot_dimension_numbers<[1], [0], [0], [1], [0, 0, 1, 1], [], []>} : vector<16x16xbf16>, vector<16x128xbf16>, vector<16x128xf32> -> vector<16x128xf32>
    %203 = arith.truncf %202 : vector<16x128xf32> to vector<16x128xbf16>
    %c0_78 = arith.constant 0 : index
    %c0_79 = arith.constant 0 : index
    %204 = vector.load %arg10[%c0_78, %c0_79] : memref<1024x128xbf16, #tpu.memory_space<vmem>>, vector<128x128xbf16>
    %cst_80 = arith.constant dense<0.000000e+00> : vector<16x128xf32>
    %205 = tpu.matmul %203, %204, %cst_80 {dimension_numbers = #tpu.dot_dimension_numbers<[1], [0], [0], [1], [0, 0, 1, 1], [], []>} : vector<16x128xbf16>, vector<128x128xbf16>, vector<16x128xf32> -> vector<16x128xf32>
    %206 = arith.addf %186, %205 : vector<16x128xf32>
    %207 = vector.extract_strided_slice %6 {offsets = [16, 128], sizes = [16, 128], strides = [1, 1]} : vector<32x1024xbf16> to vector<16x128xbf16>
    %208 = vector.extract_strided_slice %13 {offsets = [16, 128], sizes = [16, 128], strides = [1, 1]} : vector<32x1024xbf16> to vector<16x128xbf16>
    %209 = vector.extract_strided_slice %20 {offsets = [16, 128], sizes = [16, 128], strides = [1, 1]} : vector<32x1024xbf16> to vector<16x128xbf16>
    %cst_81 = arith.constant dense<0.000000e+00> : vector<16x16xf32>
    %210 = tpu.matmul %207, %208, %cst_81 {dimension_numbers = #tpu.dot_dimension_numbers<[1], [1], [0], [0], [0, 0, 1, 0], [], []>} : vector<16x128xbf16>, vector<16x128xbf16>, vector<16x16xf32> -> vector<16x16xf32>
    %cst_82 = arith.constant dense<0xFF800000> : vector<16xf32>
    %211 = vector.multi_reduction <maximumf>, %210, %cst_82 [1] : vector<16x16xf32> to vector<16xf32>
    %212 = vector.shape_cast %211 : vector<16xf32> to vector<16x1xf32>
    %213 = vector.broadcast %212 : vector<16x1xf32> to vector<16x16xf32>
    %214 = arith.subf %210, %213 : vector<16x16xf32>
    %215 = math.exp %214 : vector<16x16xf32>
    %cst_83 = arith.constant dense<0.000000e+00> : vector<16xf32>
    %216 = vector.multi_reduction <add>, %215, %cst_83 [1] : vector<16x16xf32> to vector<16xf32>
    %217 = vector.shape_cast %216 : vector<16xf32> to vector<16x1xf32>
    %218 = tpu.reciprocal %217 {approx = true} : vector<16x1xf32> -> vector<16x1xf32>
    %219 = vector.broadcast %218 : vector<16x1xf32> to vector<16x16xf32>
    %220 = arith.mulf %215, %219 : vector<16x16xf32>
    %221 = arith.truncf %220 : vector<16x16xf32> to vector<16x16xbf16>
    %cst_84 = arith.constant dense<0.000000e+00> : vector<16x128xf32>
    %222 = tpu.matmul %221, %209, %cst_84 {dimension_numbers = #tpu.dot_dimension_numbers<[1], [0], [0], [1], [0, 0, 1, 1], [], []>} : vector<16x16xbf16>, vector<16x128xbf16>, vector<16x128xf32> -> vector<16x128xf32>
    %223 = arith.truncf %222 : vector<16x128xf32> to vector<16x128xbf16>
    %c128_85 = arith.constant 128 : index
    %c0_86 = arith.constant 0 : index
    %224 = vector.load %arg10[%c128_85, %c0_86] : memref<1024x128xbf16, #tpu.memory_space<vmem>>, vector<128x128xbf16>
    %cst_87 = arith.constant dense<0.000000e+00> : vector<16x128xf32>
    %225 = tpu.matmul %223, %224, %cst_87 {dimension_numbers = #tpu.dot_dimension_numbers<[1], [0], [0], [1], [0, 0, 1, 1], [], []>} : vector<16x128xbf16>, vector<128x128xbf16>, vector<16x128xf32> -> vector<16x128xf32>
    %226 = arith.addf %206, %225 : vector<16x128xf32>
    %227 = vector.extract_strided_slice %6 {offsets = [16, 256], sizes = [16, 128], strides = [1, 1]} : vector<32x1024xbf16> to vector<16x128xbf16>
    %228 = vector.extract_strided_slice %13 {offsets = [16, 256], sizes = [16, 128], strides = [1, 1]} : vector<32x1024xbf16> to vector<16x128xbf16>
    %229 = vector.extract_strided_slice %20 {offsets = [16, 256], sizes = [16, 128], strides = [1, 1]} : vector<32x1024xbf16> to vector<16x128xbf16>
    %cst_88 = arith.constant dense<0.000000e+00> : vector<16x16xf32>
    %230 = tpu.matmul %227, %228, %cst_88 {dimension_numbers = #tpu.dot_dimension_numbers<[1], [1], [0], [0], [0, 0, 1, 0], [], []>} : vector<16x128xbf16>, vector<16x128xbf16>, vector<16x16xf32> -> vector<16x16xf32>
    %cst_89 = arith.constant dense<0xFF800000> : vector<16xf32>
    %231 = vector.multi_reduction <maximumf>, %230, %cst_89 [1] : vector<16x16xf32> to vector<16xf32>
    %232 = vector.shape_cast %231 : vector<16xf32> to vector<16x1xf32>
    %233 = vector.broadcast %232 : vector<16x1xf32> to vector<16x16xf32>
    %234 = arith.subf %230, %233 : vector<16x16xf32>
    %235 = math.exp %234 : vector<16x16xf32>
    %cst_90 = arith.constant dense<0.000000e+00> : vector<16xf32>
    %236 = vector.multi_reduction <add>, %235, %cst_90 [1] : vector<16x16xf32> to vector<16xf32>
    %237 = vector.shape_cast %236 : vector<16xf32> to vector<16x1xf32>
    %238 = tpu.reciprocal %237 {approx = true} : vector<16x1xf32> -> vector<16x1xf32>
    %239 = vector.broadcast %238 : vector<16x1xf32> to vector<16x16xf32>
    %240 = arith.mulf %235, %239 : vector<16x16xf32>
    %241 = arith.truncf %240 : vector<16x16xf32> to vector<16x16xbf16>
    %cst_91 = arith.constant dense<0.000000e+00> : vector<16x128xf32>
    %242 = tpu.matmul %241, %229, %cst_91 {dimension_numbers = #tpu.dot_dimension_numbers<[1], [0], [0], [1], [0, 0, 1, 1], [], []>} : vector<16x16xbf16>, vector<16x128xbf16>, vector<16x128xf32> -> vector<16x128xf32>
    %243 = arith.truncf %242 : vector<16x128xf32> to vector<16x128xbf16>
    %c256_92 = arith.constant 256 : index
    %c0_93 = arith.constant 0 : index
    %244 = vector.load %arg10[%c256_92, %c0_93] : memref<1024x128xbf16, #tpu.memory_space<vmem>>, vector<128x128xbf16>
    %cst_94 = arith.constant dense<0.000000e+00> : vector<16x128xf32>
    %245 = tpu.matmul %243, %244, %cst_94 {dimension_numbers = #tpu.dot_dimension_numbers<[1], [0], [0], [1], [0, 0, 1, 1], [], []>} : vector<16x128xbf16>, vector<128x128xbf16>, vector<16x128xf32> -> vector<16x128xf32>
    %246 = arith.addf %226, %245 : vector<16x128xf32>
    %247 = vector.extract_strided_slice %6 {offsets = [16, 384], sizes = [16, 128], strides = [1, 1]} : vector<32x1024xbf16> to vector<16x128xbf16>
    %248 = vector.extract_strided_slice %13 {offsets = [16, 384], sizes = [16, 128], strides = [1, 1]} : vector<32x1024xbf16> to vector<16x128xbf16>
    %249 = vector.extract_strided_slice %20 {offsets = [16, 384], sizes = [16, 128], strides = [1, 1]} : vector<32x1024xbf16> to vector<16x128xbf16>
    %cst_95 = arith.constant dense<0.000000e+00> : vector<16x16xf32>
    %250 = tpu.matmul %247, %248, %cst_95 {dimension_numbers = #tpu.dot_dimension_numbers<[1], [1], [0], [0], [0, 0, 1, 0], [], []>} : vector<16x128xbf16>, vector<16x128xbf16>, vector<16x16xf32> -> vector<16x16xf32>
    %cst_96 = arith.constant dense<0xFF800000> : vector<16xf32>
    %251 = vector.multi_reduction <maximumf>, %250, %cst_96 [1] : vector<16x16xf32> to vector<16xf32>
    %252 = vector.shape_cast %251 : vector<16xf32> to vector<16x1xf32>
    %253 = vector.broadcast %252 : vector<16x1xf32> to vector<16x16xf32>
    %254 = arith.subf %250, %253 : vector<16x16xf32>
    %255 = math.exp %254 : vector<16x16xf32>
    %cst_97 = arith.constant dense<0.000000e+00> : vector<16xf32>
    %256 = vector.multi_reduction <add>, %255, %cst_97 [1] : vector<16x16xf32> to vector<16xf32>
    %257 = vector.shape_cast %256 : vector<16xf32> to vector<16x1xf32>
    %258 = tpu.reciprocal %257 {approx = true} : vector<16x1xf32> -> vector<16x1xf32>
    %259 = vector.broadcast %258 : vector<16x1xf32> to vector<16x16xf32>
    %260 = arith.mulf %255, %259 : vector<16x16xf32>
    %261 = arith.truncf %260 : vector<16x16xf32> to vector<16x16xbf16>
    %cst_98 = arith.constant dense<0.000000e+00> : vector<16x128xf32>
    %262 = tpu.matmul %261, %249, %cst_98 {dimension_numbers = #tpu.dot_dimension_numbers<[1], [0], [0], [1], [0, 0, 1, 1], [], []>} : vector<16x16xbf16>, vector<16x128xbf16>, vector<16x128xf32> -> vector<16x128xf32>
    %263 = arith.truncf %262 : vector<16x128xf32> to vector<16x128xbf16>
    %c384_99 = arith.constant 384 : index
    %c0_100 = arith.constant 0 : index
    %264 = vector.load %arg10[%c384_99, %c0_100] : memref<1024x128xbf16, #tpu.memory_space<vmem>>, vector<128x128xbf16>
    %cst_101 = arith.constant dense<0.000000e+00> : vector<16x128xf32>
    %265 = tpu.matmul %263, %264, %cst_101 {dimension_numbers = #tpu.dot_dimension_numbers<[1], [0], [0], [1], [0, 0, 1, 1], [], []>} : vector<16x128xbf16>, vector<128x128xbf16>, vector<16x128xf32> -> vector<16x128xf32>
    %266 = arith.addf %246, %265 : vector<16x128xf32>
    %267 = vector.extract_strided_slice %6 {offsets = [16, 512], sizes = [16, 128], strides = [1, 1]} : vector<32x1024xbf16> to vector<16x128xbf16>
    %268 = vector.extract_strided_slice %13 {offsets = [16, 512], sizes = [16, 128], strides = [1, 1]} : vector<32x1024xbf16> to vector<16x128xbf16>
    %269 = vector.extract_strided_slice %20 {offsets = [16, 512], sizes = [16, 128], strides = [1, 1]} : vector<32x1024xbf16> to vector<16x128xbf16>
    %cst_102 = arith.constant dense<0.000000e+00> : vector<16x16xf32>
    %270 = tpu.matmul %267, %268, %cst_102 {dimension_numbers = #tpu.dot_dimension_numbers<[1], [1], [0], [0], [0, 0, 1, 0], [], []>} : vector<16x128xbf16>, vector<16x128xbf16>, vector<16x16xf32> -> vector<16x16xf32>
    %cst_103 = arith.constant dense<0xFF800000> : vector<16xf32>
    %271 = vector.multi_reduction <maximumf>, %270, %cst_103 [1] : vector<16x16xf32> to vector<16xf32>
    %272 = vector.shape_cast %271 : vector<16xf32> to vector<16x1xf32>
    %273 = vector.broadcast %272 : vector<16x1xf32> to vector<16x16xf32>
    %274 = arith.subf %270, %273 : vector<16x16xf32>
    %275 = math.exp %274 : vector<16x16xf32>
    %cst_104 = arith.constant dense<0.000000e+00> : vector<16xf32>
    %276 = vector.multi_reduction <add>, %275, %cst_104 [1] : vector<16x16xf32> to vector<16xf32>
    %277 = vector.shape_cast %276 : vector<16xf32> to vector<16x1xf32>
    %278 = tpu.reciprocal %277 {approx = true} : vector<16x1xf32> -> vector<16x1xf32>
    %279 = vector.broadcast %278 : vector<16x1xf32> to vector<16x16xf32>
    %280 = arith.mulf %275, %279 : vector<16x16xf32>
    %281 = arith.truncf %280 : vector<16x16xf32> to vector<16x16xbf16>
    %cst_105 = arith.constant dense<0.000000e+00> : vector<16x128xf32>
    %282 = tpu.matmul %281, %269, %cst_105 {dimension_numbers = #tpu.dot_dimension_numbers<[1], [0], [0], [1], [0, 0, 1, 1], [], []>} : vector<16x16xbf16>, vector<16x128xbf16>, vector<16x128xf32> -> vector<16x128xf32>
    %283 = arith.truncf %282 : vector<16x128xf32> to vector<16x128xbf16>
    %c512_106 = arith.constant 512 : index
    %c0_107 = arith.constant 0 : index
    %284 = vector.load %arg10[%c512_106, %c0_107] : memref<1024x128xbf16, #tpu.memory_space<vmem>>, vector<128x128xbf16>
    %cst_108 = arith.constant dense<0.000000e+00> : vector<16x128xf32>
    %285 = tpu.matmul %283, %284, %cst_108 {dimension_numbers = #tpu.dot_dimension_numbers<[1], [0], [0], [1], [0, 0, 1, 1], [], []>} : vector<16x128xbf16>, vector<128x128xbf16>, vector<16x128xf32> -> vector<16x128xf32>
    %286 = arith.addf %266, %285 : vector<16x128xf32>
    %287 = vector.extract_strided_slice %6 {offsets = [16, 640], sizes = [16, 128], strides = [1, 1]} : vector<32x1024xbf16> to vector<16x128xbf16>
    %288 = vector.extract_strided_slice %13 {offsets = [16, 640], sizes = [16, 128], strides = [1, 1]} : vector<32x1024xbf16> to vector<16x128xbf16>
    %289 = vector.extract_strided_slice %20 {offsets = [16, 640], sizes = [16, 128], strides = [1, 1]} : vector<32x1024xbf16> to vector<16x128xbf16>
    %cst_109 = arith.constant dense<0.000000e+00> : vector<16x16xf32>
    %290 = tpu.matmul %287, %288, %cst_109 {dimension_numbers = #tpu.dot_dimension_numbers<[1], [1], [0], [0], [0, 0, 1, 0], [], []>} : vector<16x128xbf16>, vector<16x128xbf16>, vector<16x16xf32> -> vector<16x16xf32>
    %cst_110 = arith.constant dense<0xFF800000> : vector<16xf32>
    %291 = vector.multi_reduction <maximumf>, %290, %cst_110 [1] : vector<16x16xf32> to vector<16xf32>
    %292 = vector.shape_cast %291 : vector<16xf32> to vector<16x1xf32>
    %293 = vector.broadcast %292 : vector<16x1xf32> to vector<16x16xf32>
    %294 = arith.subf %290, %293 : vector<16x16xf32>
    %295 = math.exp %294 : vector<16x16xf32>
    %cst_111 = arith.constant dense<0.000000e+00> : vector<16xf32>
    %296 = vector.multi_reduction <add>, %295, %cst_111 [1] : vector<16x16xf32> to vector<16xf32>
    %297 = vector.shape_cast %296 : vector<16xf32> to vector<16x1xf32>
    %298 = tpu.reciprocal %297 {approx = true} : vector<16x1xf32> -> vector<16x1xf32>
    %299 = vector.broadcast %298 : vector<16x1xf32> to vector<16x16xf32>
    %300 = arith.mulf %295, %299 : vector<16x16xf32>
    %301 = arith.truncf %300 : vector<16x16xf32> to vector<16x16xbf16>
    %cst_112 = arith.constant dense<0.000000e+00> : vector<16x128xf32>
    %302 = tpu.matmul %301, %289, %cst_112 {dimension_numbers = #tpu.dot_dimension_numbers<[1], [0], [0], [1], [0, 0, 1, 1], [], []>} : vector<16x16xbf16>, vector<16x128xbf16>, vector<16x128xf32> -> vector<16x128xf32>
    %303 = arith.truncf %302 : vector<16x128xf32> to vector<16x128xbf16>
    %c640_113 = arith.constant 640 : index
    %c0_114 = arith.constant 0 : index
    %304 = vector.load %arg10[%c640_113, %c0_114] : memref<1024x128xbf16, #tpu.memory_space<vmem>>, vector<128x128xbf16>
    %cst_115 = arith.constant dense<0.000000e+00> : vector<16x128xf32>
    %305 = tpu.matmul %303, %304, %cst_115 {dimension_numbers = #tpu.dot_dimension_numbers<[1], [0], [0], [1], [0, 0, 1, 1], [], []>} : vector<16x128xbf16>, vector<128x128xbf16>, vector<16x128xf32> -> vector<16x128xf32>
    %306 = arith.addf %286, %305 : vector<16x128xf32>
    %307 = vector.extract_strided_slice %6 {offsets = [16, 768], sizes = [16, 128], strides = [1, 1]} : vector<32x1024xbf16> to vector<16x128xbf16>
    %308 = vector.extract_strided_slice %13 {offsets = [16, 768], sizes = [16, 128], strides = [1, 1]} : vector<32x1024xbf16> to vector<16x128xbf16>
    %309 = vector.extract_strided_slice %20 {offsets = [16, 768], sizes = [16, 128], strides = [1, 1]} : vector<32x1024xbf16> to vector<16x128xbf16>
    %cst_116 = arith.constant dense<0.000000e+00> : vector<16x16xf32>
    %310 = tpu.matmul %307, %308, %cst_116 {dimension_numbers = #tpu.dot_dimension_numbers<[1], [1], [0], [0], [0, 0, 1, 0], [], []>} : vector<16x128xbf16>, vector<16x128xbf16>, vector<16x16xf32> -> vector<16x16xf32>
    %cst_117 = arith.constant dense<0xFF800000> : vector<16xf32>
    %311 = vector.multi_reduction <maximumf>, %310, %cst_117 [1] : vector<16x16xf32> to vector<16xf32>
    %312 = vector.shape_cast %311 : vector<16xf32> to vector<16x1xf32>
    %313 = vector.broadcast %312 : vector<16x1xf32> to vector<16x16xf32>
    %314 = arith.subf %310, %313 : vector<16x16xf32>
    %315 = math.exp %314 : vector<16x16xf32>
    %cst_118 = arith.constant dense<0.000000e+00> : vector<16xf32>
    %316 = vector.multi_reduction <add>, %315, %cst_118 [1] : vector<16x16xf32> to vector<16xf32>
    %317 = vector.shape_cast %316 : vector<16xf32> to vector<16x1xf32>
    %318 = tpu.reciprocal %317 {approx = true} : vector<16x1xf32> -> vector<16x1xf32>
    %319 = vector.broadcast %318 : vector<16x1xf32> to vector<16x16xf32>
    %320 = arith.mulf %315, %319 : vector<16x16xf32>
    %321 = arith.truncf %320 : vector<16x16xf32> to vector<16x16xbf16>
    %cst_119 = arith.constant dense<0.000000e+00> : vector<16x128xf32>
    %322 = tpu.matmul %321, %309, %cst_119 {dimension_numbers = #tpu.dot_dimension_numbers<[1], [0], [0], [1], [0, 0, 1, 1], [], []>} : vector<16x16xbf16>, vector<16x128xbf16>, vector<16x128xf32> -> vector<16x128xf32>
    %323 = arith.truncf %322 : vector<16x128xf32> to vector<16x128xbf16>
    %c768_120 = arith.constant 768 : index
    %c0_121 = arith.constant 0 : index
    %324 = vector.load %arg10[%c768_120, %c0_121] : memref<1024x128xbf16, #tpu.memory_space<vmem>>, vector<128x128xbf16>
    %cst_122 = arith.constant dense<0.000000e+00> : vector<16x128xf32>
    %325 = tpu.matmul %323, %324, %cst_122 {dimension_numbers = #tpu.dot_dimension_numbers<[1], [0], [0], [1], [0, 0, 1, 1], [], []>} : vector<16x128xbf16>, vector<128x128xbf16>, vector<16x128xf32> -> vector<16x128xf32>
    %326 = arith.addf %306, %325 : vector<16x128xf32>
    %327 = vector.extract_strided_slice %6 {offsets = [16, 896], sizes = [16, 128], strides = [1, 1]} : vector<32x1024xbf16> to vector<16x128xbf16>
    %328 = vector.extract_strided_slice %13 {offsets = [16, 896], sizes = [16, 128], strides = [1, 1]} : vector<32x1024xbf16> to vector<16x128xbf16>
    %329 = vector.extract_strided_slice %20 {offsets = [16, 896], sizes = [16, 128], strides = [1, 1]} : vector<32x1024xbf16> to vector<16x128xbf16>
    %cst_123 = arith.constant dense<0.000000e+00> : vector<16x16xf32>
    %330 = tpu.matmul %327, %328, %cst_123 {dimension_numbers = #tpu.dot_dimension_numbers<[1], [1], [0], [0], [0, 0, 1, 0], [], []>} : vector<16x128xbf16>, vector<16x128xbf16>, vector<16x16xf32> -> vector<16x16xf32>
    %cst_124 = arith.constant dense<0xFF800000> : vector<16xf32>
    %331 = vector.multi_reduction <maximumf>, %330, %cst_124 [1] : vector<16x16xf32> to vector<16xf32>
    %332 = vector.shape_cast %331 : vector<16xf32> to vector<16x1xf32>
    %333 = vector.broadcast %332 : vector<16x1xf32> to vector<16x16xf32>
    %334 = arith.subf %330, %333 : vector<16x16xf32>
    %335 = math.exp %334 : vector<16x16xf32>
    %cst_125 = arith.constant dense<0.000000e+00> : vector<16xf32>
    %336 = vector.multi_reduction <add>, %335, %cst_125 [1] : vector<16x16xf32> to vector<16xf32>
    %337 = vector.shape_cast %336 : vector<16xf32> to vector<16x1xf32>
    %338 = tpu.reciprocal %337 {approx = true} : vector<16x1xf32> -> vector<16x1xf32>
    %339 = vector.broadcast %338 : vector<16x1xf32> to vector<16x16xf32>
    %340 = arith.mulf %335, %339 : vector<16x16xf32>
    %341 = arith.truncf %340 : vector<16x16xf32> to vector<16x16xbf16>
    %cst_126 = arith.constant dense<0.000000e+00> : vector<16x128xf32>
    %342 = tpu.matmul %341, %329, %cst_126 {dimension_numbers = #tpu.dot_dimension_numbers<[1], [0], [0], [1], [0, 0, 1, 1], [], []>} : vector<16x16xbf16>, vector<16x128xbf16>, vector<16x128xf32> -> vector<16x128xf32>
    %343 = arith.truncf %342 : vector<16x128xf32> to vector<16x128xbf16>
    %c896_127 = arith.constant 896 : index
    %c0_128 = arith.constant 0 : index
    %344 = vector.load %arg10[%c896_127, %c0_128] : memref<1024x128xbf16, #tpu.memory_space<vmem>>, vector<128x128xbf16>
    %cst_129 = arith.constant dense<0.000000e+00> : vector<16x128xf32>
    %345 = tpu.matmul %343, %344, %cst_129 {dimension_numbers = #tpu.dot_dimension_numbers<[1], [0], [0], [1], [0, 0, 1, 1], [], []>} : vector<16x128xbf16>, vector<128x128xbf16>, vector<16x128xf32> -> vector<16x128xf32>
    %346 = arith.addf %326, %345 : vector<16x128xf32>
    %347 = vector.broadcast %21 : vector<1x128xf32> to vector<16x128xf32>
    %348 = arith.addf %346, %347 : vector<16x128xf32>
    %c16 = arith.constant 16 : index
    %c0_130 = arith.constant 0 : index
    %349 = vector.load %arg12[%c16, %c0_130] : memref<32x128xf32, #tpu.memory_space<vmem>>, vector<16x128xf32>
    tpu.vector_store %arg12[%c16, %c0_130], %348 {strides = array<i32>} : memref<32x128xf32, #tpu.memory_space<vmem>>, vector<16x128xf32>,
    return
  }
  func.func @transform_0(%arg0: i32) -> (i32, i32) {
    %c0_i32 = arith.constant 0 : i32
    %c0_i32_0 = arith.constant 0 : i32
    return %arg0, %c0_i32 : i32, i32
  }
  func.func @transform_1(%arg0: i32) -> (i32, i32) {
    %c0_i32 = arith.constant 0 : i32
    %c0_i32_0 = arith.constant 0 : i32
    return %arg0, %c0_i32 : i32, i32
  }
  func.func @transform_2(%arg0: i32) -> (i32, i32) {
    %c0_i32 = arith.constant 0 : i32
    %c0_i32_0 = arith.constant 0 : i32
    return %arg0, %c0_i32 : i32, i32
  }
  func.func @transform_3(%arg0: i32) -> (i32, i32) {
    %c0_i32 = arith.constant 0 : i32
    %c0_i32_0 = arith.constant 0 : i32
    %c0_i32_1 = arith.constant 0 : i32
    return %c0_i32, %c0_i32_0 : i32, i32
  }
  func.func @transform_4(%arg0: i32) -> (i32, i32) {
    %c0_i32 = arith.constant 0 : i32
    %c0_i32_0 = arith.constant 0 : i32
    %c0_i32_1 = arith.constant 0 : i32
    return %c0_i32, %c0_i32_0 : i32, i32
  }
  func.func @transform_5(%arg0: i32) -> (i32, i32) {
    %c0_i32 = arith.constant 0 : i32
    %c0_i32_0 = arith.constant 0 : i32
    %c0_i32_1 = arith.constant 0 : i32
    return %c0_i32, %c0_i32_0 : i32, i32
  }
  func.func @transform_6(%arg0: i32) -> (i32, i32) {
    %c0_i32 = arith.constant 0 : i32
    %c0_i32_0 = arith.constant 0 : i32
    %c0_i32_1 = arith.constant 0 : i32
    return %c0_i32, %c0_i32_0 : i32, i32
  }
  func.func @transform_7(%arg0: i32) -> (i32, i32) {
    %c0_i32 = arith.constant 0 : i32
    %c0_i32_0 = arith.constant 0 : i32
    %c0_i32_1 = arith.constant 0 : i32
    return %c0_i32, %c0_i32_0 : i32, i32
  }
  func.func @transform_8(%arg0: i32) -> (i32, i32) {
    %c0_i32 = arith.constant 0 : i32
    %c0_i32_0 = arith.constant 0 : i32
    %c0_i32_1 = arith.constant 0 : i32
    return %c0_i32, %c0_i32_0 : i32, i32
  }
  func.func @transform_9(%arg0: i32) -> (i32, i32) {
    %c0_i32 = arith.constant 0 : i32
    %c0_i32_0 = arith.constant 0 : i32
    %c0_i32_1 = arith.constant 0 : i32
    return %c0_i32, %c0_i32_0 : i32, i32
  }
  func.func @transform_10(%arg0: i32) -> (i32, i32) {
    %c0_i32 = arith.constant 0 : i32
    %c0_i32_0 = arith.constant 0 : i32
    %c0_i32_1 = arith.constant 0 : i32
    return %c0_i32, %c0_i32_0 : i32, i32
  }
  func.func @transform_11(%arg0: i32) -> (i32, i32) {
    %c0_i32 = arith.constant 0 : i32
    %c0_i32_0 = arith.constant 0 : i32
    return %arg0, %c0_i32 : i32, i32
  }
}

</mosaic_0001>

<bundles_post_ra>
// kernel: tpu_custom_call.1
= control target key start
LH: loop header
LB: loop body
LE: loop exit
PB: predicated region body
PF: predicated region fallthrough
CT: control target
= control target key end

     0   :  { %16 = vsyncpa [#allocation3], 0  ;;  %s8335_s0 = inlined_call_operand.hbm [shape: bf16[32,128], index: 0, kind: input, shape index: {}]   ;;  %s8336_s1 = inlined_call_operand.hbm [shape: bf16[32,128], index: 1, kind: input, shape index: {}]   ;;  %s8337_s2 = inlined_call_operand.hbm [shape: bf16[32,128], index: 2, kind: input, shape index: {}]   ;;  %s8338_s3 = inlined_call_operand.hbm [shape: bf16[128,1024], index: 3, kind: input, shape index: {}]   ;;  %s8339_s4 = inlined_call_operand.vmem [shape: f32[1,1024], index: 4, kind: input, shape index: {}]   ;;  %s8340_s5 = inlined_call_operand.hbm [shape: bf16[128,1024], index: 5, kind: input, shape index: {}]   ;;  %s8341_s6 = inlined_call_operand.vmem [shape: f32[1,1024], index: 6, kind: input, shape index: {}]   ;;  %s8342_s7 = inlined_call_operand.hbm [shape: bf16[128,1024], index: 7, kind: input, shape index: {}]   ;;  %s8343_s8 = inlined_call_operand.vmem [shape: f32[1,1024], index: 8, kind: input, shape index: {}]   ;;  %s8344_s9 = inlined_call_operand.hbm [shape: bf16[1024,128], index: 9, kind: input, shape index: {}]   ;;  %s8345_s10 = inlined_call_operand.vmem [shape: f32[1,128], index: 10, kind: input, shape index: {}]   ;;  %s8346_s11 = inlined_call_operand.hbm [shape: f32[32,128], index: 11, kind: output, shape index: {}]  }
   0x1   :  { %17 = vsyncpa [#allocation6], 0 }
   0x2   :  { %18 = vsyncpa [#allocation9], 0 }
   0x3   :  { %19 = vsyncpa [#allocation12], 0 }
   0x4   :  { %20 = vsyncpa [#allocation4], 0  ;;  %s7159_s17 = smov [#allocation5]   ;;  %s7160_s19 = smov [#allocation8]  }
   0x5   :  { %s38_s18 = sshll.u32 %s7159_s17, 4  ;;  %s62_s20 = sshll.u32 %s7160_s19, 4  ;;  %s39_s18 = int_to_ptr.vmem [resolvable:$true] %s38_s18  ;;  %s7236_s20 = int_to_ptr.vmem [resolvable:$true] %s62_s20 }
   0x6   :  { %s6973_s23 = scalar_lea.hbm %s8336_s1, 256 }
   0x7   :  { %p6974_p0 = scmp.ne.s32.totalorder %s8336_s1, %s6973_s23  ;;  %p6977_p1 = scmp.lt.u32.totalorder %s6973_s23, %s8336_s1 }
   0x9   :  { %p6979_p2 = pnand %p6977_p1, %p6974_p0 }
   0xb   :  { %6982 = shalt.err (!%p6979_p2)
}
   0xc   :  { %s6983_s28 = scalar_lea.vmem %s39_s18, 256  ;;  %p6988_p4 = scmp.lt.s32.totalorder %s39_s18, %s39_s18 }
   0xd   :  { %p6984_p3 = scmp.ne.s32.totalorder %s39_s18, %s6983_s28  ;;  %p6989_p5 = scmp.lt.s32.totalorder %s6983_s28, %s6983_s28 }
   0xf   :  { %p6990_p6 = por %p6989_p5, %p6988_p4 }
  0x11   :  { %p6991_p7 = pnand %p6990_p6, %p6984_p3 }
  0x13   :  { %6994 = shalt.err (!%p6991_p7)
}
  0x14   :  { %s7161_s29 = smov 64   ;;  %s7162_s30 = smov 4  }
  0x15   :  { %44 = dma.hbm_to_vmem [thread:$0]  %s8336_s1, 256, %s39_s18, [#allocation6], %s7161_s29, %s7161_s29, %s7162_s30  }
  0x16   :  { %s6995_s16 = scalar_lea.hbm %s8338_s3, 8192 }
  0x17   :  { %p6996_p8 = scmp.ne.s32.totalorder %s8338_s3, %s6995_s16  ;;  %p6999_p9 = scmp.lt.u32.totalorder %s6995_s16, %s8338_s3 }
  0x19   :  { %p7001_p10 = pnand %p6999_p9, %p6996_p8 }
  0x1b   :  { %7004 = shalt.err (!%p7001_p10)
}
  0x1c   :  { %s7005_s23 = scalar_lea.vmem %s7236_s20, 8192  ;;  %p7010_p12 = scmp.lt.s32.totalorder %s7236_s20, %s7236_s20 }
  0x1d   :  { %p7006_p11 = scmp.ne.s32.totalorder %s7236_s20, %s7005_s23  ;;  %p7011_p13 = scmp.lt.s32.totalorder %s7005_s23, %s7005_s23 }
  0x1f   :  { %p7012_p0 = por %p7011_p13, %p7010_p12 }
  0x21   :  { %p7013_p1 = pnand %p7012_p0, %p7006_p11 }
  0x23   :  { %7016 = shalt.err (!%p7013_p1)
}
  0x24   :  { %s7163_s1 = smov 512   ;;  %s7164_s18 = smov 32  }
  0x25   :  { %68 = dma.hbm_to_vmem [thread:$0]  %s8338_s3, 8192, %s7236_s20, [#allocation9], %s7163_s1, %s7163_s1, %s7164_s18  }
  0x26   :  { %s7165_s26 = smov [#allocation11]   ;;  %s7166_s28 = smov [#allocation2]  }
  0x27   :  { %s90_s27 = sshll.u32 %s7165_s26, 4  ;;  %s26_s12 = sshll.u32 %s7166_s28, 4  ;;  %s91_s27 = int_to_ptr.vmem [resolvable:$true] %s90_s27  ;;  %s7273_s12 = int_to_ptr.vmem [resolvable:$true] %s26_s12 }
  0x28   :  { %s7017_s15 = scalar_lea.hbm %s8342_s7, 8192 }
  0x29   :  { %p7018_p2 = scmp.ne.s32.totalorder %s8342_s7, %s7017_s15  ;;  %p7021_p3 = scmp.lt.u32.totalorder %s7017_s15, %s8342_s7 }
  0x2b   :  { %p7023_p4 = pnand %p7021_p3, %p7018_p2 }
  0x2d   :  { %7026 = shalt.err (!%p7023_p4)
}
  0x2e   :  { %s7027_s3 = scalar_lea.vmem %s91_s27, 8192  ;;  %p7032_p6 = scmp.lt.s32.totalorder %s91_s27, %s91_s27 }
  0x2f   :  { %p7028_p5 = scmp.ne.s32.totalorder %s91_s27, %s7027_s3  ;;  %p7033_p7 = scmp.lt.s32.totalorder %s7027_s3, %s7027_s3 }
  0x31   :  { %p7034_p8 = por %p7033_p7, %p7032_p6 }
  0x33   :  { %p7035_p9 = pnand %p7034_p8, %p7028_p5 }
  0x35   :  { %7038 = shalt.err (!%p7035_p9)
}
  0x36   :  { %96 = dma.hbm_to_vmem [thread:$0]  %s8342_s7, 8192, %s91_s27, [#allocation12], %s7163_s1, %s7163_s1, %s7164_s18  }
  0x37   :  { %s7039_s25 = scalar_lea.hbm %s8335_s0, 256 }
  0x38   :  { %p7040_p10 = scmp.ne.s32.totalorder %s8335_s0, %s7039_s25  ;;  %p7043_p11 = scmp.lt.u32.totalorder %s7039_s25, %s8335_s0 }
  0x3a   :  { %p7045_p12 = pnand %p7043_p11, %p7040_p10 }
  0x3c   :  { %7048 = shalt.err (!%p7045_p12)
}
  0x3d   :  { %s7049_s15 = scalar_lea.vmem %s7273_s12, 256  ;;  %p7054_p0 = scmp.lt.s32.totalorder %s7273_s12, %s7273_s12 }
  0x3e   :  { %p7050_p13 = scmp.ne.s32.totalorder %s7273_s12, %s7049_s15  ;;  %p7055_p1 = scmp.lt.s32.totalorder %s7049_s15, %s7049_s15 }
  0x40   :  { %p7056_p2 = por %p7055_p1, %p7054_p0 }
  0x42   :  { %p7057_p3 = pnand %p7056_p2, %p7050_p13 }
  0x44   :  { %7060 = shalt.err (!%p7057_p3)
}
  0x45   :  { %32 = dma.hbm_to_vmem [thread:$0]  %s8335_s0, 256, %s7273_s12, [#allocation3], %s7161_s29, %s7161_s29, %s7162_s30  }
  0x46   :  { %s7167_s16 = smov [#allocation7]   ;;  %s7168_s19 = smov [#allocation10]  }
  0x47   :  { %s50_s17 = sshll.u32 %s7167_s16, 4  ;;  %s76_s21 = sshll.u32 %s7168_s19, 4  ;;  %s51_s17 = int_to_ptr.vmem [resolvable:$true] %s50_s17  ;;  %s7310_s21 = int_to_ptr.vmem [resolvable:$true] %s76_s21 }
  0x48   :  { %s7061_s22 = scalar_lea.hbm %s8337_s2, 256 }
  0x49   :  { %p7062_p4 = scmp.ne.s32.totalorder %s8337_s2, %s7061_s22  ;;  %p7065_p5 = scmp.lt.u32.totalorder %s7061_s22, %s8337_s2 }
  0x4b   :  { %p7067_p6 = pnand %p7065_p5, %p7062_p4 }
  0x4d   :  { %7070 = shalt.err (!%p7067_p6)
}
  0x4e   :  { %s7071_s0 = scalar_lea.vmem %s51_s17, 256  ;;  %p7076_p8 = scmp.lt.s32.totalorder %s51_s17, %s51_s17 }
  0x4f   :  { %p7072_p7 = scmp.ne.s32.totalorder %s51_s17, %s7071_s0  ;;  %p7077_p9 = scmp.lt.s32.totalorder %s7071_s0, %s7071_s0 }
  0x51   :  { %p7078_p10 = por %p7077_p9, %p7076_p8 }
  0x53   :  { %p7079_p11 = pnand %p7078_p10, %p7072_p7 }
  0x55   :  { %7082 = shalt.err (!%p7079_p11)
}
  0x56   :  { %56 = dma.hbm_to_vmem [thread:$0]  %s8337_s2, 256, %s51_s17, [#allocation6], %s7161_s29, %s7161_s29, %s7162_s30  }
  0x57   :  { %s7083_s15 = scalar_lea.hbm %s8340_s5, 8192 }
  0x58   :  { %p7084_p12 = scmp.ne.s32.totalorder %s8340_s5, %s7083_s15  ;;  %p7087_p13 = scmp.lt.u32.totalorder %s7083_s15, %s8340_s5 }
  0x5a   :  { %p7089_p0 = pnand %p7087_p13, %p7084_p12 }
  0x5c   :  { %7092 = shalt.err (!%p7089_p0)
}
  0x5d   :  { %s7093_s3 = scalar_lea.vmem %s7310_s21, 8192  ;;  %p7098_p2 = scmp.lt.s32.totalorder %s7310_s21, %s7310_s21 }
  0x5e   :  { %p7094_p1 = scmp.ne.s32.totalorder %s7310_s21, %s7093_s3  ;;  %p7099_p3 = scmp.lt.s32.totalorder %s7093_s3, %s7093_s3 }
  0x60   :  { %p7100_p4 = por %p7099_p3, %p7098_p2 }
  0x62   :  { %p7101_p5 = pnand %p7100_p4, %p7094_p1 }
  0x64   :  { %7104 = shalt.err (!%p7101_p5)
}
  0x65   :  { %82 = dma.hbm_to_vmem [thread:$0]  %s8340_s5, 8192, %s7310_s21, [#allocation9], %s7163_s1, %s7163_s1, %s7164_s18  }
  0x66   :  { %s7169_s20 = smov [#allocation13]   ;;  %s7105_s25 = scalar_lea.hbm %s8344_s9, 8192 }
  0x67   :  { %s104_s22 = sshll.u32 %s7169_s20, 4  ;;  %p7106_p6 = scmp.ne.s32.totalorder %s8344_s9, %s7105_s25  ;;  %s105_s22 = int_to_ptr.vmem [resolvable:$true] %s104_s22 }
  0x68   :  { %p7109_p7 = scmp.lt.u32.totalorder %s7105_s25, %s8344_s9 }
  0x6a   :  { %p7111_p8 = pnand %p7109_p7, %p7106_p6 }
  0x6c   :  { %7114 = shalt.err (!%p7111_p8)
}
  0x6d   :  { %s7115_s13 = scalar_lea.vmem %s105_s22, 8192  ;;  %p7120_p10 = scmp.lt.s32.totalorder %s105_s22, %s105_s22 }
  0x6e   :  { %p7116_p9 = scmp.ne.s32.totalorder %s105_s22, %s7115_s13  ;;  %p7121_p11 = scmp.lt.s32.totalorder %s7115_s13, %s7115_s13 }
  0x70   :  { %p7122_p12 = por %p7121_p11, %p7120_p10 }
  0x72   :  { %p7123_p13 = pnand %p7122_p12, %p7116_p9 }
  0x74   :  { %7126 = shalt.err (!%p7123_p13)
}
  0x75   :  { %110 = dma.hbm_to_vmem [thread:$0]  %s8344_s9, 8192, %s105_s22, [#allocation12], %s7161_s29, %s7161_s29, %s7162_s30  }
  0x76   :  { %7149 = dma.done.wait [#allocation3], 256  }
  0x77   :  { %7150 = vsyncadd [#allocation3], 4294967040 }
  0x78   :  { %7151 = dma.done.wait [#allocation6], 512  }
  0x79   :  { %7152 = vsyncadd [#allocation6], 4294966784 }
  0x7a   :  { %7153 = dma.done.wait [#allocation9], 16384  }
  0x7b   :  { %7154 = vsyncadd [#allocation9], 4294950912 }
  0x7c   :  { %7155 = dma.done.wait [#allocation12], 16384  }
  0x7d   :  { %7156 = vsyncadd [#allocation12], 4294950912  ;;  %v7170_v0 = vmov 0   ;;  %v139_v1 = vld [vmem:[#allocation8] sm:$0xff]  ;;  %v141_v32 = vld [vmem:[#allocation8 + $0x10] sm:$0xff]  ;;  %vm7172_vm0 = vmmov 0  }
  0x7e   :  { %609 = vmatprep.mubr.bf16.mxu0 %v7170_v0  ;;  %662 = vmatprep.mubr.bf16.mxu1 %v7170_v0  ;;  %v143_v2 = vld [vmem:[#allocation8 + $0x20] sm:$0xff]  ;;  %v145_v33 = vld [vmem:[#allocation8 + $0x30] sm:$0xff]  ;;  %v6710_v47 = vld [vmem:[#allocation2 + $0x8] sm:$0xff]   ;;  %vm2187_vm1 = vcmask 130048  }
  0x7f   :  { %v147_v3 = vld [vmem:[#allocation8 + $0x40] sm:$0xff]  ;;  %v5632_v4 = vcombine.high %v139_v1, %v143_v2  ;;  %v5631_v5 = vcombine.low %v139_v1, %v143_v2  ;;  %v149_v35 = vld [vmem:[#allocation8 + $0x50] sm:$0xff]  ;;  %v5636_v38 = vcombine.high %v141_v32, %v145_v33  ;;  %v5635_v39 = vcombine.low %v141_v32, %v145_v33 }
  0x80   :  { %v151_v6 = vld [vmem:[#allocation8 + $0x60] sm:$0xff]  ;;  %v153_v36 = vld [vmem:[#allocation8 + $0x70] sm:$0xff] }
  0x81   :  { %v5640_v7 = vcombine.high %v147_v3, %v151_v6  ;;  %v155_v8 = vld [vmem:[#allocation8 + $0x80] sm:$0xff]  ;;  %577 = vmatprep.subr.bf16.mxu0 %v5632_v4  ;;  %v5639_v10 = vcombine.low %v147_v3, %v151_v6  ;;  %v6709_v37 = vld [vmem:[#allocation2] sm:$0xff]   ;;  %v5644_v42 = vcombine.high %v149_v35, %v153_v36  ;;  %v5643_v43 = vcombine.low %v149_v35, %v153_v36 }
  0x82   :  { %v159_v9 = vld [vmem:[#allocation8 + $0xa0] sm:$0xff]  ;;  %578 = vmatpush1.bf16.msra.mxu0 %v5631_v5  ;;  %v157_v40 = vld [vmem:[#allocation8 + $0x90] sm:$0xff] }
  0x83   :  { %579 = vmatprep.subr.bf16.mxu0 %v5640_v7  ;;  %v5648_v11 = vcombine.high %v155_v8, %v159_v9  ;;  %v163_v12 = vld [vmem:[#allocation8 + $0xc0] sm:$0xff]  ;;  %v5647_v14 = vcombine.low %v155_v8, %v159_v9  ;;  %v161_v41 = vld [vmem:[#allocation8 + $0xb0] sm:$0xff] }
  0x84   :  { %v167_v13 = vld [vmem:[#allocation8 + $0xe0] sm:$0xff]  ;;  %v165_v44 = vld [vmem:[#allocation8 + $0xd0] sm:$0xff]  ;;  %v5652_v46 = vcombine.high %v157_v40, %v161_v41  ;;  %v5651_v48 = vcombine.low %v157_v40, %v161_v41 }
  0x85   :  { %v5656_v15 = vcombine.high %v163_v12, %v167_v13  ;;  %v171_v16 = vld [vmem:[#allocation8 + $0x100] sm:$0xff]  ;;  %v5655_v18 = vcombine.low %v163_v12, %v167_v13  ;;  %v169_v45 = vld [vmem:[#allocation8 + $0xf0] sm:$0xff] }
  0x86   :  { %580 = vmatpush1.bf16.msra.mxu0 %v5639_v10  ;;  %v175_v17 = vld [vmem:[#allocation8 + $0x120] sm:$0xff]  ;;  %v173_v49 = vld [vmem:[#allocation8 + $0x110] sm:$0xff]  ;;  %v5660_v51 = vcombine.high %v165_v44, %v169_v45  ;;  %v5659_v52 = vcombine.low %v165_v44, %v169_v45 }
  0x87   :  { %581 = vmatprep.subr.bf16.mxu0 %v5648_v11  ;;  %v5664_v19 = vcombine.high %v171_v16, %v175_v17  ;;  %v179_v20 = vld [vmem:[#allocation8 + $0x140] sm:$0xff]  ;;  %v5663_v22 = vcombine.low %v171_v16, %v175_v17  ;;  %v177_v50 = vld [vmem:[#allocation8 + $0x130] sm:$0xff] }
  0x88   :  { %v183_v21 = vld [vmem:[#allocation8 + $0x160] sm:$0xff]  ;;  %v181_v53 = vld [vmem:[#allocation8 + $0x150] sm:$0xff]  ;;  %v5668_v55 = vcombine.high %v173_v49, %v177_v50  ;;  %v5667_v56 = vcombine.low %v173_v49, %v177_v50  ;;  %v7372_v50 = vld [vmem:[#allocation5 + $0x8] sm:$0xff]  }
  0x89   :  { %v5672_v23 = vcombine.high %v179_v20, %v183_v21  ;;  %v187_v24 = vld [vmem:[#allocation8 + $0x180] sm:$0xff]  ;;  %v5671_v26 = vcombine.low %v179_v20, %v183_v21  ;;  %v185_v54 = vld [vmem:[#allocation8 + $0x170] sm:$0xff] }
  0x8a   :  { %582 = vmatpush1.bf16.msra.mxu0 %v5647_v14  ;;  %v191_v25 = vld [vmem:[#allocation8 + $0x1a0] sm:$0xff]  ;;  %v189_v57 = vld [vmem:[#allocation8 + $0x190] sm:$0xff]  ;;  %v5676_v59 = vcombine.high %v181_v53, %v185_v54  ;;  %v5675_v60 = vcombine.low %v181_v53, %v185_v54 }
  0x8b   :  { %583 = vmatprep.subr.bf16.mxu0 %v5656_v15  ;;  %v5680_v27 = vcombine.high %v187_v24, %v191_v25  ;;  %v195_v28 = vld [vmem:[#allocation8 + $0x1c0] sm:$0xff]  ;;  %v5679_v30 = vcombine.low %v187_v24, %v191_v25  ;;  %v193_v58 = vld [vmem:[#allocation8 + $0x1b0] sm:$0xff] }
  0x8c   :  { %v199_v29 = vld [vmem:[#allocation8 + $0x1e0] sm:$0xff]  ;;  %v197_v61 = vld [vmem:[#allocation8 + $0x1d0] sm:$0xff]  ;;  %v5684_v63 = vcombine.high %v189_v57, %v193_v58  ;;  %v5683_v1 = vcombine.low %v189_v57, %v193_v58 }
  0x8d   :  { %v5688_v31 = vcombine.high %v195_v28, %v199_v29  ;;  %v5687_v34 = vcombine.low %v195_v28, %v199_v29  ;;  %v201_v62 = vld [vmem:[#allocation8 + $0x1f0] sm:$0xff]  ;;  %v809_v2 = vld [vmem:[#allocation10] sm:$0xff] }
  0x8e   :  { %584 = vmatpush1.bf16.msra.mxu0 %v5655_v18  ;;  %v813_v3 = vld [vmem:[#allocation10 + $0x20] sm:$0xff]  ;;  %v5692_v4 = vcombine.high %v197_v61, %v201_v62  ;;  %v5691_v5 = vcombine.low %v197_v61, %v201_v62  ;;  %v815_v35 = vld [vmem:[#allocation10 + $0x30] sm:$0xff] }
  0x8f   :  { %585 = vmatprep.subr.bf16.mxu0 %v5664_v19  ;;  %v817_v6 = vld [vmem:[#allocation10 + $0x40] sm:$0xff]  ;;  %v5698_v8 = vcombine.high %v809_v2, %v813_v3  ;;  %v5697_v9 = vcombine.low %v809_v2, %v813_v3  ;;  %v831_v44 = vld [vmem:[#allocation10 + $0xb0] sm:$0xff] }
  0x90   :  { %v821_v7 = vld [vmem:[#allocation10 + $0x60] sm:$0xff]  ;;  %v847_v53 = vld [vmem:[#allocation10 + $0x130] sm:$0xff] }
  0x91   :  { %v825_v10 = vld [vmem:[#allocation10 + $0x80] sm:$0xff]  ;;  %v5706_v12 = vcombine.high %v817_v6, %v821_v7  ;;  %v5705_v13 = vcombine.low %v817_v6, %v821_v7  ;;  %v855_v57 = vld [vmem:[#allocation10 + $0x170] sm:$0xff] }
  0x92   :  { %586 = vmatpush1.bf16.msra.mxu0 %v5663_v22  ;;  %v829_v11 = vld [vmem:[#allocation10 + $0xa0] sm:$0xff]  ;;  %v859_v61 = vld [vmem:[#allocation10 + $0x190] sm:$0xff] }
  0x93   :  { %587 = vmatprep.subr.bf16.mxu0 %v5672_v23  ;;  %v833_v14 = vld [vmem:[#allocation10 + $0xc0] sm:$0xff]  ;;  %v5714_v16 = vcombine.high %v825_v10, %v829_v11  ;;  %v5713_v17 = vcombine.low %v825_v10, %v829_v11  ;;  %v863_v62 = vld [vmem:[#allocation10 + $0x1b0] sm:$0xff] }
  0x94   :  { %v837_v15 = vld [vmem:[#allocation10 + $0xe0] sm:$0xff]  ;;  %v867_v2 = vld [vmem:[#allocation10 + $0x1d0] sm:$0xff] }
  0x95   :  { %v841_v18 = vld [vmem:[#allocation10 + $0x100] sm:$0xff]  ;;  %v5722_v20 = vcombine.high %v833_v14, %v837_v15  ;;  %v5721_v21 = vcombine.low %v833_v14, %v837_v15  ;;  %v871_v3 = vld [vmem:[#allocation10 + $0x1f0] sm:$0xff] }
  0x96   :  { %588 = vmatpush1.bf16.msra.mxu0 %v5671_v26  ;;  %v845_v19 = vld [vmem:[#allocation10 + $0x120] sm:$0xff] }
  0x97   :  { %589 = vmatprep.subr.bf16.mxu0 %v5680_v27  ;;  %v849_v22 = vld [vmem:[#allocation10 + $0x140] sm:$0xff]  ;;  %v5730_v24 = vcombine.high %v841_v18, %v845_v19  ;;  %v5729_v25 = vcombine.low %v841_v18, %v845_v19 }
  0x98   :  { %v853_v23 = vld [vmem:[#allocation10 + $0x160] sm:$0xff] }
  0x99   :  { %v857_v26 = vld [vmem:[#allocation10 + $0x180] sm:$0xff]  ;;  %v5738_v28 = vcombine.high %v849_v22, %v853_v23  ;;  %v5737_v29 = vcombine.low %v849_v22, %v853_v23 }
  0x9a   :  { %590 = vmatpush1.bf16.msra.mxu0 %v5679_v30  ;;  %v861_v27 = vld [vmem:[#allocation10 + $0x1a0] sm:$0xff] }
  0x9b   :  { %591 = vmatprep.subr.bf16.mxu0 %v5688_v31  ;;  %v865_v30 = vld [vmem:[#allocation10 + $0x1c0] sm:$0xff]  ;;  %v5746_v32 = vcombine.high %v857_v26, %v861_v27  ;;  %v5745_v33 = vcombine.low %v857_v26, %v861_v27 }
  0x9c   :  { %v869_v31 = vld [vmem:[#allocation10 + $0x1e0] sm:$0xff] }
  0x9d   :  { %v5754_v36 = vcombine.high %v865_v30, %v869_v31  ;;  %v7368_v40 = vld [vmem:[#allocation5] sm:$0xff]  }
  0x9e   :  { %592 = vmatpush1.bf16.msra.mxu0 %v5687_v34  ;;  %v811_v34 = vld [vmem:[#allocation10 + $0x10] sm:$0xff]  ;;  %v1479_v6 = vld [vmem:[#allocation11] sm:$0xff] }
  0x9f   :  { %683 = vmatprep.subr.bf16.mxu0 %v5636_v38  ;;  %v819_v38 = vld [vmem:[#allocation10 + $0x50] sm:$0xff]  ;;  %v5702_v41 = vcombine.high %v811_v34, %v815_v35  ;;  %v1483_v7 = vld [vmem:[#allocation11 + $0x20] sm:$0xff] }
  0xa0   :  { %v1487_v10 = vld [vmem:[#allocation11 + $0x40] sm:$0xff] }
  0xa1   :  { %610 = vmatmul.mubr.bf16.vlgmr.msra.gmra.mrb[0].mxu0 %v6709_v37  ;;  %v1491_v11 = vld [vmem:[#allocation11 + $0x60] sm:$0xff] }
  0xa2   :  { %684 = vmatpush1.bf16.msra.mxu0 %v5635_v39  ;;  %619 = vmatprep.mubr.bf16.mxu0 %v7170_v0  ;;  %v823_v39 = vld [vmem:[#allocation10 + $0x70] sm:$0xff]  ;;  %v1495_v14 = vld [vmem:[#allocation11 + $0x80] sm:$0xff] }
  0xa3   :  { %685 = vmatprep.subr.bf16.mxu0 %v5644_v42  ;;  %v5701_v42 = vcombine.low %v811_v34, %v815_v35  ;;  %v5710_v45 = vcombine.high %v819_v38, %v823_v39  ;;  %v1499_v15 = vld [vmem:[#allocation11 + $0xa0] sm:$0xff] }
  0xa4   :  { %v1503_v18 = vld [vmem:[#allocation11 + $0xc0] sm:$0xff] }
  0xa5   :  { %v1507_v19 = vld [vmem:[#allocation11 + $0xe0] sm:$0xff] }
  0xa6   :  { %686 = vmatpush1.bf16.msra.mxu0 %v5643_v43  ;;  %v827_v43 = vld [vmem:[#allocation10 + $0x90] sm:$0xff]  ;;  %v1511_v22 = vld [vmem:[#allocation11 + $0x100] sm:$0xff] }
  0xa7   :  { %687 = vmatprep.subr.bf16.mxu0 %v5652_v46  ;;  %v5709_v46 = vcombine.low %v819_v38, %v823_v39  ;;  %v5718_v49 = vcombine.high %v827_v43, %v831_v44  ;;  %v1515_v23 = vld [vmem:[#allocation11 + $0x120] sm:$0xff]  ;;  %v1481_v38 = vld [vmem:[#allocation11 + $0x10] sm:$0xff] }
  0xa8   :  { %v1519_v26 = vld [vmem:[#allocation11 + $0x140] sm:$0xff]  ;;  %v1485_v39 = vld [vmem:[#allocation11 + $0x30] sm:$0xff] }
  0xa9   :  { %620 = vmatmul.mubr.bf16.gmra.mrb[4].mxu0 %v6710_v47  ;;  %v1523_v27 = vld [vmem:[#allocation11 + $0x160] sm:$0xff] }
  0xaa   :  { %688 = vmatpush1.bf16.msra.mxu0 %v5651_v48  ;;  %715 = vmatprep.mubr.bf16.mxu0 %v7170_v0  ;;  %v839_v48 = vld [vmem:[#allocation10 + $0xf0] sm:$0xff]  ;;  %v1535_v34 = vld [vmem:[#allocation11 + $0x1c0] sm:$0xff] }
  0xab   :  { %689 = vmatprep.subr.bf16.mxu0 %v5660_v51  ;;  %v5717_v51 = vcombine.low %v827_v43, %v831_v44  ;;  %v1539_v35 = vld [vmem:[#allocation11 + $0x1e0] sm:$0xff]  ;;  %v1489_v43 = vld [vmem:[#allocation11 + $0x50] sm:$0xff] }
  0xac   :  { %v1493_v44 = vld [vmem:[#allocation11 + $0x70] sm:$0xff] }
  0xae   :  { %690 = vmatpush1.bf16.msra.mxu0 %v5659_v52  ;;  %v843_v52 = vld [vmem:[#allocation10 + $0x110] sm:$0xff] }
  0xaf   :  { %691 = vmatprep.subr.bf16.mxu0 %v5668_v55  ;;  %v5734_v58 = vcombine.high %v843_v52, %v847_v53 }
  0xb2   :  { %692 = vmatpush1.bf16.msra.mxu0 %v5667_v56  ;;  %v851_v56 = vld [vmem:[#allocation10 + $0x150] sm:$0xff] }
  0xb3   :  { %693 = vmatprep.subr.bf16.mxu0 %v5676_v59  ;;  %v5733_v59 = vcombine.low %v843_v52, %v847_v53  ;;  %v140_v52 = vld [vmem:[#allocation8 + $0x8] sm:$0xff] }
  0xb4   :  { %v144_v53 = vld [vmem:[#allocation8 + $0x28] sm:$0xff] }
  0xb6   :  { %694 = vmatpush1.bf16.msra.mxu0 %v5675_v60  ;;  %v5742_v60 = vcombine.high %v851_v56, %v855_v57 }
  0xb7   :  { %695 = vmatprep.subr.bf16.mxu0 %v5684_v63  ;;  %v5741_v63 = vcombine.low %v851_v56, %v855_v57  ;;  %v5633_v56 = vcombine.low %v140_v52, %v144_v53  ;;  %v148_v57 = vld [vmem:[#allocation8 + $0x48] sm:$0xff] }
  0xba   :  { %696 = vmatpush1.bf16.msra.mxu0 %v5683_v1  ;;  %v5750_v1 = vcombine.high %v859_v61, %v863_v62 }
  0xbb   :  { %697 = vmatprep.subr.bf16.mxu0 %v5692_v4  ;;  %v5749_v4 = vcombine.low %v859_v61, %v863_v62  ;;  %v7384_v62 = vld [vmem:[#allocation7 + $0x8] sm:$0xff]  }
  0xbe   :  { %698 = vmatpush1.bf16.msra.mxu0 %v5691_v5  ;;  %v5758_v5 = vcombine.high %v867_v2, %v871_v3 }
  0xbf   :  { %1247 = vmatprep.subr.bf16.mxu0 %v5698_v8  ;;  %v5757_v8 = vcombine.low %v867_v2, %v871_v3  ;;  %v1513_v3 = vld [vmem:[#allocation11 + $0x110] sm:$0xff] }
  0xc1   :  { %716 = vmatmul.mubr.bf16.vlgmr.msra.gmra.mrb[8].mxu0 %v6709_v37  ;;  %v5753_v37 = vcombine.low %v865_v30, %v869_v31  ;;  %v1527_v30 = vld [vmem:[#allocation11 + $0x180] sm:$0xff] }
  0xc2   :  { %1248 = vmatpush1.bf16.msra.mxu0 %v5697_v9  ;;  %725 = vmatprep.mubr.bf16.mxu0 %v7170_v0  ;;  %v5764_v9 = vcombine.high %v1479_v6, %v1483_v7  ;;  %v1531_v31 = vld [vmem:[#allocation11 + $0x1a0] sm:$0xff] }
  0xc3   :  { %1249 = vmatprep.subr.bf16.mxu0 %v5706_v12  ;;  %v5763_v12 = vcombine.low %v1479_v6, %v1483_v7  ;;  %v1521_v7 = vld [vmem:[#allocation11 + $0x150] sm:$0xff] }
  0xc6   :  { %1250 = vmatpush1.bf16.msra.mxu0 %v5705_v13  ;;  %v5772_v13 = vcombine.high %v1487_v10, %v1491_v11 }
  0xc7   :  { %1251 = vmatprep.subr.bf16.mxu0 %v5714_v16  ;;  %v5771_v16 = vcombine.low %v1487_v10, %v1491_v11  ;;  %v156_v11 = vld [vmem:[#allocation8 + $0x88] sm:$0xff] }
  0xc9   :  { %726 = vmatmul.mubr.bf16.gmra.mrb[12].mxu0 %v6710_v47  ;;  %v835_v47 = vld [vmem:[#allocation10 + $0xd0] sm:$0xff] }
  0xca   :  { %1252 = vmatpush1.bf16.msra.mxu0 %v5713_v17  ;;  %1279 = vmatprep.mubr.bf16.mxu0 %v7170_v0  ;;  %v5726_v54 = vcombine.high %v835_v47, %v839_v48  ;;  %v5725_v55 = vcombine.low %v835_v47, %v839_v48  ;;  %v5780_v17 = vcombine.high %v1495_v14, %v1499_v15  ;;  %v1497_v48 = vld [vmem:[#allocation11 + $0x90] sm:$0xff] }
  0xcb   :  { %1253 = vmatprep.subr.bf16.mxu0 %v5722_v20  ;;  %v5779_v20 = vcombine.low %v1495_v14, %v1499_v15  ;;  %v5776_v47 = vcombine.high %v1489_v43, %v1493_v44  ;;  %v1533_v14 = vld [vmem:[#allocation11 + $0x1b0] sm:$0xff] }
  0xce   :  { %1254 = vmatpush1.bf16.msra.mxu0 %v5721_v21  ;;  %v5788_v21 = vcombine.high %v1503_v18, %v1507_v19 }
  0xcf   :  { %1255 = vmatprep.subr.bf16.mxu0 %v5730_v24  ;;  %v5787_v24 = vcombine.low %v1503_v18, %v1507_v19  ;;  %v164_v19 = vld [vmem:[#allocation8 + $0xc8] sm:$0xff] }
  0xd2   :  { %1256 = vmatpush1.bf16.msra.mxu0 %v5729_v25  ;;  %v5796_v25 = vcombine.high %v1511_v22, %v1515_v23 }
  0xd3   :  { %1257 = vmatprep.subr.bf16.mxu0 %v5738_v28  ;;  %v5795_v28 = vcombine.low %v1511_v22, %v1515_v23  ;;  %v1541_v22 = vld [vmem:[#allocation11 + $0x1f0] sm:$0xff] }
  0xd6   :  { %1258 = vmatpush1.bf16.msra.mxu0 %v5737_v29  ;;  %v5804_v29 = vcombine.high %v1519_v26, %v1523_v27 }
  0xd7   :  { %1259 = vmatprep.subr.bf16.mxu0 %v5746_v32  ;;  %v5803_v32 = vcombine.low %v1519_v26, %v1523_v27  ;;  %v172_v27 = vld [vmem:[#allocation8 + $0x108] sm:$0xff] }
  0xda   :  { %1260 = vmatpush1.bf16.msra.mxu0 %v5745_v33  ;;  %v5812_v33 = vcombine.high %v1527_v30, %v1531_v31 }
  0xdb   :  { %1261 = vmatprep.subr.bf16.mxu0 %v5754_v36  ;;  %v5811_v36 = vcombine.low %v1527_v30, %v1531_v31 }
  0xde   :  { %1262 = vmatpush1.bf16.msra.mxu0 %v5753_v37  ;;  %v5820_v37 = vcombine.high %v1535_v34, %v1539_v35 }
  0xdf   :  { %1353 = vmatprep.subr.bf16.mxu0 %v5702_v41  ;;  %v5819_v41 = vcombine.low %v1535_v34, %v1539_v35 }
  0xe1   :  { %1280 = vmatmul.mubr.bf16.vlgmr.msra.gmra.mrb[16].mxu0 %v7368_v40 }
  0xe2   :  { %1354 = vmatpush1.bf16.msra.mxu0 %v5701_v42  ;;  %1289 = vmatprep.mubr.bf16.mxu0 %v7170_v0  ;;  %v5768_v42 = vcombine.high %v1481_v38, %v1485_v39 }
  0xe3   :  { %1355 = vmatprep.subr.bf16.mxu0 %v5710_v45  ;;  %v7380_v45 = vld [vmem:[#allocation7] sm:$0xff]  }
  0xe6   :  { %1356 = vmatpush1.bf16.msra.mxu0 %v5709_v46  ;;  %v5767_v46 = vcombine.low %v1481_v38, %v1485_v39  ;;  %v192_v38 = vld [vmem:[#allocation8 + $0x1a8] sm:$0xff] }
  0xe7   :  { %1357 = vmatprep.subr.bf16.mxu0 %v5718_v49  ;;  %v1501_v49 = vld [vmem:[#allocation11 + $0xb0] sm:$0xff] }
  0xe9   :  { %1290 = vmatmul.mubr.bf16.gmra.mrb[20].mxu0 %v7372_v50 }
  0xea   :  { %1358 = vmatpush1.bf16.msra.mxu0 %v5717_v51  ;;  %1385 = vmatprep.mubr.bf16.mxu0 %v7170_v0  ;;  %v5775_v51 = vcombine.low %v1489_v43, %v1493_v44  ;;  %v200_v43 = vld [vmem:[#allocation8 + $0x1e8] sm:$0xff]  ;;  %v142_v44 = vld [vmem:[#allocation8 + $0x18] sm:$0xff] }
  0xeb   :  { %1359 = vmatprep.subr.bf16.mxu0 %v5726_v54  ;;  %v5784_v54 = vcombine.high %v1497_v48, %v1501_v49 }
  0xee   :  { %1360 = vmatpush1.bf16.msra.mxu0 %v5725_v55  ;;  %v5634_v55 = vcombine.high %v140_v52, %v144_v53  ;;  %v154_v52 = vld [vmem:[#allocation8 + $0x78] sm:$0xff] }
  0xef   :  { %1361 = vmatprep.subr.bf16.mxu0 %v5734_v58  ;;  %v152_v58 = vld [vmem:[#allocation8 + $0x68] sm:$0xff] }
  0xf0   :  { %v5642_v61 = vcombine.high %v148_v57, %v152_v58  ;;  %630 = vmatprep.subr.bf16.mxu1 %v5634_v55  ;;  %v5641_v2 = vcombine.low %v148_v57, %v152_v58  ;;  %v158_v55 = vld [vmem:[#allocation8 + $0x98] sm:$0xff]  ;;  %v6971_v57 = vld [vmem:[#allocation2] sm:$0xff]  }
  0xf1   :  { %631 = vmatpush1.bf16.msra.mxu1 %v5633_v56  ;;  %v162_v56 = vld [vmem:[#allocation8 + $0xb8] sm:$0xff] }
  0xf2   :  { %1362 = vmatpush1.bf16.msra.mxu0 %v5733_v59  ;;  %v1505_v59 = vld [vmem:[#allocation11 + $0xd0] sm:$0xff]  ;;  %632 = vmatprep.subr.bf16.mxu1 %v5642_v61  ;;  %v170_v61 = vld [vmem:[#allocation8 + $0xf8] sm:$0xff] }
  0xf3   :  { %1363 = vmatprep.subr.bf16.mxu0 %v5742_v60  ;;  %v1509_v60 = vld [vmem:[#allocation11 + $0xf0] sm:$0xff] }
  0xf5   :  { %633 = vmatpush1.bf16.msra.mxu1 %v5641_v2  ;;  %v174_v2 = vld [vmem:[#allocation8 + $0x118] sm:$0xff] }
  0xf6   :  { %1364 = vmatpush1.bf16.msra.mxu0 %v5741_v63  ;;  %v5783_v63 = vcombine.low %v1497_v48, %v1501_v49  ;;  %v146_v48 = vld [vmem:[#allocation8 + $0x38] sm:$0xff] }
  0xf7   :  { %1365 = vmatprep.subr.bf16.mxu0 %v5750_v1  ;;  %v5792_v1 = vcombine.high %v1505_v59, %v1509_v60  ;;  %v5638_v49 = vcombine.high %v142_v44, %v146_v48  ;;  %v5637_v53 = vcombine.low %v142_v44, %v146_v48  ;;  %v846_v44 = vld [vmem:[#allocation10 + $0x128] sm:$0xff] }
  0xfa   :  { %1366 = vmatpush1.bf16.msra.mxu0 %v5749_v4  ;;  %v1517_v4 = vld [vmem:[#allocation11 + $0x130] sm:$0xff] }
  0xfb   :  { %1367 = vmatprep.subr.bf16.mxu0 %v5758_v5  ;;  %v5791_v5 = vcombine.low %v1505_v59, %v1509_v60  ;;  %v5800_v6 = vcombine.high %v1513_v3, %v1517_v4  ;;  %v5654_v59 = vcombine.high %v158_v55, %v162_v56  ;;  %v166_v60 = vld [vmem:[#allocation8 + $0xd8] sm:$0xff] }
  0xfe   :  { %1368 = vmatpush1.bf16.msra.mxu0 %v5757_v8  ;;  %v1525_v8 = vld [vmem:[#allocation11 + $0x170] sm:$0xff] }
  0xff   :  { %1917 = vmatprep.subr.bf16.mxu0 %v5764_v9  ;;  %v5799_v9 = vcombine.low %v1513_v3, %v1517_v4  ;;  %v5808_v10 = vcombine.high %v1521_v7, %v1525_v8  ;;  %v178_v3 = vld [vmem:[#allocation8 + $0x138] sm:$0xff] }
 0x100   :  { %v6972_v4 = vld [vmem:[#allocation2 + $0x8] sm:$0xff]  }
 0x101   :  { %1386 = vmatmul.mubr.bf16.vlgmr.msra.gmra.mrb[24].mxu0 %v7368_v40 }
 0x102   :  { %1918 = vmatpush1.bf16.msra.mxu0 %v5763_v12  ;;  %1395 = vmatprep.mubr.bf16.mxu0 %v7170_v0  ;;  %v160_v12 = vld [vmem:[#allocation8 + $0xa8] sm:$0xff] }
 0x103   :  { %1919 = vmatprep.subr.bf16.mxu0 %v5772_v13  ;;  %v1529_v13 = vld [vmem:[#allocation11 + $0x190] sm:$0xff]  ;;  %v5650_v15 = vcombine.high %v156_v11, %v160_v12 }
 0x104   :  { %v5816_v18 = vcombine.high %v1529_v13, %v1533_v14 }
 0x105   :  { %634 = vmatprep.subr.bf16.mxu1 %v5650_v15  ;;  %v198_v15 = vld [vmem:[#allocation8 + $0x1d8] sm:$0xff] }
 0x106   :  { %1920 = vmatpush1.bf16.msra.mxu0 %v5771_v16  ;;  %v5649_v16 = vcombine.low %v156_v11, %v160_v12  ;;  %v190_v11 = vld [vmem:[#allocation8 + $0x198] sm:$0xff] }
 0x107   :  { %1921 = vmatprep.subr.bf16.mxu0 %v5780_v17  ;;  %v5807_v17 = vcombine.low %v1521_v7, %v1525_v8  ;;  %v182_v7 = vld [vmem:[#allocation8 + $0x158] sm:$0xff] }
 0x108   :  { %635 = vmatpush1.bf16.msra.mxu1 %v5649_v16  ;;  %v186_v8 = vld [vmem:[#allocation8 + $0x178] sm:$0xff] }
 0x109   :  { %1396 = vmatmul.mubr.bf16.gmra.mrb[28].mxu0 %v7372_v50  ;;  %v194_v12 = vld [vmem:[#allocation8 + $0x1b8] sm:$0xff] }
 0x10a   :  { %1922 = vmatpush1.bf16.msra.mxu0 %v5779_v20  ;;  %1949 = vmatprep.mubr.bf16.mxu0 %v7170_v0  ;;  %v168_v20 = vld [vmem:[#allocation8 + $0xe8] sm:$0xff]  ;;  %v202_v16 = vld [vmem:[#allocation8 + $0x1f8] sm:$0xff] }
 0x10b   :  { %1923 = vmatprep.subr.bf16.mxu0 %v5788_v21  ;;  %v1537_v21 = vld [vmem:[#allocation11 + $0x1d0] sm:$0xff]  ;;  %v5658_v23 = vcombine.high %v164_v19, %v168_v20 }
 0x10c   :  { %v5824_v26 = vcombine.high %v1537_v21, %v1541_v22  ;;  %v5823_v31 = vcombine.low %v1537_v21, %v1541_v22  ;;  %v5693_v21 = vcombine.low %v198_v15, %v202_v16 }
 0x10d   :  { %636 = vmatprep.subr.bf16.mxu1 %v5658_v23  ;;  %v205_v23 = vlaneseq }
 0x10e   :  { %1924 = vmatpush1.bf16.msra.mxu0 %v5787_v24  ;;  %v5657_v24 = vcombine.low %v164_v19, %v168_v20  ;;  %v810_v19 = vld [vmem:[#allocation10 + $0x8] sm:$0xff] }
 0x10f   :  { %1925 = vmatprep.subr.bf16.mxu0 %v5796_v25  ;;  %v5815_v25 = vcombine.low %v1529_v13, %v1533_v14  ;;  %v5677_v13 = vcombine.low %v182_v7, %v186_v8  ;;  %v5686_v14 = vcombine.high %v190_v11, %v194_v12  ;;  %v814_v20 = vld [vmem:[#allocation10 + $0x28] sm:$0xff] }
 0x110   :  { %637 = vmatpush1.bf16.msra.mxu1 %v5657_v24  ;;  %v5700_v22 = vcombine.high %v810_v19, %v814_v20  ;;  %v818_v24 = vld [vmem:[#allocation10 + $0x48] sm:$0xff] }
 0x112   :  { %1926 = vmatpush1.bf16.msra.mxu0 %v5795_v28  ;;  %v176_v28 = vld [vmem:[#allocation8 + $0x128] sm:$0xff] }
 0x113   :  { %1927 = vmatprep.subr.bf16.mxu0 %v5804_v29  ;;  %v5666_v29 = vcombine.high %v172_v27, %v176_v28  ;;  %v5665_v30 = vcombine.low %v172_v27, %v176_v28  ;;  %v7396_v28 = vshrl.u32 %v205_v23, 7 }
 0x115   :  { %638 = vmatprep.subr.bf16.mxu1 %v5666_v29  ;;  %v826_v29 = vld [vmem:[#allocation10 + $0x88] sm:$0xff] }
 0x116   :  { %1928 = vmatpush1.bf16.msra.mxu0 %v5803_v32  ;;  %639 = vmatpush1.bf16.msra.mxu1 %v5665_v30  ;;  %v180_v32 = vld [vmem:[#allocation8 + $0x148] sm:$0xff] }
 0x117   :  { %1929 = vmatprep.subr.bf16.mxu0 %v5812_v33  ;;  %v184_v33 = vld [vmem:[#allocation8 + $0x168] sm:$0xff] }
 0x118   :  { %v5674_v34 = vcombine.high %v180_v32, %v184_v33  ;;  %v5673_v35 = vcombine.low %v180_v32, %v184_v33  ;;  %v830_v30 = vld [vmem:[#allocation10 + $0xa8] sm:$0xff]  ;;  %v7400_v33 = vsub.s32 0, %v7396_v28 }
 0x119   :  { %v5716_v32 = vcombine.high %v826_v29, %v830_v30 }
 0x11a   :  { %1930 = vmatpush1.bf16.msra.mxu0 %v5811_v36  ;;  %640 = vmatprep.subr.bf16.mxu1 %v5674_v34  ;;  %v8348_v36 = vmov 0.0   ;;  %v834_v34 = vld [vmem:[#allocation10 + $0xc8] sm:$0xff] }
 0x11b   :  { %1931 = vmatprep.subr.bf16.mxu0 %v5820_v37  ;;  %641 = vmatpush1.bf16.msra.mxu1 %v5673_v35  ;;  %v188_v37 = vld [vmem:[#allocation8 + $0x188] sm:$0xff] }
 0x11c   :  { %v5682_v39 = vcombine.high %v188_v37, %v192_v38  ;;  %v838_v35 = vld [vmem:[#allocation10 + $0xe8] sm:$0xff] }
 0x11e   :  { %1932 = vmatpush1.bf16.msra.mxu0 %v5819_v41  ;;  %v5681_v41 = vcombine.low %v188_v37, %v192_v38  ;;  %642 = vmatprep.subr.bf16.mxu1 %v5682_v39  ;;  %v7405_v37 = vld [vmem:[%s8339_s4] sm:$0xff]  ;;  %v5715_v38 = vcombine.low %v826_v29, %v830_v30  ;;  %v7408_v39 = vsub.s32 1, %v7396_v28  ;;  %v828_v29 = vld [vmem:[#allocation10 + $0x98] sm:$0xff] }
 0x11f   :  { %2023 = vmatprep.subr.bf16.mxu0 %v5768_v42  ;;  %v196_v42 = vld [vmem:[#allocation8 + $0x1c8] sm:$0xff]  ;;  %v832_v30 = vld [vmem:[#allocation10 + $0xb8] sm:$0xff] }
 0x120   :  { %643 = vmatpush1.bf16.msra.mxu1 %v5681_v41  ;;  %v5724_v41 = vcombine.high %v834_v34, %v838_v35  ;;  %v212_v48 = vrot.slane %v7405_v37, %v7408_v39 }
 0x121   :  { %1950 = vmatmul.mubr.bf16.vlgmr.msra.gmra.mrb[32].mxu0 %v7380_v45 }
 0x122   :  { %2024 = vmatpush1.bf16.msra.mxu0 %v5767_v46  ;;  %1959 = vmatprep.mubr.bf16.mxu0 %v7170_v0  ;;  %v5690_v46 = vcombine.high %v196_v42, %v200_v43 }
 0x123   :  { %2025 = vmatprep.subr.bf16.mxu0 %v5776_v47  ;;  %v5689_v47 = vcombine.low %v196_v42, %v200_v43  ;;  %v208_v42 = vrot.slane %v7405_v37, %v7400_v33  ;;  %v842_v43 = vld [vmem:[#allocation10 + $0x108] sm:$0xff] }
 0x124   :  { %644 = vmatprep.subr.bf16.mxu1 %v5690_v46  ;;  %v5723_v46 = vcombine.low %v834_v34, %v838_v35  ;;  %v7442_v34 = vsub.s32 4, %v7396_v28  ;;  %v836_v35 = vld [vmem:[#allocation10 + $0xd8] sm:$0xff] }
 0x125   :  { %645 = vmatpush1.bf16.msra.mxu1 %v5689_v47 }
 0x126   :  { %2026 = vmatpush1.bf16.msra.mxu0 %v5775_v51  ;;  %v150_v51 = vld [vmem:[#allocation8 + $0x58] sm:$0xff]  ;;  %736 = vmatprep.subr.bf16.mxu1 %v5638_v49  ;;  %v5732_v49 = vcombine.high %v842_v43, %v846_v44 }
 0x127   :  { %2027 = vmatprep.subr.bf16.mxu0 %v5784_v54  ;;  %v5646_v54 = vcombine.high %v150_v51, %v154_v52  ;;  %v5645_v58 = vcombine.low %v150_v51, %v154_v52 }
 0x128   :  { %663 = vmatmul.mubr.bf16.vlgmr.msra.gmra.mrb[0].mxu1 %v6971_v57 }
 0x129   :  { %1960 = vmatmul.mubr.bf16.gmra.mrb[36].mxu0 %v7384_v62  ;;  %737 = vmatpush1.bf16.msra.mxu1 %v5637_v53  ;;  %v850_v53 = vld [vmem:[#allocation10 + $0x148] sm:$0xff] }
 0x12a   :  { %2028 = vmatpush1.bf16.msra.mxu0 %v5783_v63  ;;  %2055 = vmatprep.mubr.bf16.mxu0 %v7170_v0  ;;  %v5653_v63 = vcombine.low %v158_v55, %v162_v56 }
 0x12b   :  { %2029 = vmatprep.subr.bf16.mxu0 %v5792_v1  ;;  %672 = vmatprep.mubr.bf16.mxu1 %v7170_v0  ;;  %v5662_v1 = vcombine.high %v166_v60, %v170_v61 }
 0x12c   :  { %738 = vmatprep.subr.bf16.mxu1 %v5646_v54  ;;  %v854_v54 = vld [vmem:[#allocation10 + $0x168] sm:$0xff] }
 0x12d   :  { %739 = vmatpush1.bf16.msra.mxu1 %v5645_v58  ;;  %v5731_v58 = vcombine.low %v842_v43, %v846_v44  ;;  %v224_v44 = vrot.slane %v7405_v37, %v7442_v34 }
 0x12e   :  { %2030 = vmatpush1.bf16.msra.mxu0 %v5791_v5  ;;  %740 = vmatprep.subr.bf16.mxu1 %v5654_v59  ;;  %v5661_v5 = vcombine.low %v166_v60, %v170_v61  ;;  %v5740_v61 = vcombine.high %v850_v53, %v854_v54 }
 0x12f   :  { %2031 = vmatprep.subr.bf16.mxu0 %v5800_v6  ;;  %v5670_v6 = vcombine.high %v174_v2, %v178_v3 }
 0x130   :  { %673 = vmatmul.mubr.bf16.gmra.mrb[4].mxu1 %v6972_v4 }
 0x131   :  { %741 = vmatpush1.bf16.msra.mxu1 %v5653_v63  ;;  %768 = vmatprep.mubr.bf16.mxu1 %v7170_v0 }
 0x132   :  { %2032 = vmatpush1.bf16.msra.mxu0 %v5799_v9  ;;  %742 = vmatprep.subr.bf16.mxu1 %v5662_v1  ;;  %v5669_v9 = vcombine.low %v174_v2, %v178_v3  ;;  %v858_v1 = vld [vmem:[#allocation10 + $0x188] sm:$0xff] }
 0x133   :  { %2033 = vmatprep.subr.bf16.mxu0 %v5808_v10  ;;  %v5678_v10 = vcombine.high %v182_v7, %v186_v8  ;;  %v862_v2 = vld [vmem:[#allocation10 + $0x1a8] sm:$0xff] }
 0x135   :  { %743 = vmatpush1.bf16.msra.mxu1 %v5661_v5 }
 0x136   :  { %2034 = vmatpush1.bf16.msra.mxu0 %v5807_v17  ;;  %744 = vmatprep.subr.bf16.mxu1 %v5670_v6  ;;  %v5685_v17 = vcombine.low %v190_v11, %v194_v12  ;;  %v5748_v6 = vcombine.high %v858_v1, %v862_v2 }
 0x137   :  { %2035 = vmatprep.subr.bf16.mxu0 %v5816_v18  ;;  %v5694_v18 = vcombine.high %v198_v15, %v202_v16  ;;  %v5747_v15 = vcombine.low %v858_v1, %v862_v2 }
 0x139   :  { %745 = vmatpush1.bf16.msra.mxu1 %v5669_v9  ;;  %v866_v9 = vld [vmem:[#allocation10 + $0x1c8] sm:$0xff] }
 0x13a   :  { %2036 = vmatpush1.bf16.msra.mxu0 %v5815_v25  ;;  %746 = vmatprep.subr.bf16.mxu1 %v5678_v10  ;;  %v822_v25 = vld [vmem:[#allocation10 + $0x68] sm:$0xff] }
 0x13b   :  { %2037 = vmatprep.subr.bf16.mxu0 %v5824_v26  ;;  %v5699_v26 = vcombine.low %v810_v19, %v814_v20  ;;  %v5708_v27 = vcombine.high %v818_v24, %v822_v25  ;;  %v870_v10 = vld [vmem:[#allocation10 + $0x1e8] sm:$0xff]  ;;  %v812_v19 = vld [vmem:[#allocation10 + $0x18] sm:$0xff] }
 0x13c   :  { %v816_v20 = vld [vmem:[#allocation10 + $0x38] sm:$0xff] }
 0x13d   :  { %747 = vmatpush1.bf16.msra.mxu1 %v5677_v13  ;;  %v5704_v23 = vcombine.high %v812_v19, %v816_v20 }
 0x13e   :  { %2038 = vmatpush1.bf16.msra.mxu0 %v5823_v31  ;;  %748 = vmatprep.subr.bf16.mxu1 %v5686_v14  ;;  %v5707_v31 = vcombine.low %v818_v24, %v822_v25  ;;  %v820_v24 = vld [vmem:[#allocation10 + $0x58] sm:$0xff] }
 0x13f   :  { %6180 = vmatprep.subr.bf16.mxu0 %v8348_v36  ;;  %v824_v25 = vld [vmem:[#allocation10 + $0x78] sm:$0xff] }
 0x141   :  { %2056 = vmatmul.mubr.bf16.vlgmr.msra.gmra.mrb[40].mxu0 %v7380_v45  ;;  %749 = vmatpush1.bf16.msra.mxu1 %v5685_v17  ;;  %v5756_v17 = vcombine.high %v866_v9, %v870_v10 }
 0x142   :  { %2065 = vmatprep.mubr.bf16.mxu0 %v7170_v0  ;;  %750 = vmatprep.subr.bf16.mxu1 %v5694_v18 }
 0x145   :  { %751 = vmatpush1.bf16.msra.mxu1 %v5693_v21 }
 0x146   :  { %1300 = vmatprep.subr.bf16.mxu1 %v5700_v22  ;;  %v5755_v22 = vcombine.low %v866_v9, %v870_v10  ;;  %v860_v10 = vld [vmem:[#allocation10 + $0x198] sm:$0xff] }
 0x148   :  { %769 = vmatmul.mubr.bf16.vlgmr.msra.gmra.mrb[8].mxu1 %v6971_v57 }
 0x149   :  { %2066 = vmatmul.mubr.bf16.gmra.mrb[44].mxu0 %v7384_v62  ;;  %1301 = vmatpush1.bf16.msra.mxu1 %v5699_v26  ;;  %v5703_v26 = vcombine.low %v812_v19, %v816_v20 }
 0x14a   :  { %6182 = vmatprep.mubr.msk.bf16.mxu0 %vm7172_vm0, %v8348_v36  ;;  %778 = vmatprep.mubr.bf16.mxu1 %v7170_v0 }
 0x14b   :  { %1302 = vmatprep.subr.bf16.mxu1 %v5708_v27  ;;  %v5712_v27 = vcombine.high %v820_v24, %v824_v25 }
 0x14d   :  { %1303 = vmatpush1.bf16.msra.mxu1 %v5707_v31  ;;  %v5711_v31 = vcombine.low %v820_v24, %v824_v25  ;;  %v872_v24 = vld [vmem:[#allocation10 + $0x1f8] sm:$0xff] }
 0x14e   :  { %1304 = vmatprep.subr.bf16.mxu1 %v5716_v32  ;;  %v5720_v32 = vcombine.high %v828_v29, %v832_v30 }
 0x150   :  { %779 = vmatmul.mubr.bf16.gmra.mrb[12].mxu1 %v6972_v4  ;;  %v5739_v4 = vcombine.low %v850_v53, %v854_v54 }
 0x151   :  { %1305 = vmatpush1.bf16.msra.mxu1 %v5715_v38  ;;  %1332 = vmatprep.mubr.bf16.mxu1 %v7170_v0  ;;  %v840_v38 = vld [vmem:[#allocation10 + $0xf8] sm:$0xff] }
 0x152   :  { %1306 = vmatprep.subr.bf16.mxu1 %v5724_v41  ;;  %v5719_v41 = vcombine.low %v828_v29, %v832_v30  ;;  %v5728_v43 = vcombine.high %v836_v35, %v840_v38 }
 0x155   :  { %1307 = vmatpush1.bf16.msra.mxu1 %v5723_v46  ;;  %v844_v46 = vld [vmem:[#allocation10 + $0x118] sm:$0xff] }
 0x156   :  { %1308 = vmatprep.subr.bf16.mxu1 %v5732_v49 }
 0x159   :  { %1309 = vmatpush1.bf16.msra.mxu1 %v5731_v58  ;;  %v856_v58 = vld [vmem:[#allocation10 + $0x178] sm:$0xff] }
 0x15a   :  { %1310 = vmatprep.subr.bf16.mxu1 %v5740_v61 }
 0x15d   :  { %1311 = vmatpush1.bf16.msra.mxu1 %v5739_v4 }
 0x15e   :  { %1312 = vmatprep.subr.bf16.mxu1 %v5748_v6 }
 0x161   :  { %1313 = vmatpush1.bf16.msra.mxu1 %v5747_v15 }
 0x162   :  { %1314 = vmatprep.subr.bf16.mxu1 %v5756_v17 }
 0x165   :  { %1315 = vmatpush1.bf16.msra.mxu1 %v5755_v22 }
 0x166   :  { %1406 = vmatprep.subr.bf16.mxu1 %v5704_v23  ;;  %v868_v23 = vld [vmem:[#allocation10 + $0x1d8] sm:$0xff] }
 0x168   :  { %1333 = vmatmul.mubr.bf16.vlgmr.msra.gmra.mrb[16].mxu1 %v7368_v40 }
 0x169   :  { %1407 = vmatpush1.bf16.msra.mxu1 %v5703_v26  ;;  %1342 = vmatprep.mubr.bf16.mxu1 %v7170_v0 }
 0x16a   :  { %1408 = vmatprep.subr.bf16.mxu1 %v5712_v27 }
 0x16d   :  { %1409 = vmatpush1.bf16.msra.mxu1 %v5711_v31 }
 0x16e   :  { %1410 = vmatprep.subr.bf16.mxu1 %v5720_v32  ;;  %v5760_v32 = vcombine.high %v868_v23, %v872_v24 }
 0x170   :  { %1343 = vmatmul.mubr.bf16.gmra.mrb[20].mxu1 %v7372_v50 }
 0x171   :  { %1411 = vmatpush1.bf16.msra.mxu1 %v5719_v41  ;;  %1438 = vmatprep.mubr.bf16.mxu1 %v7170_v0  ;;  %v1484_v41 = vld [vmem:[#allocation11 + $0x28] sm:$0xff] }
 0x172   :  { %1412 = vmatprep.subr.bf16.mxu1 %v5728_v43 }
 0x174   :  { %v611_v47 = vpop.f32.mrb[0].mxu0 }
 0x175   :  { %v7415_v51 = vadd.f32 %v611_v47, %v208_v42  ;;  %v613_v52 = vpop.f32.mrb[1].mxu0  ;;  %v848_v47 = vld [vmem:[#allocation10 + $0x138] sm:$0xff] }
 0x176   :  { %v615_v55 = vpop.f32.mrb[2].mxu0  ;;  %v7419_v59 = vadd.f32 %v613_v52, %v212_v48  ;;  %v5736_v53 = vcombine.high %v844_v46, %v848_v47  ;;  %v5735_v4 = vcombine.low %v844_v46, %v848_v47  ;;  %v5759_v46 = vcombine.low %v868_v23, %v872_v24  ;;  %v1488_v47 = vld [vmem:[#allocation11 + $0x48] sm:$0xff] }
 0x177   :  { %v7417_v56 = vadd.f32 %v615_v55, %v208_v42  ;;  %v617_v57 = vpop.f32.mrb[3].mxu0 }
 0x178   :  { %v7421_v60 = vadd.f32 %v617_v57, %v212_v48  ;;  %v852_v57 = vld [vmem:[#allocation10 + $0x158] sm:$0xff] }
 0x179   :  { %v789_v63 = vpack.c.bf16 %v7417_v56, %v7415_v51  ;;  %v5743_v15 = vcombine.low %v852_v57, %v856_v58 }
 0x17a   :  { %v790_v3 = vpack.c.bf16 %v7421_v60, %v7419_v59 }
 0x17c   :  { %v621_v5 = vpop.f32.mrb[4].mxu0 }
 0x17d   :  { %v7427_v7 = vadd.f32 %v621_v5, %v208_v42  ;;  %v623_v8 = vpop.f32.mrb[5].mxu0 }
 0x17e   :  { %v7429_v11 = vadd.f32 %v623_v8, %v212_v48  ;;  %v625_v12 = vpop.f32.mrb[6].mxu0  ;;  %v5744_v8 = vcombine.high %v852_v57, %v856_v58 }
 0x17f   :  { %v7431_v13 = vadd.f32 %v625_v12, %v208_v42  ;;  %v627_v14 = vpop.f32.mrb[7].mxu0  ;;  %v7445_v42 = vsub.s32 5, %v7396_v28  ;;  %v864_v12 = vld [vmem:[#allocation10 + $0x1b8] sm:$0xff] }
 0x180   :  { %8386 = vst [vmem:[#allocation20_spill] sm:$0xff] %v7429_v11  ;;  %v7433_v16 = vadd.f32 %v627_v14, %v212_v48  ;;  %v5727_v48 = vcombine.low %v836_v35, %v840_v38  ;;  %v5752_v19 = vcombine.high %v860_v10, %v864_v12  ;;  %v5751_v30 = vcombine.low %v860_v10, %v864_v12  ;;  %v1480_v38 = vld [vmem:[#allocation11 + $0x8] sm:$0xff] }
 0x181   :  { %v228_v52 = vrot.slane %v7405_v37, %v7445_v42  ;;  %v1512_v12 = vld [vmem:[#allocation11 + $0x108] sm:$0xff] }
 0x182   :  { %8387 = vst [vmem:[#allocation21_spill] sm:$0xff] %v7433_v16  ;;  %1413 = vmatpush1.bf16.msra.mxu1 %v5727_v48  ;;  %v1492_v48 = vld [vmem:[#allocation11 + $0x68] sm:$0xff] }
 0x183   :  { %1414 = vmatprep.subr.bf16.mxu1 %v5736_v53  ;;  %v1496_v53 = vld [vmem:[#allocation11 + $0x88] sm:$0xff]  ;;  %v5773_v57 = vcombine.low %v1488_v47, %v1492_v48 }
 0x186   :  { %1415 = vmatpush1.bf16.msra.mxu1 %v5735_v4 }
 0x187   :  { %1416 = vmatprep.subr.bf16.mxu1 %v5744_v8  ;;  %v7482_v8 = vld [vmem:[%s8341_s6] sm:$0xff] }
 0x18a   :  { %1417 = vmatpush1.bf16.msra.mxu1 %v5743_v15  ;;  %v1516_v15 = vld [vmem:[#allocation11 + $0x128] sm:$0xff] }
 0x18b   :  { %1418 = vmatprep.subr.bf16.mxu1 %v5752_v19  ;;  %v5798_v23 = vcombine.high %v1512_v12, %v1516_v15 }
 0x18e   :  { %1419 = vmatpush1.bf16.msra.mxu1 %v5751_v30 }
 0x18f   :  { %1420 = vmatprep.subr.bf16.mxu1 %v5760_v32 }
 0x192   :  { %1421 = vmatpush1.bf16.msra.mxu1 %v5759_v46 }
 0x194   :  { %v717_v49 = vpop.f32.mrb[8].mxu0 }
 0x195   :  { %v7453_v54 = vadd.f32 %v717_v49, %v224_v44  ;;  %v719_v55 = vpop.f32.mrb[9].mxu0  ;;  %v5765_v49 = vcombine.low %v1480_v38, %v1484_v41  ;;  %1439 = vmatmul.mubr.bf16.vlgmr.msra.gmra.mrb[24].mxu1 %v7368_v40  ;;  %v878_v40 = vrot.slane %v7482_v8, %v7400_v33 }
 0x196   :  { %v721_v61 = vpop.f32.mrb[10].mxu0  ;;  %v7457_v5 = vadd.f32 %v719_v55, %v228_v52  ;;  %v1500_v55 = vld [vmem:[#allocation11 + $0xa8] sm:$0xff]  ;;  %1448 = vmatprep.mubr.bf16.mxu1 %v7170_v0 }
 0x197   :  { %v7455_v1 = vadd.f32 %v721_v61, %v224_v44  ;;  %v723_v2 = vpop.f32.mrb[11].mxu0  ;;  %v5782_v58 = vcombine.high %v1496_v53, %v1500_v55  ;;  %v1504_v61 = vld [vmem:[#allocation11 + $0xc8] sm:$0xff]  ;;  %v5781_v4 = vcombine.low %v1496_v53, %v1500_v55 }
 0x198   :  { %v7459_v6 = vadd.f32 %v723_v2, %v228_v52  ;;  %v1508_v2 = vld [vmem:[#allocation11 + $0xe8] sm:$0xff] }
 0x199   :  { %v5790_v10 = vcombine.high %v1504_v61, %v1508_v2 }
 0x19c   :  { %v727_v17 = vpop.f32.mrb[12].mxu0 }
 0x19d   :  { %v7465_v20 = vadd.f32 %v727_v17, %v224_v44  ;;  %v729_v22 = vpop.f32.mrb[13].mxu0  ;;  %1449 = vmatmul.mubr.bf16.gmra.mrb[28].mxu1 %v7372_v50  ;;  %v5789_v17 = vcombine.low %v1504_v61, %v1508_v2 }
 0x19e   :  { %v7467_v25 = vadd.f32 %v729_v22, %v228_v52  ;;  %v731_v26 = vpop.f32.mrb[14].mxu0  ;;  %2002 = vmatprep.mubr.bf16.mxu1 %v7170_v0  ;;  %v882_v22 = vrot.slane %v7482_v8, %v7408_v39 }
 0x19f   :  { %8388 = vst [vmem:[#allocation22_spill] sm:$0xff] %v7465_v20  ;;  %v7469_v27 = vadd.f32 %v731_v26, %v224_v44  ;;  %v733_v29 = vpop.f32.mrb[15].mxu0  ;;  %v5766_v44 = vcombine.high %v1480_v38, %v1484_v41  ;;  %v1520_v26 = vld [vmem:[#allocation11 + $0x148] sm:$0xff]  ;;  %v5797_v41 = vcombine.low %v1512_v12, %v1516_v15 }
 0x1a0   :  { %8389 = vst [vmem:[#allocation23_spill] sm:$0xff] %v7467_v25  ;;  %v7471_v31 = vadd.f32 %v733_v29, %v228_v52  ;;  %v5774_v52 = vcombine.high %v1488_v47, %v1492_v48  ;;  %v1524_v29 = vld [vmem:[#allocation11 + $0x168] sm:$0xff] }
 0x1a1   :  { %8390 = vst [vmem:[#allocation24_spill] sm:$0xff] %v7469_v27  ;;  %1970 = vmatprep.subr.bf16.mxu1 %v5766_v44  ;;  %v5806_v47 = vcombine.high %v1520_v26, %v1524_v29  ;;  %v5805_v55 = vcombine.low %v1520_v26, %v1524_v29 }
 0x1a2   :  { %8391 = vst [vmem:[#allocation25_spill] sm:$0xff] %v7471_v31  ;;  %1971 = vmatpush1.bf16.msra.mxu1 %v5765_v49  ;;  %v1528_v49 = vld [vmem:[#allocation11 + $0x188] sm:$0xff]  ;;  %v8407_v31 = vmov 0.0  }
 0x1a3   :  { %1972 = vmatprep.subr.bf16.mxu1 %v5774_v52  ;;  %v1532_v52 = vld [vmem:[#allocation11 + $0x1a8] sm:$0xff] }
 0x1a6   :  { %1973 = vmatpush1.bf16.msra.mxu1 %v5773_v57 }
 0x1a7   :  { %1974 = vmatprep.subr.bf16.mxu1 %v5782_v58  ;;  %v5814_v58 = vcombine.high %v1528_v49, %v1532_v52 }
 0x1aa   :  { %1975 = vmatpush1.bf16.msra.mxu1 %v5781_v4  ;;  %v1536_v4 = vld [vmem:[#allocation11 + $0x1c8] sm:$0xff] }
 0x1ab   :  { %1976 = vmatprep.subr.bf16.mxu1 %v5790_v10  ;;  %v1540_v10 = vld [vmem:[#allocation11 + $0x1e8] sm:$0xff] }
 0x1ac   :  { %v5822_v26 = vcombine.high %v1536_v4, %v1540_v10 }
 0x1ae   :  { %1977 = vmatpush1.bf16.msra.mxu1 %v5789_v17 }
 0x1af   :  { %1978 = vmatprep.subr.bf16.mxu1 %v5798_v23  ;;  %v5813_v23 = vcombine.low %v1528_v49, %v1532_v52  ;;  %v1498_v49 = vld [vmem:[#allocation11 + $0x98] sm:$0xff] }
 0x1b0   :  { %v1502_v52 = vld [vmem:[#allocation11 + $0xb8] sm:$0xff] }
 0x1b1   :  { %v5786_v56 = vcombine.high %v1498_v49, %v1502_v52 }
 0x1b2   :  { %1979 = vmatpush1.bf16.msra.mxu1 %v5797_v41  ;;  %v1494_v41 = vld [vmem:[#allocation11 + $0x78] sm:$0xff] }
 0x1b3   :  { %1980 = vmatprep.subr.bf16.mxu1 %v5806_v47 }
 0x1b4   :  { %v1281_v19 = vpop.f32.mrb[16].mxu0 }
 0x1b5   :  { %v1283_v24 = vpop.f32.mrb[17].mxu0  ;;  %v1282_v32 = vadd.f32 %v1281_v19, %v878_v40 }
 0x1b6   :  { %v1285_v30 = vpop.f32.mrb[18].mxu0  ;;  %v7490_v46 = vadd.f32 %v1283_v24, %v882_v22  ;;  %1981 = vmatpush1.bf16.msra.mxu1 %v5805_v55  ;;  %v1510_v55 = vld [vmem:[#allocation11 + $0xf8] sm:$0xff] }
 0x1b7   :  { %v1286_v38 = vadd.f32 %v1285_v30, %v878_v40  ;;  %v1287_v50 = vpop.f32.mrb[19].mxu0  ;;  %1982 = vmatprep.subr.bf16.mxu1 %v5814_v58  ;;  %v1482_v30 = vld [vmem:[#allocation11 + $0x18] sm:$0xff] }
 0x1b8   :  { %v7492_v44 = vadd.f32 %v1287_v50, %v882_v22  ;;  %v1490_v50 = vld [vmem:[#allocation11 + $0x58] sm:$0xff] }
 0x1b9   :  { %v1459_v48 = vpack.c.bf16 %v1286_v38, %v1282_v32  ;;  %v1486_v32 = vld [vmem:[#allocation11 + $0x38] sm:$0xff]  ;;  %v5821_v38 = vcombine.low %v1536_v4, %v1540_v10  ;;  %v5777_v51 = vcombine.low %v1490_v50, %v1494_v41 }
 0x1ba   :  { %v1460_v53 = vpack.c.bf16 %v7492_v44, %v7490_v46  ;;  %1983 = vmatpush1.bf16.msra.mxu1 %v5813_v23  ;;  %v5769_v47 = vcombine.low %v1482_v30, %v1486_v32  ;;  %v1514_v4 = vld [vmem:[#allocation11 + $0x118] sm:$0xff] }
 0x1bb   :  { %6181 = vmatpush3.bf16.xpose.msra.mxu0 %v1459_v48  ;;  %1984 = vmatprep.subr.bf16.mxu1 %v5822_v26  ;;  %v5778_v48 = vcombine.high %v1490_v50, %v1494_v41  ;;  %v1518_v10 = vld [vmem:[#allocation11 + $0x138] sm:$0xff] }
 0x1bc   :  { %v1291_v57 = vpop.f32.mrb[20].mxu0  ;;  %6186 = vmatprep.subr.bf16.mxu0 %v8348_v36  ;;  %v5802_v26 = vcombine.high %v1514_v4, %v1518_v10 }
 0x1bd   :  { %v7497_v61 = vadd.f32 %v1291_v57, %v878_v40  ;;  %v1293_v2 = vpop.f32.mrb[21].mxu0  ;;  %v5785_v57 = vcombine.low %v1498_v49, %v1502_v52  ;;  %v5801_v49 = vcombine.low %v1514_v4, %v1518_v10  ;;  %v1538_v10 = vld [vmem:[#allocation11 + $0x1d8] sm:$0xff] }
 0x1be   :  { %v7499_v12 = vadd.f32 %v1293_v2, %v882_v22  ;;  %v1295_v15 = vpop.f32.mrb[22].mxu0  ;;  %1985 = vmatpush1.bf16.msra.mxu1 %v5821_v38  ;;  %v894_v2 = vrot.slane %v7482_v8, %v7442_v34  ;;  %v1522_v38 = vld [vmem:[#allocation11 + $0x158] sm:$0xff] }
 0x1bf   :  { %v7501_v17 = vadd.f32 %v1295_v15, %v878_v40  ;;  %v1297_v19 = vpop.f32.mrb[23].mxu0  ;;  %v898_v15 = vrot.slane %v7482_v8, %v7445_v42 }
 0x1c0   :  { %8392 = vst [vmem:[#allocation26_spill] sm:$0xff] %v7499_v12  ;;  %v7503_v24 = vadd.f32 %v1297_v19, %v882_v22  ;;  %v5770_v22 = vcombine.high %v1482_v30, %v1486_v32 }
 0x1c1   :  { %2003 = vmatmul.mubr.bf16.vlgmr.msra.gmra.mrb[32].mxu1 %v7380_v45 }
 0x1c2   :  { %6183 = vmatmul.mubr.bf16.vlgmr.msra.gmra.mrb[48].mxu0 %v789_v63  ;;  %2076 = vmatprep.subr.bf16.mxu1 %v5770_v22  ;;  %v1506_v63 = vld [vmem:[#allocation11 + $0xd8] sm:$0xff] }
 0x1c3   :  { %6188 = vmatprep.mubr.msk.bf16.mxu0 %vm7172_vm0, %v8348_v36  ;;  %2077 = vmatpush1.bf16.msra.mxu1 %v5769_v47  ;;  %v5794_v58 = vcombine.high %v1506_v63, %v1510_v55  ;;  %v5793_v19 = vcombine.low %v1506_v63, %v1510_v55  ;;  %v1526_v22 = vld [vmem:[#allocation11 + $0x178] sm:$0xff] }
 0x1c4   :  { %2012 = vmatprep.mubr.bf16.mxu1 %v7170_v0  ;;  %2078 = vmatprep.subr.bf16.mxu1 %v5778_v48  ;;  %v1530_v63 = vld [vmem:[#allocation11 + $0x198] sm:$0xff] }
 0x1c5   :  { %v1534_v55 = vld [vmem:[#allocation11 + $0x1b8] sm:$0xff] }
 0x1c6   :  { %v5817_v21 = vcombine.low %v1530_v63, %v1534_v55 }
 0x1c7   :  { %2079 = vmatpush1.bf16.msra.mxu1 %v5777_v51  ;;  %v5810_v51 = vcombine.high %v1522_v38, %v1526_v22 }
 0x1c8   :  { %2080 = vmatprep.subr.bf16.mxu1 %v5786_v56 }
 0x1c9   :  { %2013 = vmatmul.mubr.bf16.gmra.mrb[36].mxu1 %v7384_v62 }
 0x1ca   :  { %2108 = vmatprep.mubr.bf16.mxu1 %v7170_v0 }
 0x1cb   :  { %2081 = vmatpush1.bf16.msra.mxu1 %v5785_v57 }
 0x1cc   :  { %2082 = vmatprep.subr.bf16.mxu1 %v5794_v58  ;;  %v5809_v58 = vcombine.low %v1522_v38, %v1526_v22 }
 0x1cf   :  { %2083 = vmatpush1.bf16.msra.mxu1 %v5793_v19  ;;  %v1542_v19 = vld [vmem:[#allocation11 + $0x1f8] sm:$0xff] }
 0x1d0   :  { %2084 = vmatprep.subr.bf16.mxu1 %v5802_v26  ;;  %v5826_v38 = vcombine.high %v1538_v10, %v1542_v19 }
 0x1d3   :  { %2085 = vmatpush1.bf16.msra.mxu1 %v5801_v49 }
 0x1d4   :  { %v1387_v23 = vpop.f32.mrb[24].mxu0  ;;  %2086 = vmatprep.subr.bf16.mxu1 %v5810_v51  ;;  %v5825_v51 = vcombine.low %v1538_v10, %v1542_v19 }
 0x1d5   :  { %v7522_v30 = vadd.f32 %v1387_v23, %v894_v2  ;;  %v1389_v32 = vpop.f32.mrb[25].mxu0 }
 0x1d6   :  { %v7524_v50 = vadd.f32 %v1389_v32, %v898_v15  ;;  %v1391_v41 = vpop.f32.mrb[26].mxu0  ;;  %v5818_v32 = vcombine.high %v1530_v63, %v1534_v55 }
 0x1d7   :  { %v7526_v47 = vadd.f32 %v1391_v41, %v894_v2  ;;  %v1393_v48 = vpop.f32.mrb[27].mxu0  ;;  %2087 = vmatpush1.bf16.msra.mxu1 %v5809_v58 }
 0x1d8   :  { %v7528_v52 = vadd.f32 %v1393_v48, %v898_v15  ;;  %2088 = vmatprep.subr.bf16.mxu1 %v5818_v32 }
 0x1db   :  { %2089 = vmatpush1.bf16.msra.mxu1 %v5817_v21 }
 0x1dc   :  { %v1397_v23 = vpop.f32.mrb[28].mxu0  ;;  %2090 = vmatprep.subr.bf16.mxu1 %v5826_v38 }
 0x1dd   :  { %v7534_v41 = vadd.f32 %v1397_v23, %v894_v2  ;;  %v1399_v4 = vpop.f32.mrb[29].mxu0 }
 0x1de   :  { %v7536_v26 = vadd.f32 %v1399_v4, %v898_v15  ;;  %v1401_v48 = vpop.f32.mrb[30].mxu0 }
 0x1df   :  { %8393 = vst [vmem:[#allocation27_spill] sm:$0xff] %v7534_v41  ;;  %v7538_v43 = vadd.f32 %v1401_v48, %v894_v2  ;;  %v1403_v35 = vpop.f32.mrb[31].mxu0  ;;  %2091 = vmatpush1.bf16.msra.mxu1 %v5825_v51 }
 0x1e0   :  { %8394 = vst [vmem:[#allocation28_spill] sm:$0xff] %v7536_v26  ;;  %v7540_v40 = vadd.f32 %v1403_v35, %v898_v15  ;;  %6198 = vmatprep.subr.bf16.mxu1 %v8348_v36  ;;  %v7552_v35 = vld [vmem:[%s8343_s8] sm:$0xff] }
 0x1e1   :  { %8395 = vst [vmem:[#allocation29_spill] sm:$0xff] %v7538_v43  ;;  %v1548_v2 = vrot.slane %v7552_v35, %v7400_v33  ;;  %v1552_v21 = vrot.slane %v7552_v35, %v7408_v39 }
 0x1e2   :  { %8396 = vst [vmem:[#allocation30_spill] sm:$0xff] %v7540_v40  ;;  %2109 = vmatmul.mubr.bf16.vlgmr.msra.gmra.mrb[40].mxu1 %v7380_v45 }
 0x1e3   :  { %2118 = vmatprep.mubr.bf16.mxu1 %v7170_v0 }
 0x1ea   :  { %2119 = vmatmul.mubr.bf16.gmra.mrb[44].mxu1 %v7384_v62 }
 0x1eb   :  { %6200 = vmatprep.mubr.msk.bf16.mxu1 %vm7172_vm0, %v8348_v36 }
 0x1f4   :  { %v1951_v15 = vpop.f32.mrb[32].mxu0 }
 0x1f5   :  { %v1952_v45 = vadd.f32 %v1951_v15, %v1548_v2  ;;  %v1953_v63 = vpop.f32.mrb[33].mxu0 }
 0x1f6   :  { %v1954_v0 = vadd.f32 %v1953_v63, %v1552_v21  ;;  %v1955_v55 = vpop.f32.mrb[34].mxu0 }
 0x1f7   :  { %v1956_v58 = vadd.f32 %v1955_v55, %v1548_v2  ;;  %v1957_v23 = vpop.f32.mrb[35].mxu0  ;;  %v1568_v55 = vrot.slane %v7552_v35, %v7445_v42 }
 0x1f8   :  { %v1958_v32 = vadd.f32 %v1957_v23, %v1552_v21 }
 0x1f9   :  { %v2129_v4 = vpack.c.bf16 %v1956_v58, %v1952_v45 }
 0x1fa   :  { %v2130_v10 = vpack.c.bf16 %v1958_v32, %v1954_v0  ;;  %v1564_v0 = vrot.slane %v7552_v35, %v7442_v34 }
 0x1fb   :  { %6187 = vmatpush3.bf16.msra.mxu0 %v2129_v4 }
 0x1fc   :  { %6199 = vmatpush3.bf16.msra.mxu1 %v2130_v10  ;;  %v1961_v33 = vpop.f32.mrb[36].mxu0  ;;  %6192 = vmatprep.subr.bf16.mxu0 %v8348_v36 }
 0x1fd   :  { %v7562_v39 = vadd.f32 %v1961_v33, %v1548_v2  ;;  %v1963_v62 = vpop.f32.mrb[37].mxu0  ;;  %6224 = vmatprep.subr.bf16.mxu1 %v8348_v36 }
 0x1fe   :  { %v7565_v19 = vadd.f32 %v1963_v62, %v1552_v21  ;;  %v1965_v48 = vpop.f32.mrb[38].mxu0 }
 0x1ff   :  { %v7567_v38 = vadd.f32 %v1965_v48, %v1548_v2  ;;  %v1967_v51 = vpop.f32.mrb[39].mxu0 }
 0x200   :  { %8397 = vst [vmem:[#allocation31_spill] sm:$0xff] %v7565_v19  ;;  %v7569_v15 = vadd.f32 %v1967_v51, %v1552_v21 }
 0x202   :  { %8398 = vst [vmem:[#allocation32_spill] sm:$0xff] %v7569_v15 }
 0x214   :  { %v2057_v58 = vpop.f32.mrb[40].mxu0 }
 0x215   :  { %v7579_v23 = vadd.f32 %v2057_v58, %v1564_v0  ;;  %v2059_v2 = vpop.f32.mrb[41].mxu0 }
 0x216   :  { %v7581_v32 = vadd.f32 %v2059_v2, %v1568_v55  ;;  %v2061_v21 = vpop.f32.mrb[42].mxu0 }
 0x217   :  { %v7583_v4 = vadd.f32 %v2061_v21, %v1564_v0  ;;  %v2063_v10 = vpop.f32.mrb[43].mxu0 }
 0x218   :  { %v7585_v33 = vadd.f32 %v2063_v10, %v1568_v55 }
 0x21c   :  { %v2067_v48 = vpop.f32.mrb[44].mxu0 }
 0x21d   :  { %v7591_v42 = vadd.f32 %v2067_v48, %v1564_v0  ;;  %v2069_v51 = vpop.f32.mrb[45].mxu0 }
 0x21e   :  { %v7593_v58 = vadd.f32 %v2069_v51, %v1568_v55  ;;  %v2071_v2 = vpop.f32.mrb[46].mxu0 }
 0x21f   :  { %8399 = vst [vmem:[#allocation33_spill] sm:$0xff] %v7591_v42  ;;  %v7595_v49 = vadd.f32 %v2071_v2, %v1564_v0  ;;  %v2073_v21 = vpop.f32.mrb[47].mxu0 }
 0x220   :  { %8400 = vst [vmem:[#allocation34_spill] sm:$0xff] %v7593_v58  ;;  %v7597_v22 = vadd.f32 %v2073_v21, %v1568_v55 }
 0x221   :  { %8401 = vst [vmem:[#allocation35_spill] sm:$0xff] %v7595_v49 }
 0x222   :  { %8402 = vst [vmem:[#allocation36_spill] sm:$0xff] %v7597_v22 }
 0x295   :  { %v2180_v45 = vpop.f32.mrb[48].mxu0 }
 0x296   :  { %v6184_v18 = vpop.f32.mrb[49].mxu0  ;;  %v2188_v48 = vsel %vm2187_vm1, %v2180_v45, -inf }
 0x297   :  { %2189 = vmax.xlane.f32.xlu0 %v2188_v48  ;;  %v2183_v51 = vpop.f32.mrb[50].mxu0 }
 0x298   :  { %v6185_v29 = vpop.f32.mrb[51].mxu0  ;;  %v2191_v0 = vsel %vm2187_vm1, %v2183_v51, -inf }
 0x29b   :  { %2192 = vmax.xlane.f32.xlu0 %v2191_v0 }
 0x324   :  { %v2190_v2 = vpop.xlane.xlu0 %2189 }
 0x325   :  { %v2194_v55 = vsub.f32 %v2180_v45, %v2190_v2 }
 0x327   :  { %v2196_v21 = vmul.f32 1.442695, %v2194_v55 }
 0x328   :  { %v2193_v34 = vpop.xlane.xlu0 %2192 }
 0x329   :  { %6843 = vpow2.f32 %v2196_v21  ;;  %v2195_v10 = vsub.f32 %v2183_v51, %v2193_v34 }
 0x32b   :  { %v2198_v14 = vmul.f32 1.442695, %v2195_v10 }
 0x32d   :  { %6845 = vpow2.f32 %v2198_v14 }
 0x333   :  { %v6844_v63 = vpop.eup %6843 }
 0x334   :  { %v2200_v57 = vsel %vm2187_vm1, %v6844_v63, 0.0 }
 0x335   :  { %2201 = vadd.xlane.f32.xlu1 %v2200_v57 }
 0x337   :  { %v6846_v18 = vpop.eup %6845 }
 0x338   :  { %v2203_v48 = vsel %vm2187_vm1, %v6846_v18, 0.0 }
 0x339   :  { %2204 = vadd.xlane.f32.xlu1 %v2203_v48 }
 0x3c2   :  { %v2202_v29 = vpop.xlane.xlu1 %2201 }
 0x3c3   :  { %6847 = vrcp.f32 %v2202_v29 }
 0x3c6   :  { %v2205_v62 = vpop.xlane.xlu1 %2204 }
 0x3c7   :  { %6849 = vrcp.f32 %v2205_v62 }
 0x3cd   :  { %v6848_v0 = vpop.eup %6847 }
 0x3ce   :  { %v2208_v2 = vmul.f32 %v6848_v0, %v6844_v63 }
 0x3d1   :  { %v6850_v45 = vpop.eup %6849 }
 0x3d2   :  { %v2209_v55 = vmul.f32 %v6850_v45, %v6846_v18 }
 0x3d4   :  { %v2210_v21 = vpack.c.bf16 %v2209_v55, %v2208_v2 }
 0x3d6   :  { %6189 = vmatmul.mubr.msk.bf16.vlgmr.msra.gmra.mrb[52].mxu0 %vm2187_vm1, %v2210_v21 }
 0x3d7   :  { %6193 = vmatpush3.bf16.xpose.msra.mxu0 %v1460_v53  ;;  %6194 = vmatprep.mubr.msk.bf16.mxu0 %vm7172_vm0, %v8348_v36 }
 0x3d8   :  { %6204 = vmatprep.subr.bf16.mxu0 %v8348_v36 }
 0x3de   :  { %6195 = vmatmul.mubr.bf16.vlgmr.msra.gmra.mrb[56].mxu0 %v790_v3 }
 0x3df   :  { %6220 = vmatprep.mubr.msk.bf16.mxu0 %vm7172_vm0, %v8348_v36 }
 0x4a9   :  { %v7619_v14 = vpop.f32.mrb[52].mxu0 }
 0x4aa   :  { %v6190_v57 = vpop.f32.mrb[53].mxu0 }
 0x4ab   :  { %v7621_v63 = vpop.f32.mrb[54].mxu0  ;;  %v7636_v57 = vsub.s32 2, %v7396_v28 }
 0x4ac   :  { %v6191_v44 = vpop.f32.mrb[55].mxu0 }
 0x4ad   :  { %v664_v44 = vpop.f32.mrb[0].mxu1 }
 0x4b1   :  { %v2306_v53 = vpop.f32.mrb[56].mxu0 }
 0x4b2   :  { %v6196_v62 = vpop.f32.mrb[57].mxu0  ;;  %v2313_v34 = vsel %vm2187_vm1, %v2306_v53, -inf }
 0x4b3   :  { %2314 = vmax.xlane.f32.xlu0 %v2313_v34  ;;  %v2309_v10 = vpop.f32.mrb[58].mxu0  ;;  %v666_v62 = vpop.f32.mrb[1].mxu1  ;;  %v7642_v34 = vsub.s32 6, %v7396_v28 }
 0x4b4   :  { %v6197_v59 = vpop.f32.mrb[59].mxu0  ;;  %v2316_v60 = vsel %vm2187_vm1, %v2309_v10, -inf }
 0x4b5   :  { %2317 = vmax.xlane.f32.xlu1 %v2316_v60  ;;  %v216_v59 = vrot.slane %v7405_v37, %v7636_v57 }
 0x540   :  { %v2315_v3 = vpop.xlane.xlu0 %2314 }
 0x541   :  { %v2319_v51 = vsub.f32 %v2306_v53, %v2315_v3  ;;  %v7639_v53 = vsub.s32 3, %v7396_v28  ;;  %v668_v3 = vpop.f32.mrb[2].mxu1 }
 0x542   :  { %v2318_v18 = vpop.xlane.xlu1 %2317 }
 0x543   :  { %v2321_v48 = vmul.f32 1.442695, %v2319_v51  ;;  %v2320_v29 = vsub.f32 %v2309_v10, %v2318_v18  ;;  %v6723_v10 = vld [vmem:[#allocation13 + $0x40] sm:$0xff]   ;;  %v220_v60 = vrot.slane %v7405_v37, %v7639_v53  ;;  %v7649_v51 = vsub.s32 7, %v7396_v28  ;;  %v670_v18 = vpop.f32.mrb[3].mxu1 }
 0x544   :  { %6205 = vmatpush3.bf16.msra.mxu0 %v6723_v10  ;;  %v674_v9 = vpop.f32.mrb[4].mxu1  ;;  %v232_v28 = vrot.slane %v7405_v37, %v7642_v34 }
 0x545   :  { %6851 = vpow2.f32 %v2321_v48  ;;  %v2323_v0 = vmul.f32 1.442695, %v2320_v29  ;;  %v6724_v48 = vld [vmem:[#allocation13 + $0x48] sm:$0xff]   ;;  %v7651_v29 = vadd.f32 %v664_v44, %v216_v59  ;;  %6206 = vmatprep.subr.bf16.mxu0 %v8348_v36  ;;  %v7660_v56 = vadd.f32 %v674_v9, %v216_v59  ;;  %v676_v46 = vpop.f32.mrb[5].mxu1  ;;  %v6725_v36 = vld [vmem:[#allocation13 + $0x50] sm:$0xff]  }
 0x547   :  { %6853 = vpow2.f32 %v2323_v0  ;;  %v7653_v0 = vadd.f32 %v666_v62, %v220_v60  ;;  %8403 = vst [vmem:[#allocation37_spill] sm:$0xff] %v7660_v56  ;;  %v7668_v62 = vadd.f32 %v676_v46, %v220_v60 }
 0x548   :  { %6207 = vmatpush3.bf16.msra.mxu0 %v6724_v48 }
 0x549   :  { %8404 = vst [vmem:[#allocation38_spill] sm:$0xff] %v7668_v62  ;;  %6208 = vmatprep.subr.bf16.mxu0 %v8407_v31 }
 0x54c   :  { %6209 = vmatpush3.bf16.msra.mxu0 %v6725_v36 }
 0x54d   :  { %6210 = vmatprep.subr.bf16.mxu0 %v8407_v31 }
 0x54f   :  { %v7627_v45 = vpop.eup %6851 }
 0x550   :  { %v2325_v2 = vsel %vm2187_vm1, %v7627_v45, 0.0 }
 0x551   :  { %v7631_v55 = vpop.eup %6853  ;;  %2326 = vadd.xlane.f32.xlu0 %v2325_v2  ;;  %v7655_v2 = vadd.f32 %v668_v3, %v216_v59  ;;  %v678_v3 = vpop.f32.mrb[6].mxu1 }
 0x552   :  { %v2328_v21 = vsel %vm2187_vm1, %v7631_v55, 0.0  ;;  %v7672_v58 = vadd.f32 %v678_v3, %v216_v59  ;;  %v680_v9 = vpop.f32.mrb[7].mxu1 }
 0x553   :  { %2329 = vadd.xlane.f32.xlu1 %v2328_v21  ;;  %v7657_v21 = vadd.f32 %v670_v18, %v220_v60  ;;  %v236_v18 = vrot.slane %v7405_v37, %v7649_v51  ;;  %v7674_v22 = vadd.f32 %v680_v9, %v220_v60  ;;  %v770_v25 = vpop.f32.mrb[8].mxu1  ;;  %v6726_v60 = vld [vmem:[#allocation13 + $0x58] sm:$0xff]  }
 0x554   :  { %8405 = vst [vmem:[#allocation39_spill] sm:$0xff] %v7672_v58  ;;  %v7679_v44 = vadd.f32 %v770_v25, %v232_v28  ;;  %v772_v46 = vpop.f32.mrb[9].mxu1  ;;  %6211 = vmatpush3.bf16.msra.mxu0 %v6726_v60  ;;  %v6727_v25 = vld [vmem:[#allocation13 + $0x60] sm:$0xff]  }
 0x555   :  { %8406 = vst [vmem:[#allocation40_spill] sm:$0xff] %v7674_v22  ;;  %v7683_v37 = vadd.f32 %v772_v46, %v236_v18  ;;  %v774_v59 = vpop.f32.mrb[10].mxu1  ;;  %v886_v46 = vrot.slane %v7482_v8, %v7636_v57  ;;  %6212 = vmatprep.subr.bf16.mxu0 %v8407_v31 }
 0x556   :  { %v7685_v3 = vadd.f32 %v774_v59, %v232_v28  ;;  %v776_v48 = vpop.f32.mrb[11].mxu1 }
 0x557   :  { %v7687_v9 = vadd.f32 %v776_v48, %v236_v18  ;;  %v780_v40 = vpop.f32.mrb[12].mxu1  ;;  %v890_v48 = vrot.slane %v7482_v8, %v7639_v53 }
 0x558   :  { %v7692_v10 = vadd.f32 %v780_v40, %v232_v28  ;;  %v782_v42 = vpop.f32.mrb[13].mxu1  ;;  %6213 = vmatpush3.bf16.msra.mxu0 %v6727_v25 }
 0x559   :  { %v7698_v26 = vadd.f32 %v782_v42, %v236_v18  ;;  %v784_v36 = vpop.f32.mrb[14].mxu1  ;;  %6214 = vmatprep.subr.bf16.mxu0 %v8407_v31 }
 0x55a   :  { %8408 = vst [vmem:[#allocation41_spill] sm:$0xff] %v7692_v10  ;;  %v7702_v49 = vadd.f32 %v784_v36, %v232_v28  ;;  %v786_v20 = vpop.f32.mrb[15].mxu1 }
 0x55b   :  { %8409 = vst [vmem:[#allocation42_spill] sm:$0xff] %v7698_v26  ;;  %v7704_v40 = vadd.f32 %v786_v20, %v236_v18  ;;  %v1334_v27 = vpop.f32.mrb[16].mxu1  ;;  %v6728_v20 = vld [vmem:[#allocation13 + $0x68] sm:$0xff]  }
 0x55c   :  { %8410 = vst [vmem:[#allocation43_spill] sm:$0xff] %v7702_v49  ;;  %v7709_v59 = vadd.f32 %v1334_v27, %v886_v46  ;;  %v1336_v42 = vpop.f32.mrb[17].mxu1  ;;  %6215 = vmatpush3.bf16.msra.mxu0 %v6728_v20  ;;  %v6729_v27 = vld [vmem:[#allocation13 + $0x70] sm:$0xff]  }
 0x55d   :  { %8411 = vst [vmem:[#allocation44_spill] sm:$0xff] %v7704_v40  ;;  %v7713_v62 = vadd.f32 %v1336_v42, %v890_v48  ;;  %v1338_v28 = vpop.f32.mrb[18].mxu1  ;;  %v902_v42 = vrot.slane %v7482_v8, %v7642_v34  ;;  %6216 = vmatprep.subr.bf16.mxu0 %v8407_v31 }
 0x55e   :  { %v7715_v36 = vadd.f32 %v1338_v28, %v886_v46  ;;  %v1340_v60 = vpop.f32.mrb[19].mxu1 }
 0x55f   :  { %v7717_v18 = vadd.f32 %v1340_v60, %v890_v48  ;;  %v1344_v22 = vpop.f32.mrb[20].mxu1  ;;  %v906_v60 = vrot.slane %v7482_v8, %v7649_v51 }
 0x560   :  { %v7722_v41 = vadd.f32 %v1344_v22, %v886_v46  ;;  %v1346_v10 = vpop.f32.mrb[21].mxu1  ;;  %6217 = vmatpush3.bf16.msra.mxu0 %v6729_v27 }
 0x561   :  { %v7728_v43 = vadd.f32 %v1346_v10, %v890_v48  ;;  %v1348_v25 = vpop.f32.mrb[22].mxu1  ;;  %6218 = vmatprep.subr.bf16.mxu0 %v8407_v31 }
 0x562   :  { %8412 = vst [vmem:[#allocation45_spill] sm:$0xff] %v7722_v41  ;;  %v7732_v26 = vadd.f32 %v1348_v25, %v886_v46  ;;  %v1350_v40 = vpop.f32.mrb[23].mxu1 }
 0x563   :  { %8413 = vst [vmem:[#allocation46_spill] sm:$0xff] %v7728_v43  ;;  %v7734_v22 = vadd.f32 %v1350_v40, %v890_v48  ;;  %v1440_v49 = vpop.f32.mrb[24].mxu1  ;;  %v6730_v48 = vld [vmem:[#allocation13 + $0x78] sm:$0xff]  }
 0x564   :  { %8414 = vst [vmem:[#allocation47_spill] sm:$0xff] %v7732_v26  ;;  %v7739_v28 = vadd.f32 %v1440_v49, %v902_v42  ;;  %v1442_v10 = vpop.f32.mrb[25].mxu1  ;;  %6219 = vmatpush3.bf16.msra.mxu0 %v6730_v48 }
 0x565   :  { %8415 = vst [vmem:[#allocation48_spill] sm:$0xff] %v7734_v22  ;;  %v7743_v8 = vadd.f32 %v1442_v10, %v906_v60  ;;  %v1444_v46 = vpop.f32.mrb[26].mxu1  ;;  %v1556_v10 = vrot.slane %v7552_v35, %v7636_v57  ;;  %6244 = vmatprep.subr.bf16.mxu0 %v8407_v31  ;;  %v1572_v57 = vrot.slane %v7552_v35, %v7642_v34 }
 0x566   :  { %v7745_v25 = vadd.f32 %v1444_v46, %v902_v42  ;;  %v1446_v20 = vpop.f32.mrb[27].mxu1 }
 0x567   :  { %v7747_v40 = vadd.f32 %v1446_v20, %v906_v60  ;;  %v1450_v19 = vpop.f32.mrb[28].mxu1  ;;  %v1560_v20 = vrot.slane %v7552_v35, %v7639_v53 }
 0x568   :  { %v7752_v56 = vadd.f32 %v1450_v19, %v902_v42  ;;  %v1452_v41 = vpop.f32.mrb[29].mxu1 }
 0x569   :  { %v7758_v58 = vadd.f32 %v1452_v41, %v906_v60  ;;  %v1454_v27 = vpop.f32.mrb[30].mxu1 }
 0x56a   :  { %8416 = vst [vmem:[#allocation49_spill] sm:$0xff] %v7752_v56  ;;  %v7762_v43 = vadd.f32 %v1454_v27, %v902_v42  ;;  %v1456_v22 = vpop.f32.mrb[31].mxu1 }
 0x56b   :  { %8417 = vst [vmem:[#allocation50_spill] sm:$0xff] %v7758_v58  ;;  %v7764_v49 = vadd.f32 %v1456_v22, %v906_v60  ;;  %v2004_v19 = vpop.f32.mrb[32].mxu1 }
 0x56c   :  { %8418 = vst [vmem:[#allocation51_spill] sm:$0xff] %v7762_v43  ;;  %v7769_v26 = vadd.f32 %v2004_v19, %v1556_v10  ;;  %v2006_v41 = vpop.f32.mrb[33].mxu1 }
 0x56d   :  { %8419 = vst [vmem:[#allocation52_spill] sm:$0xff] %v7764_v49  ;;  %v7773_v15 = vadd.f32 %v2006_v41, %v1560_v20  ;;  %v2008_v53 = vpop.f32.mrb[34].mxu1 }
 0x56e   :  { %v7775_v42 = vadd.f32 %v2008_v53, %v1556_v10  ;;  %v2010_v48 = vpop.f32.mrb[35].mxu1 }
 0x56f   :  { %v7777_v60 = vadd.f32 %v2010_v48, %v1560_v20  ;;  %v2014_v22 = vpop.f32.mrb[36].mxu1  ;;  %v1576_v48 = vrot.slane %v7552_v35, %v7649_v51 }
 0x570   :  { %v7781_v11 = vadd.f32 %v2014_v22, %v1556_v10  ;;  %v2016_v19 = vpop.f32.mrb[37].mxu1 }
 0x571   :  { %v7787_v46 = vadd.f32 %v2016_v19, %v1560_v20  ;;  %v2018_v53 = vpop.f32.mrb[38].mxu1 }
 0x572   :  { %8420 = vst [vmem:[#allocation53_spill] sm:$0xff] %v7781_v11  ;;  %v7791_v58 = vadd.f32 %v2018_v53, %v1556_v10  ;;  %v2020_v49 = vpop.f32.mrb[39].mxu1 }
 0x573   :  { %8421 = vst [vmem:[#allocation54_spill] sm:$0xff] %v7787_v46  ;;  %v7793_v56 = vadd.f32 %v2020_v49, %v1560_v20  ;;  %v2110_v22 = vpop.f32.mrb[40].mxu1 }
 0x574   :  { %8422 = vst [vmem:[#allocation55_spill] sm:$0xff] %v7791_v58  ;;  %v7797_v43 = vadd.f32 %v2110_v22, %v1572_v57  ;;  %v2112_v34 = vpop.f32.mrb[41].mxu1 }
 0x575   :  { %8423 = vst [vmem:[#allocation56_spill] sm:$0xff] %v7793_v56  ;;  %v7801_v41 = vadd.f32 %v2112_v34, %v1576_v48  ;;  %v2114_v16 = vpop.f32.mrb[42].mxu1 }
 0x576   :  { %v7803_v12 = vadd.f32 %v2114_v16, %v1572_v57  ;;  %v2116_v35 = vpop.f32.mrb[43].mxu1 }
 0x577   :  { %v7805_v51 = vadd.f32 %v2116_v35, %v1576_v48  ;;  %v2120_v49 = vpop.f32.mrb[44].mxu1 }
 0x578   :  { %v7809_v20 = vadd.f32 %v2120_v49, %v1572_v57  ;;  %v2122_v53 = vpop.f32.mrb[45].mxu1 }
 0x579   :  { %v7813_v27 = vadd.f32 %v2122_v53, %v1576_v48  ;;  %v2124_v34 = vpop.f32.mrb[46].mxu1 }
 0x57a   :  { %v7815_v19 = vadd.f32 %v2124_v34, %v1572_v57  ;;  %v2126_v16 = vpop.f32.mrb[47].mxu1  ;;  %v6715_v34 = vld [vmem:[#allocation13] sm:$0xff]  }
 0x57b   :  { %v7817_v46 = vadd.f32 %v2126_v16, %v1576_v48  ;;  %v6716_v48 = vld [vmem:[#allocation13 + $0x8] sm:$0xff]   ;;  %v6717_v16 = vld [vmem:[#allocation13 + $0x10] sm:$0xff]  }
 0x57c   :  { %v2143_v35 = vpack.c.bf16 %v7815_v19, %v7809_v20  ;;  %v8499_v19 = vld [vmem:[#allocation44_spill] sm:$0xff]  ;;  %v8500_v20 = vld [vmem:[#allocation42_spill] sm:$0xff] }
 0x57d   :  { %v2144_v10 = vpack.c.bf16 %v7817_v46, %v7813_v27 }
 0x5de   :  { %v2327_v49 = vpop.xlane.xlu0 %2326 }
 0x5df   :  { %6855 = vrcp.f32 %v2327_v49  ;;  %v8425_v49 = vpack.c.bf16 %v7775_v42, %v7769_v26  ;;  %v8427_v26 = vpack.c.bf16 %v7655_v2, %v7651_v29 }
 0x5e0   :  { %v2330_v56 = vpop.xlane.xlu1 %2329 }
 0x5e1   :  { %6857 = vrcp.f32 %v2330_v56  ;;  %v6718_v56 = vld [vmem:[#allocation13 + $0x18] sm:$0xff]  }
 0x5e9   :  { %v6856_v11 = vpop.eup %6855 }
 0x5ea   :  { %v2333_v53 = vmul.f32 %v6856_v11, %v7627_v45  ;;  %v6719_v11 = vld [vmem:[#allocation13 + $0x20] sm:$0xff]   ;;  %v6721_v45 = vld [vmem:[#allocation13 + $0x30] sm:$0xff]  }
 0x5eb   :  { %v6858_v22 = vpop.eup %6857 }
 0x5ec   :  { %v2334_v57 = vmul.f32 %v6858_v22, %v7631_v55  ;;  %v6722_v55 = vld [vmem:[#allocation13 + $0x38] sm:$0xff]   ;;  %v8424_v22 = vpack.c.bf16 %v7621_v63, %v7619_v14 }
 0x5ee   :  { %v2335_v58 = vpack.c.bf16 %v2334_v57, %v2333_v53 }
 0x5f0   :  { %6201 = vmatmul.mubr.msk.bf16.vlgmr.msra.gmra.mrb[48].mxu1 %vm2187_vm1, %v2335_v58  ;;  %v6720_v58 = vld [vmem:[#allocation13 + $0x28] sm:$0xff]  }
 0x5f1   :  { %6225 = vmatpush3.bf16.msra.mxu1 %v6715_v34  ;;  %6240 = vmatprep.mubr.msk.bf16.mxu1 %vm7172_vm0, %v8407_v31 }
 0x5f2   :  { %6226 = vmatprep.subr.bf16.mxu1 %v8407_v31 }
 0x5f5   :  { %6227 = vmatpush3.bf16.msra.mxu1 %v6716_v48 }
 0x5f6   :  { %6228 = vmatprep.subr.bf16.mxu1 %v8407_v31 }
 0x5f9   :  { %6229 = vmatpush3.bf16.msra.mxu1 %v6717_v16 }
 0x5fa   :  { %6230 = vmatprep.subr.bf16.mxu1 %v8407_v31 }
 0x5fd   :  { %6231 = vmatpush3.bf16.msra.mxu1 %v6718_v56  ;;  %v8426_v56 = vpack.c.bf16 %v7715_v36, %v7709_v59 }
 0x5fe   :  { %6232 = vmatprep.subr.bf16.mxu1 %v8407_v31 }
 0x601   :  { %6233 = vmatpush3.bf16.msra.mxu1 %v6719_v11 }
 0x602   :  { %6234 = vmatprep.subr.bf16.mxu1 %v8407_v31 }
 0x605   :  { %6235 = vmatpush3.bf16.msra.mxu1 %v6720_v58 }
 0x606   :  { %6236 = vmatprep.subr.bf16.mxu1 %v8407_v31 }
 0x609   :  { %6237 = vmatpush3.bf16.msra.mxu1 %v6721_v45 }
 0x60a   :  { %6238 = vmatprep.subr.bf16.mxu1 %v8407_v31 }
 0x60d   :  { %6239 = vmatpush3.bf16.msra.mxu1 %v6722_v55 }
 0x60e   :  { %6250 = vmatprep.subr.bf16.mxu1 %v8407_v31 }
 0x610   :  { %6241 = vmatmul.mubr.bf16.vlgmr.msra.gmra.mrb[52].mxu1 %v8424_v22 }
 0x611   :  { %6251 = vmatpush3.bf16.msra.mxu1 %v8425_v49  ;;  %6252 = vmatprep.mubr.msk.bf16.mxu1 %vm7172_vm0, %v8407_v31 }
 0x612   :  { %6276 = vmatprep.subr.bf16.mxu1 %v8407_v31 }
 0x6c3   :  { %v2373_v53 = vpop.f32.mrb[48].mxu1 }
 0x6c4   :  { %v6202_v57 = vpop.f32.mrb[49].mxu1 }
 0x6c5   :  { %v2376_v34 = vpop.f32.mrb[50].mxu1 }
 0x6c6   :  { %v2380_v48 = vpack.c.bf16 %v2376_v34, %v2373_v53  ;;  %v6203_v16 = vpop.f32.mrb[51].mxu1 }
 0x6c8   :  { %6221 = vmatmul.mubr.bf16.vlgmr.msra.gmra.mrb[60].mxu0 %v2380_v48 }
 0x6c9   :  { %6245 = vmatpush3.bf16.xpose.msra.mxu0 %v8426_v56  ;;  %6246 = vmatprep.mubr.msk.bf16.mxu0 %vm7172_vm0, %v8407_v31 }
 0x6ca   :  { %6256 = vmatprep.subr.bf16.mxu0 %v8407_v31 }
 0x6d0   :  { %6247 = vmatmul.mubr.bf16.vlgmr.msra.gmra.mrb[64].mxu0 %v8427_v26 }
 0x6d1   :  { %6272 = vmatprep.mubr.msk.bf16.mxu0 %vm7172_vm0, %v8407_v31 }
 0x6e3   :  { %v2568_v14 = vpop.f32.mrb[52].mxu1 }
 0x6e4   :  { %v6242_v63 = vpop.f32.mrb[53].mxu1 }
 0x6e5   :  { %v2571_v42 = vpop.f32.mrb[54].mxu1 }
 0x6e6   :  { %v6243_v11 = vpop.f32.mrb[55].mxu1 }
 0x79b   :  { %v2479_v58 = vpop.f32.mrb[60].mxu0 }
 0x79c   :  { %v7856_v45 = vadd.f32 %v2568_v14, %v2479_v58  ;;  %v6222_v59 = vpop.f32.mrb[61].mxu0 }
 0x79d   :  { %v2482_v36 = vpop.f32.mrb[62].mxu0 }
 0x79e   :  { %v7858_v55 = vadd.f32 %v2571_v42, %v2482_v36  ;;  %v6223_v22 = vpop.f32.mrb[63].mxu0  ;;  %v6731_v36 = vld [vmem:[#allocation13 + $0x80] sm:$0xff]  }
 0x79f   :  { %6257 = vmatpush3.bf16.msra.mxu0 %v6731_v36  ;;  %v6732_v22 = vld [vmem:[#allocation13 + $0x88] sm:$0xff]   ;;  %v8429_v36 = vpack.c.bf16 %v7657_v21, %v7653_v0 }
 0x7a0   :  { %6258 = vmatprep.subr.bf16.mxu0 %v8407_v31 }
 0x7a3   :  { %v2609_v49 = vpop.f32.mrb[64].mxu0  ;;  %6259 = vmatpush3.bf16.msra.mxu0 %v6732_v22 }
 0x7a4   :  { %v6248_v53 = vpop.f32.mrb[65].mxu0  ;;  %v2616_v29 = vsel %vm2187_vm1, %v2609_v49, -inf  ;;  %6260 = vmatprep.subr.bf16.mxu0 %v8407_v31 }
 0x7a5   :  { %2617 = vmax.xlane.f32.xlu0 %v2616_v29  ;;  %v2612_v2 = vpop.f32.mrb[66].mxu0  ;;  %v6734_v53 = vld [vmem:[#allocation13 + $0x98] sm:$0xff]   ;;  %v6735_v29 = vld [vmem:[#allocation13 + $0xa0] sm:$0xff]  }
 0x7a6   :  { %v6249_v57 = vpop.f32.mrb[67].mxu0  ;;  %v2619_v34 = vsel %vm2187_vm1, %v2612_v2, -inf }
 0x7a7   :  { %2620 = vmax.xlane.f32.xlu1 %v2619_v34  ;;  %v6737_v57 = vld [vmem:[#allocation13 + $0xb0] sm:$0xff]   ;;  %v6738_v34 = vld [vmem:[#allocation13 + $0xb8] sm:$0xff]  }
 0x832   :  { %v2618_v48 = vpop.xlane.xlu0 %2617 }
 0x833   :  { %v2622_v16 = vsub.f32 %v2609_v49, %v2618_v48  ;;  %v6733_v49 = vld [vmem:[#allocation13 + $0x90] sm:$0xff]  }
 0x834   :  { %v2621_v56 = vpop.xlane.xlu1 %2620  ;;  %6261 = vmatpush3.bf16.msra.mxu0 %v6733_v49 }
 0x835   :  { %v2624_v26 = vmul.f32 1.442695, %v2622_v16  ;;  %v2623_v14 = vsub.f32 %v2612_v2, %v2621_v56  ;;  %6262 = vmatprep.subr.bf16.mxu0 %v8407_v31  ;;  %v6736_v2 = vld [vmem:[#allocation13 + $0xa8] sm:$0xff]  }
 0x837   :  { %6859 = vpow2.f32 %v2624_v26  ;;  %v2626_v63 = vmul.f32 1.442695, %v2623_v14 }
 0x838   :  { %6263 = vmatpush3.bf16.msra.mxu0 %v6734_v53  ;;  %v8431_v53 = vpack.c.bf16 %v7526_v47, %v7522_v30 }
 0x839   :  { %6861 = vpow2.f32 %v2626_v63  ;;  %6264 = vmatprep.subr.bf16.mxu0 %v8407_v31 }
 0x83c   :  { %6265 = vmatpush3.bf16.msra.mxu0 %v6735_v29  ;;  %v8432_v29 = vpack.c.bf16 %v7455_v1, %v7453_v54 }
 0x83d   :  { %6266 = vmatprep.subr.bf16.mxu0 %v8407_v31 }
 0x840   :  { %6267 = vmatpush3.bf16.msra.mxu0 %v6736_v2  ;;  %v8433_v2 = vpack.c.bf16 %v7583_v4, %v7579_v23 }
 0x841   :  { %v6860_v42 = vpop.eup %6859  ;;  %6268 = vmatprep.subr.bf16.mxu0 %v8407_v31 }
 0x842   :  { %v2628_v11 = vsel %vm2187_vm1, %v6860_v42, 0.0 }
 0x843   :  { %v6862_v58 = vpop.eup %6861  ;;  %2629 = vadd.xlane.f32.xlu0 %v2628_v11 }
 0x844   :  { %v2631_v59 = vsel %vm2187_vm1, %v6862_v58, 0.0  ;;  %6269 = vmatpush3.bf16.msra.mxu0 %v6737_v57 }
 0x845   :  { %2632 = vadd.xlane.f32.xlu1 %v2631_v59  ;;  %6270 = vmatprep.subr.bf16.mxu0 %v8407_v31  ;;  %v8428_v59 = vpack.c.bf16 %v7717_v18, %v7713_v62 }
 0x848   :  { %6271 = vmatpush3.bf16.msra.mxu0 %v6738_v34 }
 0x849   :  { %6308 = vmatprep.subr.bf16.mxu0 %v8407_v31 }
 0x8d0   :  { %v2630_v48 = vpop.xlane.xlu0 %2629 }
 0x8d1   :  { %6863 = vrcp.f32 %v2630_v48 }
 0x8d2   :  { %v2633_v16 = vpop.xlane.xlu1 %2632 }
 0x8d3   :  { %6865 = vrcp.f32 %v2633_v16 }
 0x8db   :  { %v6864_v56 = vpop.eup %6863 }
 0x8dc   :  { %v2636_v14 = vmul.f32 %v6864_v56, %v6860_v42  ;;  %v8430_v42 = vpack.c.bf16 %v7777_v60, %v7773_v15 }
 0x8dd   :  { %v6866_v26 = vpop.eup %6865 }
 0x8de   :  { %v2637_v63 = vmul.f32 %v6866_v26, %v6862_v58 }
 0x8e0   :  { %v2638_v11 = vpack.c.bf16 %v2637_v63, %v2636_v14 }
 0x8e2   :  { %6253 = vmatmul.mubr.msk.bf16.vlgmr.msra.gmra.mrb[56].mxu1 %vm2187_vm1, %v2638_v11 }
 0x8e3   :  { %6277 = vmatpush3.bf16.xpose.msra.mxu1 %v8428_v59  ;;  %6278 = vmatprep.mubr.msk.bf16.mxu1 %vm7172_vm0, %v8407_v31 }
 0x8e4   :  { %6282 = vmatprep.subr.bf16.mxu1 %v8407_v31 }
 0x8ea   :  { %6279 = vmatmul.mubr.bf16.vlgmr.msra.gmra.mrb[60].mxu1 %v8429_v36 }
 0x8eb   :  { %6283 = vmatpush3.bf16.msra.mxu1 %v8430_v42  ;;  %6284 = vmatprep.mubr.msk.bf16.mxu1 %vm7172_vm0, %v8407_v31 }
 0x8ec   :  { %6288 = vmatprep.subr.bf16.mxu1 %v8407_v31 }
 0x9b5   :  { %v2676_v62 = vpop.f32.mrb[56].mxu1 }
 0x9b6   :  { %v6254_v18 = vpop.f32.mrb[57].mxu1 }
 0x9b7   :  { %v2679_v58 = vpop.f32.mrb[58].mxu1 }
 0x9b8   :  { %v2683_v22 = vpack.c.bf16 %v2679_v58, %v2676_v62  ;;  %v6255_v49 = vpop.f32.mrb[59].mxu1 }
 0x9ba   :  { %6273 = vmatmul.mubr.bf16.vlgmr.msra.gmra.mrb[68].mxu0 %v2683_v22 }
 0x9bb   :  { %6309 = vmatpush3.bf16.xpose.msra.mxu0 %v8431_v53  ;;  %6310 = vmatprep.mubr.msk.bf16.mxu0 %vm7172_vm0, %v8407_v31 }
 0x9bc   :  { %6314 = vmatprep.subr.bf16.mxu0 %v8407_v31 }
 0x9bd   :  { %v2825_v15 = vpop.f32.mrb[60].mxu1 }
 0x9be   :  { %v6280_v0 = vpop.f32.mrb[61].mxu1  ;;  %v2832_v58 = vsel %vm2187_vm1, %v2825_v15, -inf }
 0x9bf   :  { %v2828_v21 = vpop.f32.mrb[62].mxu1 }
 0x9c0   :  { %v6281_v60 = vpop.f32.mrb[63].mxu1  ;;  %v2835_v22 = vsel %vm2187_vm1, %v2828_v21, -inf }
 0x9c2   :  { %6311 = vmatmul.mubr.bf16.vlgmr.msra.gmra.mrb[72].mxu0 %v8432_v29 }
 0x9c3   :  { %6315 = vmatpush3.bf16.msra.mxu0 %v8433_v2  ;;  %6316 = vmatprep.mubr.msk.bf16.mxu0 %vm7172_vm0, %v8407_v31 }
 0x9c4   :  { %6320 = vmatprep.subr.bf16.mxu0 %v8407_v31 }
 0xa8d   :  { %v2782_v30 = vpop.f32.mrb[68].mxu0 }
 0xa8e   :  { %v7904_v47 = vadd.f32 %v2782_v30, %v7856_v45  ;;  %v6274_v57 = vpop.f32.mrb[69].mxu0 }
 0xa8f   :  { %v2785_v34 = vpop.f32.mrb[70].mxu0 }
 0xa90   :  { %v7907_v48 = vadd.f32 %v2785_v34, %v7858_v55  ;;  %v6275_v54 = vpop.f32.mrb[71].mxu0 }
 0xa95   :  { %v3041_v1 = vpop.f32.mrb[72].mxu0 }
 0xa96   :  { %v6312_v16 = vpop.f32.mrb[73].mxu0  ;;  %v3048_v23 = vsel %vm2187_vm1, %v3041_v1, -inf }
 0xa97   :  { %3049 = vmax.xlane.f32.xlu0 %v3048_v23  ;;  %v3044_v4 = vpop.f32.mrb[74].mxu0 }
 0xa98   :  { %v6313_v56 = vpop.f32.mrb[75].mxu0  ;;  %v3051_v26 = vsel %vm2187_vm1, %v3044_v4, -inf }
 0xa99   :  { %3052 = vmax.xlane.f32.xlu1 %v3051_v26  ;;  %v6739_v26 = vld [vmem:[#allocation13 + $0x100] sm:$0xff]  }
 0xb24   :  { %v3050_v14 = vpop.xlane.xlu0 %3049 }
 0xb25   :  { %v3054_v63 = vsub.f32 %v3041_v1, %v3050_v14  ;;  %v6740_v14 = vld [vmem:[#allocation13 + $0x108] sm:$0xff]  }
 0xb26   :  { %v3053_v45 = vpop.xlane.xlu1 %3052 }
 0xb27   :  { %v3056_v11 = vmul.f32 1.442695, %v3054_v63  ;;  %v3055_v59 = vsub.f32 %v3044_v4, %v3053_v45  ;;  %v6741_v63 = vld [vmem:[#allocation13 + $0x110] sm:$0xff]   ;;  %v6742_v45 = vld [vmem:[#allocation13 + $0x118] sm:$0xff]  }
 0xb29   :  { %6867 = vpow2.f32 %v3056_v11  ;;  %v3058_v36 = vmul.f32 1.442695, %v3055_v59  ;;  %v6743_v11 = vld [vmem:[#allocation13 + $0x120] sm:$0xff]   ;;  %v6744_v59 = vld [vmem:[#allocation13 + $0x128] sm:$0xff]  }
 0xb2b   :  { %6869 = vpow2.f32 %v3058_v36  ;;  %v6745_v36 = vld [vmem:[#allocation13 + $0x130] sm:$0xff]  }
 0xb33   :  { %v6868_v55 = vpop.eup %6867 }
 0xb34   :  { %v3060_v42 = vsel %vm2187_vm1, %v6868_v55, 0.0 }
 0xb35   :  { %v6870_v62 = vpop.eup %6869  ;;  %3061 = vadd.xlane.f32.xlu0 %v3060_v42 }
 0xb36   :  { %v3063_v18 = vsel %vm2187_vm1, %v6870_v62, 0.0 }
 0xb37   :  { %3064 = vadd.xlane.f32.xlu1 %v3063_v18 }
 0xb39   :  { %2833 = vmax.xlane.f32.xlu0 %v2832_v58 }
 0xb3b   :  { %2836 = vmax.xlane.f32.xlu1 %v2835_v22 }
 0xbc2   :  { %v3062_v49 = vpop.xlane.xlu0 %3061 }
 0xbc3   :  { %6871 = vrcp.f32 %v3062_v49 }
 0xbc4   :  { %v3065_v53 = vpop.xlane.xlu1 %3064 }
 0xbc5   :  { %6873 = vrcp.f32 %v3065_v53  ;;  %v6747_v53 = vld [vmem:[#allocation13 + $0xc0] sm:$0xff]  }
 0xbc6   :  { %v2834_v0 = vpop.xlane.xlu0 %2833 }
 0xbc7   :  { %v2838_v60 = vsub.f32 %v2825_v15, %v2834_v0 }
 0xbc8   :  { %v2837_v29 = vpop.xlane.xlu1 %2836 }
 0xbc9   :  { %v2840_v2 = vmul.f32 1.442695, %v2838_v60  ;;  %v2839_v30 = vsub.f32 %v2828_v21, %v2837_v29  ;;  %v6748_v60 = vld [vmem:[#allocation13 + $0xc8] sm:$0xff]   ;;  %v6749_v29 = vld [vmem:[#allocation13 + $0xd0] sm:$0xff]  }
 0xbcb   :  { %6875 = vpow2.f32 %v2840_v2  ;;  %v2842_v57 = vmul.f32 1.442695, %v2839_v30  ;;  %v6750_v2 = vld [vmem:[#allocation13 + $0xd8] sm:$0xff]   ;;  %v6751_v30 = vld [vmem:[#allocation13 + $0xe0] sm:$0xff]  }
 0xbcd   :  { %v6872_v34 = vpop.eup %6871  ;;  %6877 = vpow2.f32 %v2842_v57  ;;  %v6752_v57 = vld [vmem:[#allocation13 + $0xe8] sm:$0xff]  }
 0xbce   :  { %v3068_v1 = vmul.f32 %v6872_v34, %v6868_v55  ;;  %v6746_v55 = vld [vmem:[#allocation13 + $0x138] sm:$0xff]   ;;  %v6753_v34 = vld [vmem:[#allocation13 + $0xf0] sm:$0xff]  }
 0xbcf   :  { %v6874_v54 = vpop.eup %6873 }
 0xbd0   :  { %v3069_v16 = vmul.f32 %v6874_v54, %v6870_v62  ;;  %v6754_v54 = vld [vmem:[#allocation13 + $0xf8] sm:$0xff]  }
 0xbd2   :  { %v3070_v23 = vpack.c.bf16 %v3069_v16, %v3068_v1 }
 0xbd4   :  { %6317 = vmatmul.mubr.msk.bf16.vlgmr.msra.gmra.mrb[76].mxu0 %vm2187_vm1, %v3070_v23 }
 0xbd5   :  { %v6876_v4 = vpop.eup %6875  ;;  %6336 = vmatprep.mubr.msk.bf16.mxu0 %vm7172_vm0, %v8407_v31  ;;  %6321 = vmatpush3.bf16.msra.mxu0 %v6739_v26  ;;  %v8436_v26 = vpack.c.bf16 %v7803_v12, %v7797_v43  ;;  %v8438_v43 = vpack.c.bf16 %v7459_v6, %v7457_v5  ;;  %v8439_v12 = vpack.c.bf16 %v7585_v33, %v7581_v32 }
 0xbd6   :  { %v2844_v56 = vsel %vm2187_vm1, %v6876_v4, 0.0  ;;  %6322 = vmatprep.subr.bf16.mxu0 %v8407_v31 }
 0xbd7   :  { %v6878_v15 = vpop.eup %6877  ;;  %2845 = vadd.xlane.f32.xlu0 %v2844_v56 }
 0xbd8   :  { %v2847_v21 = vsel %vm2187_vm1, %v6878_v15, 0.0 }
 0xbd9   :  { %2848 = vadd.xlane.f32.xlu1 %v2847_v21  ;;  %6323 = vmatpush3.bf16.msra.mxu0 %v6740_v14  ;;  %v8435_v21 = vpack.c.bf16 %v7685_v3, %v7679_v44 }
 0xbda   :  { %6324 = vmatprep.subr.bf16.mxu0 %v8407_v31 }
 0xbdd   :  { %6325 = vmatpush3.bf16.msra.mxu0 %v6741_v63 }
 0xbde   :  { %6326 = vmatprep.subr.bf16.mxu0 %v8407_v31 }
 0xbe1   :  { %6327 = vmatpush3.bf16.msra.mxu0 %v6742_v45 }
 0xbe2   :  { %6328 = vmatprep.subr.bf16.mxu0 %v8407_v31 }
 0xbe5   :  { %6329 = vmatpush3.bf16.msra.mxu0 %v6743_v11  ;;  %v8437_v11 = vpack.c.bf16 %v7528_v52, %v7524_v50 }
 0xbe6   :  { %6330 = vmatprep.subr.bf16.mxu0 %v8407_v31 }
 0xbe9   :  { %6331 = vmatpush3.bf16.msra.mxu0 %v6744_v59 }
 0xbea   :  { %6332 = vmatprep.subr.bf16.mxu0 %v8407_v31 }
 0xbed   :  { %6333 = vmatpush3.bf16.msra.mxu0 %v6745_v36 }
 0xbee   :  { %6334 = vmatprep.subr.bf16.mxu0 %v8407_v31 }
 0xbf1   :  { %6335 = vmatpush3.bf16.msra.mxu0 %v6746_v55 }
 0xbf2   :  { %6372 = vmatprep.subr.bf16.mxu0 %v8407_v31 }
 0xc64   :  { %v2846_v42 = vpop.xlane.xlu0 %2845 }
 0xc65   :  { %6879 = vrcp.f32 %v2846_v42 }
 0xc66   :  { %v2849_v62 = vpop.xlane.xlu1 %2848 }
 0xc67   :  { %6881 = vrcp.f32 %v2849_v62 }
 0xc6f   :  { %v6880_v18 = vpop.eup %6879 }
 0xc70   :  { %v2852_v22 = vmul.f32 %v6880_v18, %v6876_v4 }
 0xc71   :  { %v6882_v58 = vpop.eup %6881 }
 0xc72   :  { %v2853_v49 = vmul.f32 %v6882_v58, %v6878_v15  ;;  %v8434_v15 = vpack.c.bf16 %v7745_v25, %v7739_v28 }
 0xc74   :  { %v2854_v0 = vpack.c.bf16 %v2853_v49, %v2852_v22 }
 0xc76   :  { %6285 = vmatmul.mubr.msk.bf16.vlgmr.msra.gmra.mrb[64].mxu1 %vm2187_vm1, %v2854_v0 }
 0xc77   :  { %6289 = vmatpush3.bf16.msra.mxu1 %v6747_v53  ;;  %6304 = vmatprep.mubr.msk.bf16.mxu1 %vm7172_vm0, %v8407_v31 }
 0xc78   :  { %6290 = vmatprep.subr.bf16.mxu1 %v8407_v31 }
 0xc7b   :  { %6291 = vmatpush3.bf16.msra.mxu1 %v6748_v60 }
 0xc7c   :  { %6292 = vmatprep.subr.bf16.mxu1 %v8407_v31 }
 0xc7f   :  { %6293 = vmatpush3.bf16.msra.mxu1 %v6749_v29 }
 0xc80   :  { %6294 = vmatprep.subr.bf16.mxu1 %v8407_v31 }
 0xc83   :  { %6295 = vmatpush3.bf16.msra.mxu1 %v6750_v2 }
 0xc84   :  { %6296 = vmatprep.subr.bf16.mxu1 %v8407_v31 }
 0xc87   :  { %6297 = vmatpush3.bf16.msra.mxu1 %v6751_v30 }
 0xc88   :  { %6298 = vmatprep.subr.bf16.mxu1 %v8407_v31 }
 0xc8b   :  { %6299 = vmatpush3.bf16.msra.mxu1 %v6752_v57 }
 0xc8c   :  { %6300 = vmatprep.subr.bf16.mxu1 %v8407_v31 }
 0xc8f   :  { %6301 = vmatpush3.bf16.msra.mxu1 %v6753_v34 }
 0xc90   :  { %6302 = vmatprep.subr.bf16.mxu1 %v8407_v31 }
 0xc93   :  { %6303 = vmatpush3.bf16.msra.mxu1 %v6754_v54 }
 0xc94   :  { %6340 = vmatprep.subr.bf16.mxu1 %v8407_v31 }
 0xca7   :  { %v3108_v1 = vpop.f32.mrb[76].mxu0 }
 0xca8   :  { %v6318_v16 = vpop.f32.mrb[77].mxu0 }
 0xca9   :  { %v3111_v23 = vpop.f32.mrb[78].mxu0 }
 0xcaa   :  { %v3115_v4 = vpack.c.bf16 %v3111_v23, %v3108_v1  ;;  %v6319_v56 = vpop.f32.mrb[79].mxu0 }
 0xcac   :  { %6337 = vmatmul.mubr.bf16.vlgmr.msra.gmra.mrb[80].mxu0 %v3115_v4 }
 0xcad   :  { %6373 = vmatpush3.bf16.xpose.msra.mxu0 %v8434_v15  ;;  %6374 = vmatprep.mubr.msk.bf16.mxu0 %vm7172_vm0, %v8407_v31 }
 0xcae   :  { %6378 = vmatprep.subr.bf16.mxu0 %v8407_v31 }
 0xcb4   :  { %6375 = vmatmul.mubr.bf16.vlgmr.msra.gmra.mrb[84].mxu0 %v8435_v21 }
 0xcb5   :  { %6379 = vmatpush3.bf16.msra.mxu0 %v8436_v26  ;;  %6380 = vmatprep.mubr.msk.bf16.mxu0 %vm7172_vm0, %v8407_v31 }
 0xcb6   :  { %6384 = vmatprep.subr.bf16.mxu0 %v8407_v31 }
 0xd49   :  { %v2892_v28 = vpop.f32.mrb[64].mxu1 }
 0xd4a   :  { %v6286_v25 = vpop.f32.mrb[65].mxu1 }
 0xd4b   :  { %v2895_v14 = vpop.f32.mrb[66].mxu1 }
 0xd4c   :  { %v2899_v63 = vpack.c.bf16 %v2895_v14, %v2892_v28  ;;  %v6287_v45 = vpop.f32.mrb[67].mxu1 }
 0xd4e   :  { %6305 = vmatmul.mubr.bf16.vlgmr.msra.gmra.mrb[68].mxu1 %v2899_v63 }
 0xd4f   :  { %6341 = vmatpush3.bf16.xpose.msra.mxu1 %v8437_v11  ;;  %6342 = vmatprep.mubr.msk.bf16.mxu1 %vm7172_vm0, %v8407_v31 }
 0xd50   :  { %6346 = vmatprep.subr.bf16.mxu1 %v8407_v31 }
 0xd56   :  { %6343 = vmatmul.mubr.bf16.vlgmr.msra.gmra.mrb[72].mxu1 %v8438_v43 }
 0xd57   :  { %6347 = vmatpush3.bf16.msra.mxu1 %v8439_v12  ;;  %6348 = vmatprep.mubr.msk.bf16.mxu1 %vm7172_vm0, %v8407_v31 }
 0xd58   :  { %6352 = vmatprep.subr.bf16.mxu1 %v8407_v31 }
 0xd7f   :  { %v3214_v50 = vpop.f32.mrb[80].mxu0 }
 0xd80   :  { %v6338_v52 = vpop.f32.mrb[81].mxu0 }
 0xd81   :  { %v3217_v44 = vpop.f32.mrb[82].mxu0 }
 0xd82   :  { %v6339_v3 = vpop.f32.mrb[83].mxu0 }
 0xd87   :  { %v3473_v59 = vpop.f32.mrb[84].mxu0 }
 0xd88   :  { %v6376_v36 = vpop.f32.mrb[85].mxu0  ;;  %v3480_v55 = vsel %vm2187_vm1, %v3473_v59, -inf }
 0xd89   :  { %3481 = vmax.xlane.f32.xlu0 %v3480_v55  ;;  %v3476_v5 = vpop.f32.mrb[86].mxu0 }
 0xd8a   :  { %v6377_v6 = vpop.f32.mrb[87].mxu0  ;;  %v3483_v42 = vsel %vm2187_vm1, %v3476_v5, -inf }
 0xd8b   :  { %3484 = vmax.xlane.f32.xlu1 %v3483_v42  ;;  %v6756_v6 = vld [vmem:[#allocation13 + $0x188] sm:$0xff]   ;;  %v6757_v42 = vld [vmem:[#allocation13 + $0x190] sm:$0xff]  }
 0xe16   :  { %v3482_v32 = vpop.xlane.xlu0 %3481 }
 0xe17   :  { %v3486_v33 = vsub.f32 %v3473_v59, %v3482_v32  ;;  %v6758_v32 = vld [vmem:[#allocation13 + $0x198] sm:$0xff]  }
 0xe18   :  { %v3485_v62 = vpop.xlane.xlu1 %3484 }
 0xe19   :  { %v3488_v18 = vmul.f32 1.442695, %v3486_v33  ;;  %v3487_v58 = vsub.f32 %v3476_v5, %v3485_v62  ;;  %v6755_v5 = vld [vmem:[#allocation13 + $0x180] sm:$0xff]   ;;  %v6760_v62 = vld [vmem:[#allocation13 + $0x1a8] sm:$0xff]  }
 0xe1a   :  { %v6759_v33 = vld [vmem:[#allocation13 + $0x1a0] sm:$0xff]  }
 0xe1b   :  { %6883 = vpow2.f32 %v3488_v18  ;;  %v3490_v22 = vmul.f32 1.442695, %v3487_v58  ;;  %v6761_v18 = vld [vmem:[#allocation13 + $0x1b0] sm:$0xff]   ;;  %v6762_v58 = vld [vmem:[#allocation13 + $0x1b8] sm:$0xff]  }
 0xe1d   :  { %6885 = vpow2.f32 %v3490_v22 }
 0xe21   :  { %v2998_v49 = vpop.f32.mrb[68].mxu1 }
 0xe22   :  { %v3005_v53 = vadd.f32 %v2998_v49, %v7904_v47  ;;  %v6306_v0 = vpop.f32.mrb[69].mxu1 }
 0xe23   :  { %v3001_v60 = vpop.f32.mrb[70].mxu1 }
 0xe24   :  { %v3006_v29 = vadd.f32 %v3001_v60, %v7907_v48  ;;  %v6307_v2 = vpop.f32.mrb[71].mxu1  ;;  %v7973_v30 = vadd.f32 %v3214_v50, %v3005_v53 }
 0xe25   :  { %v6884_v57 = vpop.eup %6883  ;;  %v6763_v2 = vld [vmem:[#allocation13 + $0x140] sm:$0xff]  }
 0xe26   :  { %v3492_v34 = vsel %vm2187_vm1, %v6884_v57, 0.0  ;;  %v7976_v54 = vadd.f32 %v3217_v44, %v3006_v29 }
 0xe27   :  { %v6886_v1 = vpop.eup %6885  ;;  %3493 = vadd.xlane.f32.xlu0 %v3492_v34  ;;  %v6764_v34 = vld [vmem:[#allocation13 + $0x148] sm:$0xff]  }
 0xe28   :  { %v3495_v16 = vsel %vm2187_vm1, %v6886_v1, 0.0 }
 0xe29   :  { %v3257_v23 = vpop.f32.mrb[72].mxu1  ;;  %3496 = vadd.xlane.f32.xlu1 %v3495_v16  ;;  %v6766_v16 = vld [vmem:[#allocation13 + $0x158] sm:$0xff]  }
 0xe2a   :  { %v6344_v4 = vpop.f32.mrb[73].mxu1  ;;  %v3264_v47 = vsel %vm2187_vm1, %v3257_v23, -inf }
 0xe2b   :  { %v3260_v56 = vpop.f32.mrb[74].mxu1  ;;  %3265 = vmax.xlane.f32.xlu0 %v3264_v47  ;;  %v6768_v4 = vld [vmem:[#allocation13 + $0x168] sm:$0xff]   ;;  %v6769_v47 = vld [vmem:[#allocation13 + $0x170] sm:$0xff]  }
 0xe2c   :  { %v6345_v48 = vpop.f32.mrb[75].mxu1  ;;  %v3267_v15 = vsel %vm2187_vm1, %v3260_v56, -inf }
 0xe2d   :  { %3268 = vmax.xlane.f32.xlu1 %v3267_v15 }
 0xeb4   :  { %v3494_v21 = vpop.xlane.xlu0 %3493 }
 0xeb5   :  { %6887 = vrcp.f32 %v3494_v21 }
 0xeb6   :  { %v3497_v26 = vpop.xlane.xlu1 %3496 }
 0xeb7   :  { %6889 = vrcp.f32 %v3497_v26 }
 0xeb8   :  { %v3266_v28 = vpop.xlane.xlu0 %3265 }
 0xeb9   :  { %v3270_v25 = vsub.f32 %v3257_v23, %v3266_v28  ;;  %v6767_v23 = vld [vmem:[#allocation13 + $0x160] sm:$0xff]  }
 0xeba   :  { %v3269_v14 = vpop.xlane.xlu1 %3268 }
 0xebb   :  { %v3272_v63 = vmul.f32 1.442695, %v3270_v25  ;;  %v3271_v45 = vsub.f32 %v3260_v56, %v3269_v14  ;;  %v6770_v56 = vld [vmem:[#allocation13 + $0x178] sm:$0xff]   ;;  %v8440_v25 = vpack.c.bf16 %v7501_v17, %v7497_v61  ;;  %v8441_v14 = vpack.c.bf16 %v7431_v13, %v7427_v7 }
 0xebc   :  { %v8444_v7 = vpack.c.bf16 %v7687_v9, %v7683_v37  ;;  %v8445_v13 = vpack.c.bf16 %v7805_v51, %v7801_v41 }
 0xebd   :  { %6891 = vpow2.f32 %v3272_v63  ;;  %v3274_v11 = vmul.f32 1.442695, %v3271_v45  ;;  %v8442_v63 = vpack.c.bf16 %v7567_v38, %v7562_v39 }
 0xebf   :  { %v6888_v43 = vpop.eup %6887  ;;  %6893 = vpow2.f32 %v3274_v11 }
 0xec0   :  { %v3500_v50 = vmul.f32 %v6888_v43, %v6884_v57 }
 0xec1   :  { %v6890_v12 = vpop.eup %6889 }
 0xec2   :  { %v3501_v52 = vmul.f32 %v6890_v12, %v6886_v1  ;;  %v6765_v1 = vld [vmem:[#allocation13 + $0x150] sm:$0xff]   ;;  %v8443_v12 = vpack.c.bf16 %v7747_v40, %v7743_v8 }
 0xec4   :  { %v3502_v44 = vpack.c.bf16 %v3501_v52, %v3500_v50 }
 0xec6   :  { %6381 = vmatmul.mubr.msk.bf16.vlgmr.msra.gmra.mrb[88].mxu0 %vm2187_vm1, %v3502_v44 }
 0xec7   :  { %v6892_v3 = vpop.eup %6891  ;;  %6400 = vmatprep.mubr.msk.bf16.mxu0 %vm7172_vm0, %v8407_v31  ;;  %6385 = vmatpush3.bf16.msra.mxu0 %v6755_v5 }
 0xec8   :  { %v3276_v59 = vsel %vm2187_vm1, %v6892_v3, 0.0  ;;  %6386 = vmatprep.subr.bf16.mxu0 %v8407_v31 }
 0xec9   :  { %v6894_v36 = vpop.eup %6893  ;;  %3277 = vadd.xlane.f32.xlu0 %v3276_v59 }
 0xeca   :  { %v3279_v55 = vsel %vm2187_vm1, %v6894_v36, 0.0 }
 0xecb   :  { %3280 = vadd.xlane.f32.xlu1 %v3279_v55  ;;  %6387 = vmatpush3.bf16.msra.mxu0 %v6756_v6 }
 0xecc   :  { %6388 = vmatprep.subr.bf16.mxu0 %v8407_v31 }
 0xecf   :  { %6389 = vmatpush3.bf16.msra.mxu0 %v6757_v42 }
 0xed0   :  { %6390 = vmatprep.subr.bf16.mxu0 %v8407_v31 }
 0xed3   :  { %6391 = vmatpush3.bf16.msra.mxu0 %v6758_v32 }
 0xed4   :  { %6392 = vmatprep.subr.bf16.mxu0 %v8407_v31 }
 0xed7   :  { %6393 = vmatpush3.bf16.msra.mxu0 %v6759_v33 }
 0xed8   :  { %6394 = vmatprep.subr.bf16.mxu0 %v8407_v31 }
 0xedb   :  { %6395 = vmatpush3.bf16.msra.mxu0 %v6760_v62 }
 0xedc   :  { %6396 = vmatprep.subr.bf16.mxu0 %v8407_v31 }
 0xedf   :  { %6397 = vmatpush3.bf16.msra.mxu0 %v6761_v18 }
 0xee0   :  { %6398 = vmatprep.subr.bf16.mxu0 %v8407_v31 }
 0xee3   :  { %6399 = vmatpush3.bf16.msra.mxu0 %v6762_v58 }
 0xee4   :  { %6436 = vmatprep.subr.bf16.mxu0 %v8407_v31 }
 0xf56   :  { %v3278_v22 = vpop.xlane.xlu0 %3277 }
 0xf57   :  { %6895 = vrcp.f32 %v3278_v22 }
 0xf58   :  { %v3281_v49 = vpop.xlane.xlu1 %3280 }
 0xf59   :  { %6897 = vrcp.f32 %v3281_v49 }
 0xf61   :  { %v6896_v53 = vpop.eup %6895 }
 0xf62   :  { %v3284_v60 = vmul.f32 %v6896_v53, %v6892_v3 }
 0xf63   :  { %v6898_v0 = vpop.eup %6897 }
 0xf64   :  { %v3285_v29 = vmul.f32 %v6898_v0, %v6894_v36 }
 0xf66   :  { %v3286_v57 = vpack.c.bf16 %v3285_v29, %v3284_v60 }
 0xf68   :  { %6349 = vmatmul.mubr.msk.bf16.vlgmr.msra.gmra.mrb[76].mxu1 %vm2187_vm1, %v3286_v57 }
 0xf69   :  { %6353 = vmatpush3.bf16.msra.mxu1 %v6763_v2  ;;  %6368 = vmatprep.mubr.msk.bf16.mxu1 %vm7172_vm0, %v8407_v31 }
 0xf6a   :  { %6354 = vmatprep.subr.bf16.mxu1 %v8407_v31 }
 0xf6d   :  { %6355 = vmatpush3.bf16.msra.mxu1 %v6764_v34 }
 0xf6e   :  { %6356 = vmatprep.subr.bf16.mxu1 %v8407_v31 }
 0xf71   :  { %6357 = vmatpush3.bf16.msra.mxu1 %v6765_v1 }
 0xf72   :  { %6358 = vmatprep.subr.bf16.mxu1 %v8407_v31 }
 0xf75   :  { %6359 = vmatpush3.bf16.msra.mxu1 %v6766_v16 }
 0xf76   :  { %6360 = vmatprep.subr.bf16.mxu1 %v8407_v31 }
 0xf79   :  { %6361 = vmatpush3.bf16.msra.mxu1 %v6767_v23 }
 0xf7a   :  { %6362 = vmatprep.subr.bf16.mxu1 %v8407_v31 }
 0xf7d   :  { %6363 = vmatpush3.bf16.msra.mxu1 %v6768_v4 }
 0xf7e   :  { %6364 = vmatprep.subr.bf16.mxu1 %v8407_v31 }
 0xf81   :  { %6365 = vmatpush3.bf16.msra.mxu1 %v6769_v47 }
 0xf82   :  { %6366 = vmatprep.subr.bf16.mxu1 %v8407_v31 }
 0xf85   :  { %6367 = vmatpush3.bf16.msra.mxu1 %v6770_v56 }
 0xf86   :  { %6404 = vmatprep.subr.bf16.mxu1 %v8407_v31 }
 0xf99   :  { %v3540_v48 = vpop.f32.mrb[88].mxu0 }
 0xf9a   :  { %v6382_v15 = vpop.f32.mrb[89].mxu0 }
 0xf9b   :  { %v3543_v21 = vpop.f32.mrb[90].mxu0 }
 0xf9c   :  { %v3547_v26 = vpack.c.bf16 %v3543_v21, %v3540_v48  ;;  %v6383_v28 = vpop.f32.mrb[91].mxu0 }
 0xf9e   :  { %6401 = vmatmul.mubr.bf16.vlgmr.msra.gmra.mrb[92].mxu0 %v3547_v26 }
 0xf9f   :  { %6437 = vmatpush3.bf16.xpose.msra.mxu0 %v8440_v25  ;;  %6438 = vmatprep.mubr.msk.bf16.mxu0 %vm7172_vm0, %v8407_v31 }
 0xfa0   :  { %6442 = vmatprep.subr.bf16.mxu0 %v8407_v31 }
 0xfa6   :  { %6439 = vmatmul.mubr.bf16.vlgmr.msra.gmra.mrb[96].mxu0 %v8441_v14 }
 0xfa7   :  { %6443 = vmatpush3.bf16.msra.mxu0 %v8442_v63  ;;  %6444 = vmatprep.mubr.msk.bf16.mxu0 %vm7172_vm0, %v8407_v31 }
 0xfa8   :  { %6448 = vmatprep.subr.bf16.mxu0 %v8407_v31 }
0x103b   :  { %v3324_v61 = vpop.f32.mrb[76].mxu1 }
0x103c   :  { %v6350_v17 = vpop.f32.mrb[77].mxu1 }
0x103d   :  { %v3327_v45 = vpop.f32.mrb[78].mxu1 }
0x103e   :  { %v3331_v11 = vpack.c.bf16 %v3327_v45, %v3324_v61  ;;  %v6351_v43 = vpop.f32.mrb[79].mxu1  ;;  %v8446_v61 = vld [vmem:[#allocation26_spill] sm:$0xff] }
0x103f   :  { %v8447_v17 = vpack.c.bf16 %v7503_v24, %v8446_v61  ;;  %v6790_v61 = vld [vmem:[#allocation13 + $0x58] sm:$0xff]  }
0x1040   :  { %6369 = vmatmul.mubr.bf16.vlgmr.msra.gmra.mrb[80].mxu1 %v3331_v11 }
0x1041   :  { %6405 = vmatpush3.bf16.xpose.msra.mxu1 %v8443_v12  ;;  %6406 = vmatprep.mubr.msk.bf16.mxu1 %vm7172_vm0, %v8407_v31  ;;  %v8448_v12 = vld [vmem:[#allocation21_spill] sm:$0xff] }
0x1042   :  { %6410 = vmatprep.subr.bf16.mxu1 %v8407_v31 }
0x1048   :  { %6407 = vmatmul.mubr.bf16.vlgmr.msra.gmra.mrb[84].mxu1 %v8444_v7  ;;  %v8449_v7 = vld [vmem:[#allocation20_spill] sm:$0xff] }
0x1049   :  { %6411 = vmatpush3.bf16.msra.mxu1 %v8445_v13  ;;  %6412 = vmatprep.mubr.msk.bf16.mxu1 %vm7172_vm0, %v8407_v31  ;;  %v8450_v13 = vpack.c.bf16 %v8448_v12, %v8449_v7 }
0x104a   :  { %6416 = vmatprep.subr.bf16.mxu1 %v8407_v31 }
0x1071   :  { %v3646_v39 = vpop.f32.mrb[92].mxu0 }
0x1072   :  { %v6402_v38 = vpop.f32.mrb[93].mxu0 }
0x1073   :  { %v3649_v8 = vpop.f32.mrb[94].mxu0 }
0x1074   :  { %v6403_v40 = vpop.f32.mrb[95].mxu0 }
0x1079   :  { %v3915_v50 = vpop.f32.mrb[96].mxu0 }
0x107a   :  { %v6440_v52 = vpop.f32.mrb[97].mxu0  ;;  %v3922_v44 = vsel %vm2187_vm1, %v3915_v50, -inf }
0x107b   :  { %3923 = vmax.xlane.f32.xlu0 %v3922_v44  ;;  %v3918_v37 = vpop.f32.mrb[98].mxu0  ;;  %v6771_v52 = vld [vmem:[#allocation13 + $0x1c0] sm:$0xff]  }
0x107c   :  { %v6441_v9 = vpop.f32.mrb[99].mxu0  ;;  %v3925_v3 = vsel %vm2187_vm1, %v3918_v37, -inf }
0x107d   :  { %3926 = vmax.xlane.f32.xlu1 %v3925_v3  ;;  %v6773_v9 = vld [vmem:[#allocation13 + $0x1d0] sm:$0xff]   ;;  %v6774_v3 = vld [vmem:[#allocation13 + $0x1d8] sm:$0xff]  }
0x1108   :  { %v3924_v41 = vpop.xlane.xlu0 %3923 }
0x1109   :  { %v3928_v51 = vsub.f32 %v3915_v50, %v3924_v41  ;;  %v6775_v41 = vld [vmem:[#allocation13 + $0x1e0] sm:$0xff]  }
0x110a   :  { %v3927_v59 = vpop.xlane.xlu1 %3926 }
0x110b   :  { %v3930_v36 = vmul.f32 1.442695, %v3928_v51  ;;  %v3929_v55 = vsub.f32 %v3918_v37, %v3927_v59  ;;  %v6772_v37 = vld [vmem:[#allocation13 + $0x1c8] sm:$0xff]  }
0x110d   :  { %6899 = vpow2.f32 %v3930_v36  ;;  %v3932_v5 = vmul.f32 1.442695, %v3929_v55 }
0x110f   :  { %6901 = vpow2.f32 %v3932_v5 }
0x1113   :  { %v3430_v6 = vpop.f32.mrb[80].mxu1 }
0x1114   :  { %v3437_v42 = vadd.f32 %v3430_v6, %v7973_v30  ;;  %v6370_v32 = vpop.f32.mrb[81].mxu1 }
0x1115   :  { %v3433_v33 = vpop.f32.mrb[82].mxu1 }
0x1116   :  { %v3438_v62 = vadd.f32 %v3433_v33, %v7976_v54  ;;  %v6371_v18 = vpop.f32.mrb[83].mxu1  ;;  %v8039_v58 = vadd.f32 %v3646_v39, %v3437_v42 }
0x1117   :  { %v6900_v22 = vpop.eup %6899 }
0x1118   :  { %v3934_v49 = vsel %vm2187_vm1, %v6900_v22, 0.0  ;;  %v8042_v53 = vadd.f32 %v3649_v8, %v3438_v62 }
0x1119   :  { %v6902_v0 = vpop.eup %6901  ;;  %3935 = vadd.xlane.f32.xlu0 %v3934_v49  ;;  %v6777_v49 = vld [vmem:[#allocation13 + $0x1f0] sm:$0xff]  }
0x111a   :  { %v3937_v60 = vsel %vm2187_vm1, %v6902_v0, 0.0 }
0x111b   :  { %v3689_v29 = vpop.f32.mrb[84].mxu1  ;;  %3938 = vadd.xlane.f32.xlu1 %v3937_v60 }
0x111c   :  { %v6408_v2 = vpop.f32.mrb[85].mxu1  ;;  %v3696_v30 = vsel %vm2187_vm1, %v3689_v29, -inf }
0x111d   :  { %v3692_v57 = vpop.f32.mrb[86].mxu1  ;;  %3697 = vmax.xlane.f32.xlu0 %v3696_v30 }
0x111e   :  { %v6409_v54 = vpop.f32.mrb[87].mxu1  ;;  %v3699_v34 = vsel %vm2187_vm1, %v3692_v57, -inf }
0x111f   :  { %3700 = vmax.xlane.f32.xlu1 %v3699_v34 }
0x11a6   :  { %v3936_v1 = vpop.xlane.xlu0 %3935 }
0x11a7   :  { %6903 = vrcp.f32 %v3936_v1 }
0x11a8   :  { %v3939_v16 = vpop.xlane.xlu1 %3938 }
0x11a9   :  { %6905 = vrcp.f32 %v3939_v16 }
0x11aa   :  { %v3698_v23 = vpop.xlane.xlu0 %3697 }
0x11ab   :  { %v3702_v4 = vsub.f32 %v3689_v29, %v3698_v23 }
0x11ac   :  { %v3701_v47 = vpop.xlane.xlu1 %3700 }
0x11ad   :  { %v3704_v56 = vmul.f32 1.442695, %v3702_v4  ;;  %v3703_v48 = vsub.f32 %v3692_v57, %v3701_v47 }
0x11af   :  { %6907 = vpow2.f32 %v3704_v56  ;;  %v3706_v15 = vmul.f32 1.442695, %v3703_v48 }
0x11b1   :  { %v6904_v21 = vpop.eup %6903  ;;  %6909 = vpow2.f32 %v3706_v15  ;;  %v8451_v15 = vld [vmem:[#allocation32_spill] sm:$0xff] }
0x11b2   :  { %v3942_v28 = vmul.f32 %v6904_v21, %v6900_v22  ;;  %v6776_v22 = vld [vmem:[#allocation13 + $0x1e8] sm:$0xff]   ;;  %v8452_v21 = vld [vmem:[#allocation31_spill] sm:$0xff] }
0x11b3   :  { %v6906_v26 = vpop.eup %6905 }
0x11b4   :  { %v3943_v25 = vmul.f32 %v6906_v26, %v6902_v0  ;;  %v6778_v0 = vld [vmem:[#allocation13 + $0x1f8] sm:$0xff]   ;;  %v8453_v26 = vpack.c.bf16 %v8451_v15, %v8452_v21 }
0x11b6   :  { %v3944_v14 = vpack.c.bf16 %v3943_v25, %v3942_v28  ;;  %v6787_v25 = vld [vmem:[#allocation13 + $0x40] sm:$0xff]  }
0x11b8   :  { %6445 = vmatmul.mubr.msk.bf16.vlgmr.msra.gmra.mrb[100].mxu0 %vm2187_vm1, %v3944_v14  ;;  %v6788_v14 = vld [vmem:[#allocation13 + $0x48] sm:$0xff]  }
0x11b9   :  { %v6908_v63 = vpop.eup %6907  ;;  %6449 = vmatpush3.bf16.xpose.msra.mxu0 %v8447_v17  ;;  %6450 = vmatprep.mubr.msk.bf16.mxu0 %vm7172_vm0, %v8407_v31  ;;  %v6791_v17 = vld [vmem:[#allocation13 + $0x60] sm:$0xff]  }
0x11ba   :  { %v3708_v45 = vsel %vm2187_vm1, %v6908_v63, 0.0  ;;  %6460 = vmatprep.subr.bf16.mxu0 %v8407_v31 }
0x11bb   :  { %v6910_v11 = vpop.eup %6909  ;;  %3709 = vadd.xlane.f32.xlu0 %v3708_v45  ;;  %v6792_v45 = vld [vmem:[#allocation13 + $0x68] sm:$0xff]  }
0x11bc   :  { %v3711_v43 = vsel %vm2187_vm1, %v6910_v11, 0.0 }
0x11bd   :  { %3712 = vadd.xlane.f32.xlu1 %v3711_v43  ;;  %v6794_v43 = vld [vmem:[#allocation13 + $0x78] sm:$0xff]  }
0x11c0   :  { %6451 = vmatmul.mubr.bf16.vlgmr.msra.gmra.mrb[104].mxu0 %v8450_v13 }
0x11c1   :  { %6476 = vmatprep.mubr.msk.bf16.mxu0 %vm7172_vm0, %v8407_v31  ;;  %6461 = vmatpush3.bf16.msra.mxu0 %v6787_v25 }
0x11c2   :  { %6462 = vmatprep.subr.bf16.mxu0 %v8407_v31 }
0x11c5   :  { %6463 = vmatpush3.bf16.msra.mxu0 %v6788_v14 }
0x11c6   :  { %6464 = vmatprep.subr.bf16.mxu0 %v8407_v31 }
0x1248   :  { %v3710_v24 = vpop.xlane.xlu0 %3709 }
0x1249   :  { %6911 = vrcp.f32 %v3710_v24 }
0x124a   :  { %v3713_v39 = vpop.xlane.xlu1 %3712 }
0x124b   :  { %6913 = vrcp.f32 %v3713_v39 }
0x1253   :  { %v6912_v38 = vpop.eup %6911 }
0x1254   :  { %v3716_v40 = vmul.f32 %v6912_v38, %v6908_v63  ;;  %v6789_v63 = vld [vmem:[#allocation13 + $0x50] sm:$0xff]  }
0x1255   :  { %v6914_v8 = vpop.eup %6913  ;;  %6465 = vmatpush3.bf16.msra.mxu0 %v6789_v63 }
0x1256   :  { %v3717_v50 = vmul.f32 %v6914_v8, %v6910_v11  ;;  %6466 = vmatprep.subr.bf16.mxu0 %v8407_v31  ;;  %v6793_v11 = vld [vmem:[#allocation13 + $0x70] sm:$0xff]   ;;  %v6779_v8 = vld [vmem:[#allocation13] sm:$0xff]  }
0x1258   :  { %v3718_v44 = vpack.c.bf16 %v3717_v50, %v3716_v40  ;;  %v6780_v50 = vld [vmem:[#allocation13 + $0x8] sm:$0xff]  }
0x1259   :  { %6467 = vmatpush3.bf16.msra.mxu0 %v6790_v61 }
0x125a   :  { %6413 = vmatmul.mubr.msk.bf16.vlgmr.msra.gmra.mrb[88].mxu1 %vm2187_vm1, %v3718_v44  ;;  %6468 = vmatprep.subr.bf16.mxu0 %v8407_v31  ;;  %v6782_v44 = vld [vmem:[#allocation13 + $0x18] sm:$0xff]  }
0x125b   :  { %6417 = vmatpush3.bf16.msra.mxu1 %v6771_v52  ;;  %6432 = vmatprep.mubr.msk.bf16.mxu1 %vm7172_vm0, %v8407_v31  ;;  %v6781_v52 = vld [vmem:[#allocation13 + $0x10] sm:$0xff]  }
0x125c   :  { %6418 = vmatprep.subr.bf16.mxu1 %v8407_v31 }
0x125d   :  { %6469 = vmatpush3.bf16.msra.mxu0 %v6791_v17 }
0x125e   :  { %6470 = vmatprep.subr.bf16.mxu0 %v8407_v31 }
0x125f   :  { %6419 = vmatpush3.bf16.msra.mxu1 %v6772_v37  ;;  %v6783_v37 = vld [vmem:[#allocation13 + $0x20] sm:$0xff]  }
0x1260   :  { %6420 = vmatprep.subr.bf16.mxu1 %v8407_v31 }
0x1261   :  { %6471 = vmatpush3.bf16.msra.mxu0 %v6792_v45 }
0x1262   :  { %6472 = vmatprep.subr.bf16.mxu0 %v8407_v31 }
0x1263   :  { %6421 = vmatpush3.bf16.msra.mxu1 %v6773_v9  ;;  %v6784_v9 = vld [vmem:[#allocation13 + $0x28] sm:$0xff]  }
0x1264   :  { %6422 = vmatprep.subr.bf16.mxu1 %v8407_v31 }
0x1265   :  { %6473 = vmatpush3.bf16.msra.mxu0 %v6793_v11 }
0x1266   :  { %6474 = vmatprep.subr.bf16.mxu0 %v8407_v31 }
0x1267   :  { %6423 = vmatpush3.bf16.msra.mxu1 %v6774_v3  ;;  %v6785_v3 = vld [vmem:[#allocation13 + $0x30] sm:$0xff]  }
0x1268   :  { %6424 = vmatprep.subr.bf16.mxu1 %v8407_v31 }
0x1269   :  { %6475 = vmatpush3.bf16.msra.mxu0 %v6794_v43 }
0x126a   :  { %6500 = vmatprep.subr.bf16.mxu0 %v8407_v31 }
0x126b   :  { %6425 = vmatpush3.bf16.msra.mxu1 %v6775_v41  ;;  %v6786_v41 = vld [vmem:[#allocation13 + $0x38] sm:$0xff]  }
0x126c   :  { %6426 = vmatprep.subr.bf16.mxu1 %v8407_v31 }
0x126f   :  { %6427 = vmatpush3.bf16.msra.mxu1 %v6776_v22 }
0x1270   :  { %6428 = vmatprep.subr.bf16.mxu1 %v8407_v31 }
0x1273   :  { %6429 = vmatpush3.bf16.msra.mxu1 %v6777_v49 }
0x1274   :  { %6430 = vmatprep.subr.bf16.mxu1 %v8407_v31 }
0x1277   :  { %6431 = vmatpush3.bf16.msra.mxu1 %v6778_v0 }
0x1278   :  { %6454 = vmatprep.subr.bf16.mxu1 %v8407_v31 }
0x128b   :  { %v8069_v51 = vpop.f32.mrb[100].mxu0 }
0x128c   :  { %v6446_v59 = vpop.f32.mrb[101].mxu0 }
0x128d   :  { %v8071_v36 = vpop.f32.mrb[102].mxu0  ;;  %v8454_v59 = vld [vmem:[#allocation55_spill] sm:$0xff] }
0x128e   :  { %v3989_v55 = vpack.c.bf16 %v8071_v36, %v8069_v51  ;;  %v6447_v5 = vpop.f32.mrb[103].mxu0 }
0x128f   :  { %v8455_v5 = vld [vmem:[#allocation53_spill] sm:$0xff] }
0x1293   :  { %v4040_v6 = vpop.f32.mrb[104].mxu0 }
0x1294   :  { %v6452_v42 = vpop.f32.mrb[105].mxu0  ;;  %v4047_v32 = vsel %vm2187_vm1, %v4040_v6, -inf }
0x1295   :  { %4048 = vmax.xlane.f32.xlu0 %v4047_v32  ;;  %v4043_v33 = vpop.f32.mrb[106].mxu0  ;;  %v8119_v42 = vld [vmem:[%s8345_s10] ss:$0 sm:$0xff]  ;;  %s7173_s10 = smov [#allocation14]  }
0x1296   :  { %v6453_v62 = vpop.f32.mrb[107].mxu0  ;;  %v4050_v18 = vsel %vm2187_vm1, %v4043_v33, -inf  ;;  %s5614_s14 = sshll.u32 %s7173_s10, 4  ;;  %s5615_s14 = int_to_ptr.vmem [resolvable:$true] %s5614_s14 }
0x1297   :  { %4051 = vmax.xlane.f32.xlu1 %v4050_v18  ;;  %s7127_s15 = scalar_lea.vmem %s5615_s14, 512  ;;  %p7132_p1 = scmp.lt.s32.totalorder %s5615_s14, %s5615_s14 }
0x1298   :  { %p7128_p0 = scmp.ne.s32.totalorder %s5615_s14, %s7127_s15  ;;  %p7133_p2 = scmp.lt.s32.totalorder %s7127_s15, %s7127_s15 }
0x129a   :  { %p7134_p3 = por %p7133_p2, %p7132_p1 }
0x129c   :  { %p7135_p4 = pnand %p7134_p3, %p7128_p0 }
0x1322   :  { %v4049_v60 = vpop.xlane.xlu0 %4048 }
0x1323   :  { %v4053_v29 = vsub.f32 %v4040_v6, %v4049_v60  ;;  %v8456_v6 = vpack.c.bf16 %v8454_v59, %v8455_v5 }
0x1324   :  { %v4052_v2 = vpop.xlane.xlu1 %4051 }
0x1325   :  { %v4055_v30 = vmul.f32 1.442695, %v4053_v29  ;;  %v4054_v57 = vsub.f32 %v4043_v33, %v4052_v2 }
0x1327   :  { %6915 = vpow2.f32 %v4055_v30  ;;  %v4057_v54 = vmul.f32 1.442695, %v4054_v57  ;;  %v8457_v30 = vld [vmem:[#allocation47_spill] sm:$0xff]  ;;  %v8458_v57 = vld [vmem:[#allocation45_spill] sm:$0xff] }
0x1329   :  { %6917 = vpow2.f32 %v4057_v54  ;;  %v8461_v54 = vld [vmem:[#allocation37_spill] sm:$0xff] }
0x132d   :  { %v3756_v34 = vpop.f32.mrb[88].mxu1 }
0x132e   :  { %v6414_v1 = vpop.f32.mrb[89].mxu1 }
0x132f   :  { %v3759_v16 = vpop.f32.mrb[90].mxu1 }
0x1330   :  { %v3763_v23 = vpack.c.bf16 %v3759_v16, %v3756_v34  ;;  %v6415_v4 = vpop.f32.mrb[91].mxu1 }
0x1331   :  { %v6916_v47 = vpop.eup %6915 }
0x1332   :  { %6433 = vmatmul.mubr.bf16.vlgmr.msra.gmra.mrb[92].mxu1 %v3763_v23  ;;  %v4059_v56 = vsel %vm2187_vm1, %v6916_v47, 0.0 }
0x1333   :  { %v6918_v48 = vpop.eup %6917  ;;  %6455 = vmatpush3.bf16.msra.mxu1 %v8453_v26  ;;  %4060 = vadd.xlane.f32.xlu0 %v4059_v56 }
0x1334   :  { %v4062_v28 = vsel %vm2187_vm1, %v6918_v48, 0.0  ;;  %6456 = vmatprep.mubr.msk.bf16.mxu1 %vm7172_vm0, %v8407_v31  ;;  %6480 = vmatprep.subr.bf16.mxu1 %v8407_v31 }
0x1335   :  { %4063 = vadd.xlane.f32.xlu1 %v4062_v28 }
0x13c0   :  { %v4061_v12 = vpop.xlane.xlu0 %4060 }
0x13c1   :  { %6919 = vrcp.f32 %v4061_v12 }
0x13c2   :  { %v4064_v7 = vpop.xlane.xlu1 %4063 }
0x13c3   :  { %6921 = vrcp.f32 %v4064_v7 }
0x13cb   :  { %v6920_v13 = vpop.eup %6919 }
0x13cc   :  { %v4067_v39 = vmul.f32 %v6920_v13, %v6916_v47 }
0x13cd   :  { %v6922_v24 = vpop.eup %6921 }
0x13ce   :  { %v4068_v38 = vmul.f32 %v6922_v24, %v6918_v48 }
0x13d0   :  { %v4069_v40 = vpack.c.bf16 %v4068_v38, %v4067_v39 }
0x13d2   :  { %6457 = vmatmul.mubr.msk.bf16.vlgmr.msra.gmra.mrb[96].mxu1 %vm2187_vm1, %v4069_v40  ;;  %v6795_v40 = vld [vmem:[#allocation13 + $0x80] sm:$0xff]  }
0x13d3   :  { %6481 = vmatpush3.bf16.msra.mxu1 %v6779_v8  ;;  %6496 = vmatprep.mubr.msk.bf16.mxu1 %vm7172_vm0, %v8407_v31 }
0x13d4   :  { %6482 = vmatprep.subr.bf16.mxu1 %v8407_v31 }
0x13d7   :  { %6483 = vmatpush3.bf16.msra.mxu1 %v6780_v50  ;;  %v6796_v50 = vld [vmem:[#allocation13 + $0x88] sm:$0xff]  }
0x13d8   :  { %6484 = vmatprep.subr.bf16.mxu1 %v8407_v31 }
0x13db   :  { %6485 = vmatpush3.bf16.msra.mxu1 %v6781_v52  ;;  %v6797_v52 = vld [vmem:[#allocation13 + $0x90] sm:$0xff]  }
0x13dc   :  { %6486 = vmatprep.subr.bf16.mxu1 %v8407_v31 }
0x13df   :  { %6487 = vmatpush3.bf16.msra.mxu1 %v6782_v44  ;;  %v6798_v44 = vld [vmem:[#allocation13 + $0x98] sm:$0xff]  }
0x13e0   :  { %6488 = vmatprep.subr.bf16.mxu1 %v8407_v31 }
0x13e3   :  { %6489 = vmatpush3.bf16.msra.mxu1 %v6783_v37  ;;  %v6799_v37 = vld [vmem:[#allocation13 + $0xa0] sm:$0xff]  }
0x13e4   :  { %6490 = vmatprep.subr.bf16.mxu1 %v8407_v31 }
0x13e7   :  { %6491 = vmatpush3.bf16.msra.mxu1 %v6784_v9  ;;  %v6800_v9 = vld [vmem:[#allocation13 + $0xa8] sm:$0xff]  }
0x13e8   :  { %6492 = vmatprep.subr.bf16.mxu1 %v8407_v31 }
0x13eb   :  { %6493 = vmatpush3.bf16.msra.mxu1 %v6785_v3  ;;  %v6801_v3 = vld [vmem:[#allocation13 + $0xb0] sm:$0xff]  }
0x13ec   :  { %6494 = vmatprep.subr.bf16.mxu1 %v8407_v31 }
0x13ef   :  { %6495 = vmatpush3.bf16.msra.mxu1 %v6786_v41  ;;  %v6802_v41 = vld [vmem:[#allocation13 + $0xb8] sm:$0xff]  }
0x13f0   :  { %6506 = vmatprep.subr.bf16.mxu1 %v8407_v31 }
0x13f2   :  { %6497 = vmatmul.mubr.bf16.vlgmr.msra.gmra.mrb[100].mxu1 %v3989_v55 }
0x13f3   :  { %6507 = vmatpush3.bf16.msra.mxu1 %v8456_v6  ;;  %6508 = vmatprep.mubr.msk.bf16.mxu1 %vm7172_vm0, %v8407_v31 }
0x13f4   :  { %6532 = vmatprep.subr.bf16.mxu1 %v8407_v31 }
0x1405   :  { %v3862_v32 = vpop.f32.mrb[92].mxu1 }
0x1406   :  { %v3869_v33 = vadd.f32 %v3862_v32, %v8039_v58  ;;  %v6434_v62 = vpop.f32.mrb[93].mxu1  ;;  %v8459_v58 = vpack.c.bf16 %v8457_v30, %v8458_v57 }
0x1407   :  { %v3865_v51 = vpop.f32.mrb[94].mxu1 }
0x1408   :  { %v3877_v36 = vadd.f32 %v8119_v42, %v3869_v33  ;;  %v3870_v55 = vadd.f32 %v3865_v51, %v8042_v53  ;;  %v6435_v18 = vpop.f32.mrb[95].mxu1  ;;  %v8460_v53 = vld [vmem:[#allocation39_spill] sm:$0xff] }
0x1409   :  { %v8462_v34 = vpack.c.bf16 %v8460_v53, %v8461_v54 }
0x140a   :  { %3879 = vst [vmem:[#allocation14] sm:$0xff] %v3877_v36  ;;  %v3878_v22 = vadd.f32 %v8119_v42, %v3870_v55  ;;  %v8463_v36 = vld [vmem:[#allocation48_spill] sm:$0xff]  ;;  %v8464_v55 = vld [vmem:[#allocation46_spill] sm:$0xff] }
0x140b   :  { %v8465_v18 = vpack.c.bf16 %v8463_v36, %v8464_v55  ;;  %v6803_v55 = vld [vmem:[#allocation13 + $0xc0] sm:$0xff]  }
0x140c   :  { %3880 = vst [vmem:[#allocation14 + $0x8] sm:$0xff] %v3878_v22  ;;  %v8466_v22 = vld [vmem:[#allocation40_spill] sm:$0xff] }
0x14a5   :  { %v4107_v49 = vpop.f32.mrb[96].mxu1 }
0x14a6   :  { %v6458_v0 = vpop.f32.mrb[97].mxu1 }
0x14a7   :  { %v4110_v60 = vpop.f32.mrb[98].mxu1 }
0x14a8   :  { %v4114_v29 = vpack.c.bf16 %v4110_v60, %v4107_v49  ;;  %v6459_v2 = vpop.f32.mrb[99].mxu1  ;;  %v8467_v49 = vld [vmem:[#allocation38_spill] sm:$0xff]  ;;  %v8469_v60 = vld [vmem:[#allocation56_spill] sm:$0xff] }
0x14a9   :  { %v8468_v0 = vpack.c.bf16 %v8466_v22, %v8467_v49  ;;  %v6804_v22 = vld [vmem:[#allocation13 + $0xc8] sm:$0xff]   ;;  %v6805_v49 = vld [vmem:[#allocation13 + $0xd0] sm:$0xff]  }
0x14aa   :  { %6477 = vmatmul.mubr.bf16.vlgmr.msra.gmra.mrb[108].mxu0 %v4114_v29  ;;  %v8470_v29 = vld [vmem:[#allocation54_spill] sm:$0xff] }
0x14ab   :  { %6501 = vmatpush3.bf16.xpose.msra.mxu0 %v8459_v58  ;;  %6502 = vmatprep.mubr.msk.bf16.mxu0 %vm7172_vm0, %v8407_v31  ;;  %v8471_v2 = vpack.c.bf16 %v8469_v60, %v8470_v29  ;;  %v6807_v60 = vld [vmem:[#allocation13 + $0xe0] sm:$0xff]   ;;  %v6808_v29 = vld [vmem:[#allocation13 + $0xe8] sm:$0xff]  }
0x14ac   :  { %6512 = vmatprep.subr.bf16.mxu0 %v8407_v31 }
0x14b2   :  { %6503 = vmatmul.mubr.bf16.vlgmr.msra.gmra.mrb[112].mxu0 %v8462_v34  ;;  %v8472_v34 = vld [vmem:[#allocation29_spill] sm:$0xff] }
0x14b3   :  { %6528 = vmatprep.mubr.msk.bf16.mxu0 %vm7172_vm0, %v8407_v31  ;;  %6513 = vmatpush3.bf16.msra.mxu0 %v6795_v40 }
0x14b4   :  { %6514 = vmatprep.subr.bf16.mxu0 %v8407_v31 }
0x14b7   :  { %6515 = vmatpush3.bf16.msra.mxu0 %v6796_v50 }
0x14b8   :  { %6516 = vmatprep.subr.bf16.mxu0 %v8407_v31 }
0x14bb   :  { %6517 = vmatpush3.bf16.msra.mxu0 %v6797_v52 }
0x14bc   :  { %6518 = vmatprep.subr.bf16.mxu0 %v8407_v31 }
0x14bf   :  { %6519 = vmatpush3.bf16.msra.mxu0 %v6798_v44 }
0x14c0   :  { %6520 = vmatprep.subr.bf16.mxu0 %v8407_v31 }
0x14c3   :  { %6521 = vmatpush3.bf16.msra.mxu0 %v6799_v37 }
0x14c4   :  { %6522 = vmatprep.subr.bf16.mxu0 %v8407_v31 }
0x14c5   :  { %v4302_v1 = vpop.f32.mrb[100].mxu1 }
0x14c6   :  { %v6498_v16 = vpop.f32.mrb[101].mxu1 }
0x14c7   :  { %v4305_v23 = vpop.f32.mrb[102].mxu1  ;;  %6523 = vmatpush3.bf16.msra.mxu0 %v6800_v9 }
0x14c8   :  { %v6499_v4 = vpop.f32.mrb[103].mxu1  ;;  %6524 = vmatprep.subr.bf16.mxu0 %v8407_v31 }
0x14cb   :  { %6525 = vmatpush3.bf16.msra.mxu0 %v6801_v3 }
0x14cc   :  { %6526 = vmatprep.subr.bf16.mxu0 %v8407_v31 }
0x14cf   :  { %6527 = vmatpush3.bf16.msra.mxu0 %v6802_v41 }
0x14d0   :  { %6564 = vmatprep.subr.bf16.mxu0 %v8407_v31 }
0x157d   :  { %v4213_v47 = vpop.f32.mrb[108].mxu0 }
0x157e   :  { %v8136_v56 = vadd.f32 %v4302_v1, %v4213_v47  ;;  %v6478_v48 = vpop.f32.mrb[109].mxu0  ;;  %v8473_v1 = vld [vmem:[#allocation27_spill] sm:$0xff] }
0x157f   :  { %v4216_v15 = vpop.f32.mrb[110].mxu0  ;;  %v8474_v16 = vpack.c.bf16 %v8472_v34, %v8473_v1  ;;  %v8481_v1 = vld [vmem:[#allocation30_spill] sm:$0xff] }
0x1580   :  { %v8138_v21 = vadd.f32 %v4305_v23, %v4216_v15  ;;  %v6479_v26 = vpop.f32.mrb[111].mxu0 }
0x1585   :  { %v4343_v28 = vpop.f32.mrb[112].mxu0 }
0x1586   :  { %v6504_v25 = vpop.f32.mrb[113].mxu0  ;;  %v4350_v14 = vsel %vm2187_vm1, %v4343_v28, -inf }
0x1587   :  { %4351 = vmax.xlane.f32.xlu0 %v4350_v14  ;;  %v4346_v63 = vpop.f32.mrb[114].mxu0  ;;  %v8476_v25 = vld [vmem:[#allocation22_spill] sm:$0xff] }
0x1588   :  { %v6505_v61 = vpop.f32.mrb[115].mxu0  ;;  %v4353_v17 = vsel %vm2187_vm1, %v4346_v63, -inf }
0x1589   :  { %4354 = vmax.xlane.f32.xlu1 %v4353_v17  ;;  %v8479_v61 = vld [vmem:[#allocation33_spill] sm:$0xff] }
0x1614   :  { %v4352_v45 = vpop.xlane.xlu0 %4351 }
0x1615   :  { %v4356_v11 = vsub.f32 %v4343_v28, %v4352_v45  ;;  %v8475_v28 = vld [vmem:[#allocation24_spill] sm:$0xff] }
0x1616   :  { %v4355_v43 = vpop.xlane.xlu1 %4354  ;;  %v8477_v14 = vpack.c.bf16 %v8475_v28, %v8476_v25 }
0x1617   :  { %v4358_v12 = vmul.f32 1.442695, %v4356_v11  ;;  %v4357_v7 = vsub.f32 %v4346_v63, %v4355_v43  ;;  %v8478_v63 = vld [vmem:[#allocation35_spill] sm:$0xff] }
0x1618   :  { %v8480_v17 = vpack.c.bf16 %v8478_v63, %v8479_v61 }
0x1619   :  { %6923 = vpow2.f32 %v4358_v12  ;;  %v4360_v13 = vmul.f32 1.442695, %v4357_v7 }
0x161b   :  { %6925 = vpow2.f32 %v4360_v13 }
0x1623   :  { %v6924_v24 = vpop.eup %6923 }
0x1624   :  { %v4362_v39 = vsel %vm2187_vm1, %v6924_v24, 0.0 }
0x1625   :  { %v6926_v38 = vpop.eup %6925  ;;  %4363 = vadd.xlane.f32.xlu0 %v4362_v39 }
0x1626   :  { %v4365_v8 = vsel %vm2187_vm1, %v6926_v38, 0.0 }
0x1627   :  { %4366 = vadd.xlane.f32.xlu1 %v4365_v8 }
0x16b2   :  { %v4364_v59 = vpop.xlane.xlu0 %4363 }
0x16b3   :  { %6927 = vrcp.f32 %v4364_v59 }
0x16b4   :  { %v4367_v5 = vpop.xlane.xlu1 %4366 }
0x16b5   :  { %6929 = vrcp.f32 %v4367_v5 }
0x16bd   :  { %v6928_v6 = vpop.eup %6927 }
0x16be   :  { %v4370_v33 = vmul.f32 %v6928_v6, %v6924_v24 }
0x16bf   :  { %v6930_v32 = vpop.eup %6929 }
0x16c0   :  { %v4371_v62 = vmul.f32 %v6930_v32, %v6926_v38 }
0x16c2   :  { %v4372_v51 = vpack.c.bf16 %v4371_v62, %v4370_v33 }
0x16c4   :  { %6509 = vmatmul.mubr.msk.bf16.vlgmr.msra.gmra.mrb[104].mxu1 %vm2187_vm1, %v4372_v51 }
0x16c5   :  { %6533 = vmatpush3.bf16.xpose.msra.mxu1 %v8465_v18  ;;  %6534 = vmatprep.mubr.msk.bf16.mxu1 %vm7172_vm0, %v8407_v31 }
0x16c6   :  { %6538 = vmatprep.subr.bf16.mxu1 %v8407_v31 }
0x16cc   :  { %6535 = vmatmul.mubr.bf16.vlgmr.msra.gmra.mrb[108].mxu1 %v8468_v0  ;;  %v6806_v0 = vld [vmem:[#allocation13 + $0xd8] sm:$0xff]  }
0x16cd   :  { %6539 = vmatpush3.bf16.msra.mxu1 %v8471_v2  ;;  %6540 = vmatprep.mubr.msk.bf16.mxu1 %vm7172_vm0, %v8407_v31  ;;  %v6809_v2 = vld [vmem:[#allocation13 + $0xf0] sm:$0xff]  }
0x16ce   :  { %6544 = vmatprep.subr.bf16.mxu1 %v8407_v31 }
0x1797   :  { %v4410_v30 = vpop.f32.mrb[104].mxu1 }
0x1798   :  { %v6510_v57 = vpop.f32.mrb[105].mxu1 }
0x1799   :  { %v4413_v58 = vpop.f32.mrb[106].mxu1 }
0x179a   :  { %v4417_v53 = vpack.c.bf16 %v4413_v58, %v4410_v30  ;;  %v6511_v54 = vpop.f32.mrb[107].mxu1  ;;  %v6810_v30 = vld [vmem:[#allocation13 + $0xf8] sm:$0xff]  }
0x179c   :  { %6529 = vmatmul.mubr.bf16.vlgmr.msra.gmra.mrb[116].mxu0 %v4417_v53 }
0x179d   :  { %6565 = vmatpush3.bf16.xpose.msra.mxu0 %v8474_v16  ;;  %6566 = vmatprep.mubr.msk.bf16.mxu0 %vm7172_vm0, %v8407_v31  ;;  %v8482_v16 = vld [vmem:[#allocation28_spill] sm:$0xff] }
0x179e   :  { %6570 = vmatprep.subr.bf16.mxu0 %v8407_v31 }
0x179f   :  { %v4559_v23 = vpop.f32.mrb[108].mxu1 }
0x17a0   :  { %v6536_v4 = vpop.f32.mrb[109].mxu1  ;;  %v4566_v47 = vsel %vm2187_vm1, %v4559_v23, -inf }
0x17a1   :  { %4567 = vmax.xlane.f32.xlu0 %v4566_v47  ;;  %v4562_v48 = vpop.f32.mrb[110].mxu1  ;;  %v8484_v4 = vld [vmem:[#allocation25_spill] sm:$0xff]  ;;  %v8485_v47 = vld [vmem:[#allocation23_spill] sm:$0xff] }
0x17a2   :  { %v6537_v15 = vpop.f32.mrb[111].mxu1  ;;  %v4569_v26 = vsel %vm2187_vm1, %v4562_v48, -inf }
0x17a3   :  { %4570 = vmax.xlane.f32.xlu1 %v4569_v26  ;;  %v8487_v15 = vld [vmem:[#allocation36_spill] sm:$0xff]  ;;  %v8488_v26 = vld [vmem:[#allocation34_spill] sm:$0xff] }
0x17a4   :  { %6567 = vmatmul.mubr.bf16.vlgmr.msra.gmra.mrb[120].mxu0 %v8477_v14  ;;  %v8489_v28 = vpack.c.bf16 %v8487_v15, %v8488_v26  ;;  %v6819_v15 = vld [vmem:[#allocation13 + $0x140] sm:$0xff]  }
0x17a5   :  { %6571 = vmatpush3.bf16.msra.mxu0 %v8480_v17  ;;  %6572 = vmatprep.mubr.msk.bf16.mxu0 %vm7172_vm0, %v8407_v31 }
0x17a6   :  { %6576 = vmatprep.subr.bf16.mxu0 %v8407_v31 }
0x182e   :  { %v4568_v45 = vpop.xlane.xlu0 %4567 }
0x182f   :  { %v4572_v11 = vsub.f32 %v4559_v23, %v4568_v45  ;;  %v8483_v23 = vpack.c.bf16 %v8481_v1, %v8482_v16 }
0x1830   :  { %v4571_v43 = vpop.xlane.xlu1 %4570 }
0x1831   :  { %v4574_v12 = vmul.f32 1.442695, %v4572_v11  ;;  %v4573_v7 = vsub.f32 %v4562_v48, %v4571_v43  ;;  %v8486_v48 = vpack.c.bf16 %v8484_v4, %v8485_v47 }
0x1833   :  { %6931 = vpow2.f32 %v4574_v12  ;;  %v4576_v13 = vmul.f32 1.442695, %v4573_v7 }
0x1835   :  { %6933 = vpow2.f32 %v4576_v13 }
0x183d   :  { %v6932_v24 = vpop.eup %6931 }
0x183e   :  { %v4578_v39 = vsel %vm2187_vm1, %v6932_v24, 0.0 }
0x183f   :  { %v6934_v38 = vpop.eup %6933  ;;  %4579 = vadd.xlane.f32.xlu0 %v4578_v39 }
0x1840   :  { %v4581_v8 = vsel %vm2187_vm1, %v6934_v38, 0.0 }
0x1841   :  { %4582 = vadd.xlane.f32.xlu1 %v4581_v8 }
0x186f   :  { %v4516_v40 = vpop.f32.mrb[116].mxu0 }
0x1870   :  { %v8188_v50 = vadd.f32 %v4516_v40, %v8136_v56  ;;  %v6530_v52 = vpop.f32.mrb[117].mxu0 }
0x1871   :  { %v4519_v44 = vpop.f32.mrb[118].mxu0 }
0x1872   :  { %v8191_v37 = vadd.f32 %v4519_v44, %v8138_v21  ;;  %v6531_v9 = vpop.f32.mrb[119].mxu0 }
0x1877   :  { %v4775_v3 = vpop.f32.mrb[120].mxu0 }
0x1878   :  { %v6568_v41 = vpop.f32.mrb[121].mxu0  ;;  %v4782_v59 = vsel %vm2187_vm1, %v4775_v3, -inf }
0x1879   :  { %4783 = vmax.xlane.f32.xlu0 %v4782_v59  ;;  %v4778_v5 = vpop.f32.mrb[122].mxu0 }
0x187a   :  { %v6569_v6 = vpop.f32.mrb[123].mxu0  ;;  %v4785_v32 = vsel %vm2187_vm1, %v4778_v5, -inf }
0x187b   :  { %4786 = vmax.xlane.f32.xlu1 %v4785_v32 }
0x18cc   :  { %v4580_v33 = vpop.xlane.xlu0 %4579 }
0x18cd   :  { %6935 = vrcp.f32 %v4580_v33 }
0x18ce   :  { %v4583_v56 = vpop.xlane.xlu1 %4582 }
0x18cf   :  { %6937 = vrcp.f32 %v4583_v56 }
0x18d7   :  { %v6936_v62 = vpop.eup %6935 }
0x18d8   :  { %v4586_v36 = vmul.f32 %v6936_v62, %v6932_v24 }
0x18d9   :  { %v6938_v51 = vpop.eup %6937 }
0x18da   :  { %v4587_v21 = vmul.f32 %v6938_v51, %v6934_v38 }
0x18dc   :  { %v4588_v18 = vpack.c.bf16 %v4587_v21, %v4586_v36 }
0x18de   :  { %6541 = vmatmul.mubr.msk.bf16.vlgmr.msra.gmra.mrb[112].mxu1 %vm2187_vm1, %v4588_v18 }
0x18df   :  { %6545 = vmatpush3.bf16.msra.mxu1 %v6803_v55  ;;  %6560 = vmatprep.mubr.msk.bf16.mxu1 %vm7172_vm0, %v8407_v31 }
0x18e0   :  { %6546 = vmatprep.subr.bf16.mxu1 %v8407_v31 }
0x18e3   :  { %6547 = vmatpush3.bf16.msra.mxu1 %v6804_v22 }
0x18e4   :  { %6548 = vmatprep.subr.bf16.mxu1 %v8407_v31 }
0x18e7   :  { %6549 = vmatpush3.bf16.msra.mxu1 %v6805_v49 }
0x18e8   :  { %6550 = vmatprep.subr.bf16.mxu1 %v8407_v31 }
0x18eb   :  { %6551 = vmatpush3.bf16.msra.mxu1 %v6806_v0 }
0x18ec   :  { %6552 = vmatprep.subr.bf16.mxu1 %v8407_v31 }
0x18ef   :  { %6553 = vmatpush3.bf16.msra.mxu1 %v6807_v60 }
0x18f0   :  { %6554 = vmatprep.subr.bf16.mxu1 %v8407_v31 }
0x18f3   :  { %6555 = vmatpush3.bf16.msra.mxu1 %v6808_v29  ;;  %v6811_v29 = vld [vmem:[#allocation13 + $0x100] sm:$0xff]  }
0x18f4   :  { %6556 = vmatprep.subr.bf16.mxu1 %v8407_v31 }
0x18f7   :  { %6557 = vmatpush3.bf16.msra.mxu1 %v6809_v2  ;;  %v6812_v2 = vld [vmem:[#allocation13 + $0x108] sm:$0xff]  }
0x18f8   :  { %6558 = vmatprep.subr.bf16.mxu1 %v8407_v31 }
0x18fb   :  { %6559 = vmatpush3.bf16.msra.mxu1 %v6810_v30  ;;  %v6813_v30 = vld [vmem:[#allocation13 + $0x110] sm:$0xff]  }
0x18fc   :  { %6596 = vmatprep.subr.bf16.mxu1 %v8407_v31 }
0x1906   :  { %v4784_v25 = vpop.xlane.xlu0 %4783 }
0x1907   :  { %v4788_v63 = vsub.f32 %v4775_v3, %v4784_v25  ;;  %v6821_v25 = vld [vmem:[#allocation13 + $0x150] sm:$0xff]  }
0x1908   :  { %v4787_v14 = vpop.xlane.xlu1 %4786 }
0x1909   :  { %v4789_v61 = vsub.f32 %v4778_v5, %v4787_v14  ;;  %v4790_v17 = vmul.f32 1.442695, %v4788_v63  ;;  %v6822_v14 = vld [vmem:[#allocation13 + $0x158] sm:$0xff]   ;;  %v6823_v63 = vld [vmem:[#allocation13 + $0x160] sm:$0xff]  }
0x190b   :  { %v4792_v45 = vmul.f32 1.442695, %v4789_v61  ;;  %6939 = vpow2.f32 %v4790_v17  ;;  %v6824_v61 = vld [vmem:[#allocation13 + $0x168] sm:$0xff]   ;;  %v6825_v17 = vld [vmem:[#allocation13 + $0x170] sm:$0xff]  }
0x190d   :  { %6941 = vpow2.f32 %v4792_v45  ;;  %v6826_v45 = vld [vmem:[#allocation13 + $0x178] sm:$0xff]  }
0x1915   :  { %v6940_v40 = vpop.eup %6939 }
0x1917   :  { %v6942_v3 = vpop.eup %6941 }
0x1918   :  { %v4797_v41 = vsel %vm2187_vm1, %v6942_v3, 0.0 }
0x19b1   :  { %v4626_v57 = vpop.f32.mrb[112].mxu1 }
0x19b2   :  { %v6542_v58 = vpop.f32.mrb[113].mxu1 }
0x19b3   :  { %v4629_v53 = vpop.f32.mrb[114].mxu1  ;;  %v6815_v58 = vld [vmem:[#allocation13 + $0x120] sm:$0xff]  }
0x19b4   :  { %v4633_v54 = vpack.c.bf16 %v4629_v53, %v4626_v57  ;;  %v6543_v34 = vpop.f32.mrb[115].mxu1  ;;  %v6814_v57 = vld [vmem:[#allocation13 + $0x118] sm:$0xff]   ;;  %v6816_v53 = vld [vmem:[#allocation13 + $0x128] sm:$0xff]  }
0x19b5   :  { %v6818_v34 = vld [vmem:[#allocation13 + $0x138] sm:$0xff]  }
0x19b6   :  { %6561 = vmatmul.mubr.bf16.vlgmr.msra.gmra.mrb[116].mxu1 %v4633_v54  ;;  %v6817_v54 = vld [vmem:[#allocation13 + $0x130] sm:$0xff]  }
0x19b7   :  { %6597 = vmatpush3.bf16.xpose.msra.mxu1 %v8483_v23  ;;  %6598 = vmatprep.mubr.msk.bf16.mxu1 %vm7172_vm0, %v8407_v31 }
0x19b8   :  { %6602 = vmatprep.subr.bf16.mxu1 %v8407_v31 }
0x19be   :  { %6599 = vmatmul.mubr.bf16.vlgmr.msra.gmra.mrb[120].mxu1 %v8486_v48 }
0x19bf   :  { %6603 = vmatpush3.bf16.msra.mxu1 %v8489_v28  ;;  %6604 = vmatprep.mubr.msk.bf16.mxu1 %vm7172_vm0, %v8407_v31  ;;  %v6820_v28 = vld [vmem:[#allocation13 + $0x148] sm:$0xff]  }
0x19c0   :  { %6608 = vmatprep.subr.bf16.mxu1 %v8407_v31 }
0x1a89   :  { %v4732_v11 = vpop.f32.mrb[116].mxu1 }
0x1a8a   :  { %v8222_v43 = vadd.f32 %v4732_v11, %v8188_v50  ;;  %v6562_v12 = vpop.f32.mrb[117].mxu1  ;;  %v4794_v50 = vsel %vm2187_vm1, %v6940_v40, 0.0 }
0x1a8b   :  { %v4735_v7 = vpop.f32.mrb[118].mxu1 }
0x1a8c   :  { %v8225_v13 = vadd.f32 %v4735_v7, %v8191_v37  ;;  %v6563_v24 = vpop.f32.mrb[119].mxu1 }
0x1a91   :  { %v4991_v39 = vpop.f32.mrb[120].mxu1 }
0x1a92   :  { %v6600_v38 = vpop.f32.mrb[121].mxu1  ;;  %v4998_v8 = vsel %vm2187_vm1, %v4991_v39, -inf }
0x1a93   :  { %v4994_v52 = vpop.f32.mrb[122].mxu1  ;;  %4999 = vmax.xlane.f32.xlu0 %v4998_v8  ;;  %v8490_v38 = vld [vmem:[#allocation51_spill] sm:$0xff]  ;;  %v8491_v8 = vld [vmem:[#allocation49_spill] sm:$0xff] }
0x1a94   :  { %v6601_v44 = vpop.f32.mrb[123].mxu1  ;;  %v5001_v9 = vsel %vm2187_vm1, %v4994_v52, -inf }
0x1a95   :  { %5002 = vmax.xlane.f32.xlu1 %v5001_v9  ;;  %v8494_v44 = vld [vmem:[#allocation41_spill] sm:$0xff] }
0x1a97   :  { %4795 = vadd.xlane.f32.xlu0 %v4794_v50 }
0x1a99   :  { %4798 = vadd.xlane.f32.xlu1 %v4797_v41 }
0x1b20   :  { %v5000_v37 = vpop.xlane.xlu0 %4999 }
0x1b21   :  { %v5004_v59 = vsub.f32 %v4991_v39, %v5000_v37 }
0x1b22   :  { %v5003_v5 = vpop.xlane.xlu1 %5002 }
0x1b23   :  { %v5006_v6 = vmul.f32 1.442695, %v5004_v59  ;;  %v5005_v32 = vsub.f32 %v4994_v52, %v5003_v5  ;;  %v8493_v52 = vld [vmem:[#allocation43_spill] sm:$0xff]  ;;  %v8496_v5 = vld [vmem:[#allocation52_spill] sm:$0xff] }
0x1b24   :  { %v4796_v33 = vpop.xlane.xlu0 %4795  ;;  %v8495_v9 = vpack.c.bf16 %v8493_v52, %v8494_v44 }
0x1b25   :  { %6943 = vpow2.f32 %v5006_v6  ;;  %v5008_v56 = vmul.f32 1.442695, %v5005_v32  ;;  %v8497_v6 = vld [vmem:[#allocation50_spill] sm:$0xff] }
0x1b26   :  { %6945 = vrcp.f32 %v4796_v33  ;;  %v4799_v62 = vpop.xlane.xlu1 %4798  ;;  %v8498_v32 = vpack.c.bf16 %v8496_v5, %v8497_v6  ;;  %v6832_v5 = vld [vmem:[#allocation13 + $0x1a8] sm:$0xff]   ;;  %v6833_v6 = vld [vmem:[#allocation13 + $0x1b0] sm:$0xff]  }
0x1b27   :  { %6947 = vpow2.f32 %v5008_v56 }
0x1b28   :  { %6949 = vrcp.f32 %v4799_v62 }
0x1b2f   :  { %v6944_v51 = vpop.eup %6943 }
0x1b30   :  { %v6946_v36 = vpop.eup %6945  ;;  %v5010_v21 = vsel %vm2187_vm1, %v6944_v51, 0.0 }
0x1b31   :  { %v6948_v55 = vpop.eup %6947  ;;  %5011 = vadd.xlane.f32.xlu0 %v5010_v21  ;;  %v4802_v49 = vmul.f32 %v6946_v36, %v6940_v40  ;;  %v8492_v40 = vpack.c.bf16 %v8490_v38, %v8491_v8 }
0x1b32   :  { %v6950_v18 = vpop.eup %6949  ;;  %v5013_v22 = vsel %vm2187_vm1, %v6948_v55, 0.0 }
0x1b33   :  { %v4803_v0 = vmul.f32 %v6950_v18, %v6942_v3  ;;  %5014 = vadd.xlane.f32.xlu1 %v5013_v22 }
0x1b35   :  { %v4804_v60 = vpack.c.bf16 %v4803_v0, %v4802_v49 }
0x1b37   :  { %6573 = vmatmul.mubr.msk.bf16.vlgmr.msra.gmra.mrb[124].mxu0 %vm2187_vm1, %v4804_v60 }
0x1b38   :  { %6592 = vmatprep.mubr.msk.bf16.mxu0 %vm7172_vm0, %v8407_v31  ;;  %6577 = vmatpush3.bf16.msra.mxu0 %v6811_v29 }
0x1b39   :  { %6578 = vmatprep.subr.bf16.mxu0 %v8407_v31 }
0x1b3c   :  { %6579 = vmatpush3.bf16.msra.mxu0 %v6812_v2 }
0x1b3d   :  { %6580 = vmatprep.subr.bf16.mxu0 %v8407_v31 }
0x1b40   :  { %6581 = vmatpush3.bf16.msra.mxu0 %v6813_v30 }
0x1b41   :  { %6582 = vmatprep.subr.bf16.mxu0 %v8407_v31 }
0x1b44   :  { %6583 = vmatpush3.bf16.msra.mxu0 %v6814_v57 }
0x1b45   :  { %6584 = vmatprep.subr.bf16.mxu0 %v8407_v31 }
0x1b48   :  { %6585 = vmatpush3.bf16.msra.mxu0 %v6815_v58 }
0x1b49   :  { %6586 = vmatprep.subr.bf16.mxu0 %v8407_v31 }
0x1b4c   :  { %6587 = vmatpush3.bf16.msra.mxu0 %v6816_v53 }
0x1b4d   :  { %6588 = vmatprep.subr.bf16.mxu0 %v8407_v31 }
0x1b50   :  { %6589 = vmatpush3.bf16.msra.mxu0 %v6817_v54 }
0x1b51   :  { %6590 = vmatprep.subr.bf16.mxu0 %v8407_v31 }
0x1b54   :  { %6591 = vmatpush3.bf16.msra.mxu0 %v6818_v34 }
0x1b55   :  { %6628 = vmatprep.subr.bf16.mxu0 %v8407_v31 }
0x1bbe   :  { %v5012_v1 = vpop.xlane.xlu0 %5011 }
0x1bbf   :  { %6951 = vrcp.f32 %v5012_v1 }
0x1bc0   :  { %v5015_v16 = vpop.xlane.xlu1 %5014 }
0x1bc1   :  { %6953 = vrcp.f32 %v5015_v16 }
0x1bc9   :  { %v6952_v23 = vpop.eup %6951 }
0x1bca   :  { %v5018_v47 = vmul.f32 %v6952_v23, %v6944_v51 }
0x1bcb   :  { %v6954_v4 = vpop.eup %6953 }
0x1bcc   :  { %v5019_v48 = vmul.f32 %v6954_v4, %v6948_v55 }
0x1bce   :  { %v5020_v26 = vpack.c.bf16 %v5019_v48, %v5018_v47 }
0x1bd0   :  { %6605 = vmatmul.mubr.msk.bf16.vlgmr.msra.gmra.mrb[124].mxu1 %vm2187_vm1, %v5020_v26 }
0x1bd1   :  { %6609 = vmatpush3.bf16.msra.mxu1 %v6819_v15  ;;  %6624 = vmatprep.mubr.msk.bf16.mxu1 %vm7172_vm0, %v8407_v31 }
0x1bd2   :  { %6610 = vmatprep.subr.bf16.mxu1 %v8407_v31 }
0x1bd5   :  { %6611 = vmatpush3.bf16.msra.mxu1 %v6820_v28 }
0x1bd6   :  { %6612 = vmatprep.subr.bf16.mxu1 %v8407_v31 }
0x1bd9   :  { %6613 = vmatpush3.bf16.msra.mxu1 %v6821_v25 }
0x1bda   :  { %6614 = vmatprep.subr.bf16.mxu1 %v8407_v31 }
0x1bdd   :  { %6615 = vmatpush3.bf16.msra.mxu1 %v6822_v14 }
0x1bde   :  { %6616 = vmatprep.subr.bf16.mxu1 %v8407_v31 }
0x1be1   :  { %6617 = vmatpush3.bf16.msra.mxu1 %v6823_v63 }
0x1be2   :  { %6618 = vmatprep.subr.bf16.mxu1 %v8407_v31 }
0x1be5   :  { %6619 = vmatpush3.bf16.msra.mxu1 %v6824_v61 }
0x1be6   :  { %6620 = vmatprep.subr.bf16.mxu1 %v8407_v31 }
0x1be9   :  { %6621 = vmatpush3.bf16.msra.mxu1 %v6825_v17 }
0x1bea   :  { %6622 = vmatprep.subr.bf16.mxu1 %v8407_v31 }
0x1bed   :  { %6623 = vmatpush3.bf16.msra.mxu1 %v6826_v45 }
0x1bee   :  { %6660 = vmatprep.subr.bf16.mxu1 %v8407_v31 }
0x1c0a   :  { %v4842_v11 = vpop.f32.mrb[124].mxu0 }
0x1c0b   :  { %v6574_v12 = vpop.f32.mrb[125].mxu0 }
0x1c0c   :  { %v4845_v7 = vpop.f32.mrb[126].mxu0 }
0x1c0d   :  { %v4849_v24 = vpack.c.bf16 %v4845_v7, %v4842_v11  ;;  %v6575_v39 = vpop.f32.mrb[127].mxu0 }
0x1c0f   :  { %6593 = vmatmul.mubr.bf16.vlgmr.msra.gmra.mrb[128].mxu0 %v4849_v24 }
0x1c10   :  { %6629 = vmatpush3.bf16.xpose.msra.mxu0 %v8492_v40  ;;  %6630 = vmatprep.mubr.msk.bf16.mxu0 %vm7172_vm0, %v8407_v31 }
0x1c11   :  { %6634 = vmatprep.subr.bf16.mxu0 %v8407_v31 }
0x1c17   :  { %6631 = vmatmul.mubr.bf16.vlgmr.msra.gmra.mrb[132].mxu0 %v8495_v9 }
0x1c18   :  { %6635 = vmatpush3.bf16.msra.mxu0 %v2143_v35  ;;  %6636 = vmatprep.mubr.msk.bf16.mxu0 %vm7172_vm0, %v8407_v31  ;;  %v8501_v35 = vpack.c.bf16 %v8499_v19, %v8500_v20 }
0x1c19   :  { %6640 = vmatprep.subr.bf16.mxu0 %v8407_v31 }
0x1ca3   :  { %v5058_v3 = vpop.f32.mrb[124].mxu1 }
0x1ca4   :  { %v6606_v50 = vpop.f32.mrb[125].mxu1 }
0x1ca5   :  { %v5061_v41 = vpop.f32.mrb[126].mxu1  ;;  %v6828_v50 = vld [vmem:[#allocation13 + $0x188] sm:$0xff]  }
0x1ca6   :  { %v5065_v37 = vpack.c.bf16 %v5061_v41, %v5058_v3  ;;  %v6607_v59 = vpop.f32.mrb[127].mxu1  ;;  %v6827_v3 = vld [vmem:[#allocation13 + $0x180] sm:$0xff]   ;;  %v6829_v41 = vld [vmem:[#allocation13 + $0x190] sm:$0xff]  }
0x1ca7   :  { %v6831_v59 = vld [vmem:[#allocation13 + $0x1a0] sm:$0xff]  }
0x1ca8   :  { %6625 = vmatmul.mubr.bf16.vlgmr.msra.gmra.mrb[128].mxu1 %v5065_v37  ;;  %v6830_v37 = vld [vmem:[#allocation13 + $0x198] sm:$0xff]  }
0x1ca9   :  { %6661 = vmatpush3.bf16.xpose.msra.mxu1 %v8498_v32  ;;  %6662 = vmatprep.mubr.msk.bf16.mxu1 %vm7172_vm0, %v8407_v31  ;;  %v6834_v32 = vld [vmem:[#allocation13 + $0x1b8] sm:$0xff]  }
0x1caa   :  { %6666 = vmatprep.subr.bf16.mxu1 %v8407_v31 }
0x1cb0   :  { %6663 = vmatmul.mubr.bf16.vlgmr.msra.gmra.mrb[132].mxu1 %v8501_v35 }
0x1cb1   :  { %6667 = vmatpush3.bf16.msra.mxu1 %v2144_v10  ;;  %6668 = vmatprep.mubr.msk.bf16.mxu1 %vm7172_vm0, %v8407_v31 }
0x1cb2   :  { %6672 = vmatprep.subr.bf16.mxu1 %v8407_v31 }
0x1ce2   :  { %v4948_v33 = vpop.f32.mrb[128].mxu0 }
0x1ce3   :  { %v4955_v56 = vadd.f32 %v4948_v33, %v8222_v43  ;;  %v6594_v62 = vpop.f32.mrb[129].mxu0 }
0x1ce4   :  { %v4951_v51 = vpop.f32.mrb[130].mxu0 }
0x1ce5   :  { %v4956_v36 = vadd.f32 %v4951_v51, %v8225_v13  ;;  %v6595_v21 = vpop.f32.mrb[131].mxu0  ;;  %v6835_v51 = vld [vmem:[#allocation13 + $0x1c0] sm:$0xff]  }
0x1ce6   :  { %v6836_v21 = vld [vmem:[#allocation13 + $0x1c8] sm:$0xff]  }
0x1cea   :  { %v5207_v55 = vpop.f32.mrb[132].mxu0 }
0x1ceb   :  { %v6632_v18 = vpop.f32.mrb[133].mxu0  ;;  %v5214_v22 = vsel %vm2187_vm1, %v5207_v55, -inf }
0x1cec   :  { %5215 = vmax.xlane.f32.xlu0 %v5214_v22  ;;  %v5210_v46 = vpop.f32.mrb[134].mxu0  ;;  %v6838_v18 = vld [vmem:[#allocation13 + $0x1d8] sm:$0xff]   ;;  %v6839_v22 = vld [vmem:[#allocation13 + $0x1e0] sm:$0xff]  }
0x1ced   :  { %v6633_v27 = vpop.f32.mrb[135].mxu0  ;;  %v5217_v10 = vsel %vm2187_vm1, %v5210_v46, -inf }
0x1cee   :  { %5218 = vmax.xlane.f32.xlu1 %v5217_v10  ;;  %v6841_v27 = vld [vmem:[#allocation13 + $0x1f0] sm:$0xff]  }
0x1d79   :  { %v5216_v49 = vpop.xlane.xlu0 %5215 }
0x1d7a   :  { %v5220_v0 = vsub.f32 %v5207_v55, %v5216_v49  ;;  %v6837_v55 = vld [vmem:[#allocation13 + $0x1d0] sm:$0xff]  }
0x1d7b   :  { %v5219_v60 = vpop.xlane.xlu1 %5218  ;;  %v5164_v29 = vpop.f32.mrb[128].mxu1 }
0x1d7c   :  { %v5222_v43 = vmul.f32 1.442695, %v5220_v0  ;;  %v5221_v2 = vsub.f32 %v5210_v46, %v5219_v60  ;;  %v8289_v30 = vadd.f32 %v5164_v29, %v4955_v56  ;;  %v6626_v13 = vpop.f32.mrb[129].mxu1  ;;  %v6840_v46 = vld [vmem:[#allocation13 + $0x1e8] sm:$0xff]  }
0x1d7d   :  { %v5167_v57 = vpop.f32.mrb[130].mxu1 }
0x1d7e   :  { %6955 = vpow2.f32 %v5222_v43  ;;  %v5224_v58 = vmul.f32 1.442695, %v5221_v2  ;;  %v8291_v53 = vadd.f32 %v5167_v57, %v4956_v36  ;;  %v6627_v54 = vpop.f32.mrb[131].mxu1  ;;  %v6842_v43 = vld [vmem:[#allocation13 + $0x1f8] sm:$0xff]  }
0x1d80   :  { %6957 = vpow2.f32 %v5224_v58 }
0x1d83   :  { %v5423_v34 = vpop.f32.mrb[132].mxu1 }
0x1d84   :  { %v6664_v1 = vpop.f32.mrb[133].mxu1  ;;  %v5430_v16 = vsel %vm2187_vm1, %v5423_v34, -inf }
0x1d85   :  { %v5426_v23 = vpop.f32.mrb[134].mxu1  ;;  %5431 = vmax.xlane.f32.xlu0 %v5430_v16 }
0x1d86   :  { %v6665_v4 = vpop.f32.mrb[135].mxu1  ;;  %v5433_v47 = vsel %vm2187_vm1, %v5426_v23, -inf }
0x1d87   :  { %5434 = vmax.xlane.f32.xlu1 %v5433_v47 }
0x1d88   :  { %v6956_v48 = vpop.eup %6955 }
0x1d89   :  { %v5226_v15 = vsel %vm2187_vm1, %v6956_v48, 0.0 }
0x1d8a   :  { %v6958_v26 = vpop.eup %6957  ;;  %5227 = vadd.xlane.f32.xlu0 %v5226_v15 }
0x1d8b   :  { %v5229_v28 = vsel %vm2187_vm1, %v6958_v26, 0.0 }
0x1d8c   :  { %5230 = vadd.xlane.f32.xlu1 %v5229_v28 }
0x1e12   :  { %v5432_v25 = vpop.xlane.xlu0 %5431 }
0x1e13   :  { %v5436_v14 = vsub.f32 %v5423_v34, %v5432_v25 }
0x1e14   :  { %v5435_v63 = vpop.xlane.xlu1 %5434 }
0x1e15   :  { %v5438_v61 = vmul.f32 1.442695, %v5436_v14  ;;  %v5437_v17 = vsub.f32 %v5426_v23, %v5435_v63 }
0x1e17   :  { %6959 = vpow2.f32 %v5438_v61  ;;  %v5440_v45 = vmul.f32 1.442695, %v5437_v17  ;;  %v5228_v11 = vpop.xlane.xlu0 %5227 }
0x1e18   :  { %6961 = vrcp.f32 %v5228_v11 }
0x1e19   :  { %6963 = vpow2.f32 %v5440_v45  ;;  %v5231_v12 = vpop.xlane.xlu1 %5230 }
0x1e1a   :  { %6965 = vrcp.f32 %v5231_v12 }
0x1e21   :  { %v6960_v7 = vpop.eup %6959 }
0x1e22   :  { %v6962_v24 = vpop.eup %6961  ;;  %v5442_v39 = vsel %vm2187_vm1, %v6960_v7, 0.0 }
0x1e23   :  { %v6964_v38 = vpop.eup %6963  ;;  %5443 = vadd.xlane.f32.xlu0 %v5442_v39  ;;  %v5234_v52 = vmul.f32 %v6962_v24, %v6956_v48 }
0x1e24   :  { %v6966_v8 = vpop.eup %6965  ;;  %v5445_v40 = vsel %vm2187_vm1, %v6964_v38, 0.0 }
0x1e25   :  { %v5235_v44 = vmul.f32 %v6966_v8, %v6958_v26  ;;  %5446 = vadd.xlane.f32.xlu1 %v5445_v40 }
0x1e27   :  { %v5236_v9 = vpack.c.bf16 %v5235_v44, %v5234_v52 }
0x1e29   :  { %6637 = vmatmul.mubr.msk.bf16.vlgmr.msra.gmra.mrb[136].mxu0 %vm2187_vm1, %v5236_v9 }
0x1e2a   :  { %6656 = vmatprep.mubr.msk.bf16.mxu0 %vm7172_vm0, %v8407_v31  ;;  %6641 = vmatpush3.bf16.msra.mxu0 %v6827_v3 }
0x1e2b   :  { %6642 = vmatprep.subr.bf16.mxu0 %v8407_v31 }
0x1e2e   :  { %6643 = vmatpush3.bf16.msra.mxu0 %v6828_v50 }
0x1e2f   :  { %6644 = vmatprep.subr.bf16.mxu0 %v8407_v31 }
0x1e32   :  { %6645 = vmatpush3.bf16.msra.mxu0 %v6829_v41 }
0x1e33   :  { %6646 = vmatprep.subr.bf16.mxu0 %v8407_v31 }
0x1e36   :  { %6647 = vmatpush3.bf16.msra.mxu0 %v6830_v37 }
0x1e37   :  { %6648 = vmatprep.subr.bf16.mxu0 %v8407_v31 }
0x1e3a   :  { %6649 = vmatpush3.bf16.msra.mxu0 %v6831_v59 }
0x1e3b   :  { %6650 = vmatprep.subr.bf16.mxu0 %v8407_v31 }
0x1e3e   :  { %6651 = vmatpush3.bf16.msra.mxu0 %v6832_v5 }
0x1e3f   :  { %6652 = vmatprep.subr.bf16.mxu0 %v8407_v31 }
0x1e42   :  { %6653 = vmatpush3.bf16.msra.mxu0 %v6833_v6 }
0x1e43   :  { %6654 = vmatprep.subr.bf16.mxu0 %v8407_v31 }
0x1e46   :  { %6655 = vmatpush3.bf16.msra.mxu0 %v6834_v32 }
0x1eb0   :  { %v5444_v19 = vpop.xlane.xlu0 %5443 }
0x1eb1   :  { %6967 = vrcp.f32 %v5444_v19 }
0x1eb2   :  { %v5447_v20 = vpop.xlane.xlu1 %5446 }
0x1eb3   :  { %6969 = vrcp.f32 %v5447_v20 }
0x1ebb   :  { %v6968_v35 = vpop.eup %6967 }
0x1ebc   :  { %v5450_v56 = vmul.f32 %v6968_v35, %v6960_v7 }
0x1ebd   :  { %v6970_v33 = vpop.eup %6969 }
0x1ebe   :  { %v5451_v62 = vmul.f32 %v6970_v33, %v6964_v38 }
0x1ec0   :  { %v5452_v36 = vpack.c.bf16 %v5451_v62, %v5450_v56 }
0x1ec2   :  { %6669 = vmatmul.mubr.msk.bf16.vlgmr.msra.gmra.mrb[136].mxu1 %vm2187_vm1, %v5452_v36 }
0x1ec3   :  { %6673 = vmatpush3.bf16.msra.mxu1 %v6835_v51  ;;  %6688 = vmatprep.mubr.msk.bf16.mxu1 %vm7172_vm0, %v8407_v31 }
0x1ec4   :  { %6674 = vmatprep.subr.bf16.mxu1 %v8407_v31 }
0x1ec7   :  { %6675 = vmatpush3.bf16.msra.mxu1 %v6836_v21 }
0x1ec8   :  { %6676 = vmatprep.subr.bf16.mxu1 %v8407_v31 }
0x1ecb   :  { %6677 = vmatpush3.bf16.msra.mxu1 %v6837_v55 }
0x1ecc   :  { %6678 = vmatprep.subr.bf16.mxu1 %v8407_v31 }
0x1ecf   :  { %6679 = vmatpush3.bf16.msra.mxu1 %v6838_v18 }
0x1ed0   :  { %6680 = vmatprep.subr.bf16.mxu1 %v8407_v31 }
0x1ed3   :  { %6681 = vmatpush3.bf16.msra.mxu1 %v6839_v22 }
0x1ed4   :  { %6682 = vmatprep.subr.bf16.mxu1 %v8407_v31 }
0x1ed7   :  { %6683 = vmatpush3.bf16.msra.mxu1 %v6840_v46 }
0x1ed8   :  { %6684 = vmatprep.subr.bf16.mxu1 %v8407_v31 }
0x1edb   :  { %6685 = vmatpush3.bf16.msra.mxu1 %v6841_v27 }
0x1edc   :  { %6686 = vmatprep.subr.bf16.mxu1 %v8407_v31 }
0x1edf   :  { %6687 = vmatpush3.bf16.msra.mxu1 %v6842_v43 }
0x1efc   :  { %v5274_v10 = vpop.f32.mrb[136].mxu0 }
0x1efd   :  { %v6638_v49 = vpop.f32.mrb[137].mxu0 }
0x1efe   :  { %v5277_v0 = vpop.f32.mrb[138].mxu0 }
0x1eff   :  { %v5281_v60 = vpack.c.bf16 %v5277_v0, %v5274_v10  ;;  %v6639_v29 = vpop.f32.mrb[139].mxu0 }
0x1f01   :  { %6657 = vmatmul.mubr.bf16.vlgmr.msra.gmra.mrb[140].mxu0 %v5281_v60 }
0x1f95   :  { %v5490_v2 = vpop.f32.mrb[136].mxu1 }
0x1f96   :  { %v6670_v13 = vpop.f32.mrb[137].mxu1 }
0x1f97   :  { %v5493_v57 = vpop.f32.mrb[138].mxu1 }
0x1f98   :  { %v5497_v58 = vpack.c.bf16 %v5493_v57, %v5490_v2  ;;  %v6671_v54 = vpop.f32.mrb[139].mxu1 }
0x1f9a   :  { %6689 = vmatmul.mubr.bf16.vlgmr.msra.gmra.mrb[140].mxu1 %v5497_v58 }
0x1fd4   :  { %v5380_v34 = vpop.f32.mrb[140].mxu0 }
0x1fd5   :  { %v5387_v1 = vadd.f32 %v5380_v34, %v8289_v30  ;;  %v6658_v16 = vpop.f32.mrb[141].mxu0 }
0x1fd6   :  { %v5383_v23 = vpop.f32.mrb[142].mxu0 }
0x1fd7   :  { %v5388_v31 = vadd.f32 %v5383_v23, %v8291_v53  ;;  %v6659_v4 = vpop.f32.mrb[143].mxu0 }
0x206d   :  { %v5596_v47 = vpop.f32.mrb[140].mxu1 }
0x206e   :  { %v5603_v48 = vadd.f32 %v5596_v47, %v5387_v1  ;;  %v6690_v15 = vpop.f32.mrb[141].mxu1 }
0x206f   :  { %v5599_v26 = vpop.f32.mrb[142].mxu1 }
0x2070   :  { %v5605_v28 = vadd.f32 %v8119_v42, %v5603_v48  ;;  %v5604_v25 = vadd.f32 %v5599_v26, %v5388_v31  ;;  %v6691_v14 = vpop.f32.mrb[143].mxu1 }
0x2072   :  { %5607 = vst [vmem:[#allocation14 + $0x10] sm:$0xff] %v5605_v28  ;;  %v5606_v63 = vadd.f32 %v8119_v42, %v5604_v25 }
0x2074   :  { %5608 = vst [vmem:[#allocation14 + $0x18] sm:$0xff] %v5606_v63 }
0x2075   :  { %7138 = shalt.err (!%p7135_p4)
}
0x2076   :  { %s7139_s16 = scalar_lea.hbm %s8346_s11, 512 }
0x2077   :  { %p7140_p5 = scmp.ne.s32.totalorder %s8346_s11, %s7139_s16  ;;  %p7143_p6 = scmp.lt.u32.totalorder %s7139_s16, %s8346_s11 }
0x2079   :  { %p7145_p7 = pnand %p7143_p6, %p7140_p5 }
0x207b   :  { %7148 = shalt.err (!%p7145_p7)
}
0x207c   :  { %s7174_s20 = smov 128   ;;  %s7175_s22 = smov 8  }
0x207d   :  { %5620 = dma.vmem_to_hbm [thread:$0]  %s5615_s14, 512, %s8346_s11, [#allocation4], %s7174_s20, %s7174_s20, %s7175_s22  }
0x207e   :  { %7157 = dma.done.wait [#allocation4], 512  }
0x207f   :  { %7158 = vsyncadd [#allocation4], 4294966784 }
0x2080   :  { %5624 = vsyncpa [#allocation3], 1 }
0x2081   :  { %5625 = vsyncpa [#allocation6], 1 }
0x2082   :  { %5626 = vsyncpa [#allocation9], 1 }
0x2083   :  { %5627 = vsyncpa [#allocation12], 1 }
0x2084   :  { %5628 = vsyncpa [#allocation4], 1 }

</bundles_post_ra>
